<compile_context>
chip_gen: v7x
topology: tpu7x:2x2x1
jax: 0.10.0
libtpu: 0.0.40
codegen_flags: <defaults>
</compile_context>

<pallas_src>
import functools

import numpy as np
import jax
import jax.numpy as jnp
from jax.experimental import pallas as pl
from jax.experimental.pallas import tpu as pltpu

EPS = 1e-5


# -------------------------------- fused kernel -------------------------------

def _policy_head_kernel(
    x_ref,        # (C1, B*g*g)                 channel-major last-timestep input
    vecs_ref,     # (C1, n_slots)               every gamma/beta/conv-bias column
    w1x1_ref,     # (n_id*2, C1, C1)            1x1-conv weights, (out, in)
    wcv1_ref,     # (9, f_scale, C1)            cv_1 tap weights, (out, in)
    wrb2_ref,     # (n_layer*2*9, f_base, f_base)
    wcv2_ref,     # (9, f_final, f_base)
    ut_ref,       # (B*g*g, R)                  stride-3 zero-insertion upsample
    fcw_ref,      # (f_final, nf, nf+1)         fc_o weights, NCHW-flatten blocked
    fcb_ref,      # (1, nf+1)
    mask_ref,     # (9, R)                      'same'-padding validity per tap
    o_ref,        # (B, nf+1)
    halo_ref,     # scratch (C1, >= 2*halo+R)   lane-shift staging buffer
    *, n_id, n_layer, B, G, f_base, f_scale, f_final, halo):

    C1 = f_base * f_scale
    nf = G * G
    R = B * nf

    def mm(a, b):
        return jnp.dot(a, b, preferred_element_type=jnp.float32)

    def bn(x, slot, C):
        """Training-mode BatchNorm2d: biased per-channel stats over the lane
        (N*H*W) axis, computed single-pass (sum and sum-of-squares together)."""
        m = x.shape[1]
        s1 = jnp.sum(x, axis=1, keepdims=True)
        s2 = jnp.sum(x * x, axis=1, keepdims=True)
        mean = s1 * (1.0 / m)
        var = jnp.maximum(s2 * (1.0 / m) - mean * mean, 0.0)
        gamma = vecs_ref[0:C, slot:slot + 1]
        beta = vecs_ref[0:C, slot + 1:slot + 2]
        return (x - mean) * jax.lax.rsqrt(var + EPS) * gamma + beta

    # Zero the shift scratch once: halo lanes outside the written window stay
    # zero forever, so shifted tap loads never see uninitialised VMEM.
    halo_ref[...] = jnp.zeros_like(halo_ref)

    # Hoist the 9 boundary masks (loop-invariant across every conv stage).
    masks = [mask_ref[k:k + 1, :] for k in range(9)]

    def conv3x3(x, cin, cout, w_ref, tap0, bias_slot):
        """3x3 'same' conv on channel-major (cin, R) activations.  Spatial taps
        come from offset vector loads out of the halo scratch (pure data
        movement on vld slots) + boundary masks; only the 9 small channel-mix
        matmuls hit the MXU, split over 3 partial accumulators."""
        halo_ref[0:cin, pl.ds(halo, R)] = x
        acc = [None, None, None]
        for k in range(9):
            dy, dx = k // 3 - 1, k % 3 - 1
            shifted = halo_ref[0:cin, pl.ds(halo + dy * G + dx, R)]
            tap = shifted * masks[k]
            p = mm(w_ref[tap0 + k], tap)
            j = k % 3
            acc[j] = p if acc[j] is None else acc[j] + p
        bias = vecs_ref[0:cout, bias_slot:bias_slot + 1]
        return (acc[0] + acc[1]) + acc[2] + bias

    # ---- rb_1: n_id residual blocks of BN -> ReLU -> 1x1 conv (x2) -----------
    x = x_ref[...]                                            # (C1, B*g*g)
    for i in range(n_id):
        s = 6 * i
        h = jnp.maximum(bn(x, s, C1), 0.0)
        h = mm(w1x1_ref[2 * i], h) + vecs_ref[0:C1, s + 2:s + 3]
        h = jnp.maximum(bn(h, s + 3, C1), 0.0)
        x = mm(w1x1_ref[2 * i + 1], h) + vecs_ref[0:C1, s + 5:s + 6] + x

    # ---- ln_1 ; MaxUnpool(3,3) emulation (stride-3 zero insertion) ; cv_1 -----
    base1 = 6 * n_id
    y = bn(x, base1, C1)                                      # (C1, B*g*g)
    up = mm(y, ut_ref[...])                                   # (C1, R)
    x = conv3x3(up, C1, f_scale, wcv1_ref, 0, base1 + 2)      # (f_scale, R)

    # ---- rb_2: n_layer residual blocks of BN -> ReLU -> 3x3 conv (x2) ---------
    base2 = base1 + 3
    for i in range(n_layer):
        s = base2 + 6 * i
        h = jnp.maximum(bn(x, s, f_base), 0.0)
        h = conv3x3(h, f_base, f_base, wrb2_ref, (2 * i) * 9, s + 2)
        h = jnp.maximum(bn(h, s + 3, f_base), 0.0)
        x = conv3x3(h, f_base, f_base, wrb2_ref, (2 * i + 1) * 9, s + 5) + x

    # ---- ln_2 ; cv_2 ; ln_f ; rl_f --------------------------------------------
    base3 = base2 + 6 * n_layer
    y = bn(x, base3, f_base)
    z = conv3x3(y, f_base, f_final, wcv2_ref, 0, base3 + 2)   # (f_final, R)
    z = jnp.maximum(bn(z, base3 + 3, f_final), 0.0)

    # ---- NCHW flatten + fc_o (per-batch segments of the lane axis) ------------
    for b in range(B):
        acc = fcb_ref[...]                                    # (1, nf+1)
        for c in range(f_final):
            acc = acc + mm(z[c:c + 1, b * nf:(b + 1) * nf], fcw_ref[c])
        o_ref[b:b + 1, :] = acc


# ------------------------------- params & packing ----------------------------

def init_params(key, hp):
    f_base = hp['convcoder']['f_base']
    f_scale = hp['convcoder']['f_scale']
    gf_n = hp['gf_n']
    f_final = hp['policy']['f_final']
    n_id = hp['policy']['n_id']
    n_layer = hp['policy']['n_layer']
    C1 = f_base * f_scale
    nf = gf_n * gf_n

    keys = iter(jax.random.split(key, 256))

    def nrm(shape, scale=0.1):
        return scale * jax.random.normal(next(keys), shape, jnp.float32)

    def rconv1(C):   # RConv(filtre, feature=1): two BN->ReLU->1x1 conv stages
        return dict(g1=1.0 + nrm((C,)), b1=nrm((C,)), w1=nrm((C, C)), c1=nrm((C,)),
                    g2=1.0 + nrm((C,)), b2=nrm((C,)), w2=nrm((C, C)), c2=nrm((C,)))

    def rconv3(C):   # RConv(filtre, feature=3): two BN->ReLU->3x3 conv stages
        return dict(g1=1.0 + nrm((C,)), b1=nrm((C,)), w1=nrm((3, 3, C, C)), c1=nrm((C,)),
                    g2=1.0 + nrm((C,)), b2=nrm((C,)), w2=nrm((3, 3, C, C)), c2=nrm((C,)))

    return dict(
        rb_1=[rconv1(C1) for _ in range(n_id)],
        ln1_g=1.0 + nrm((C1,)), ln1_b=nrm((C1,)),
        cv1_w=nrm((3, 3, C1, f_scale)), cv1_b=nrm((f_scale,)),
        rb_2=[rconv3(f_base) for _ in range(n_layer)],
        ln2_g=1.0 + nrm((f_base,)), ln2_b=nrm((f_base,)),
        cv2_w=nrm((3, 3, f_base, f_final)), cv2_b=nrm((f_final,)),
        lnf_g=1.0 + nrm((f_final,)), lnf_b=nrm((f_final,)),
        fc_w=nrm((f_final * nf, nf + 1)), fc_b=nrm((nf + 1,)),
    )


def pack_inputs(params, hp, B):
    """Pack params + constant geometry for the fused kernel (once, outside jit).
    Note: B is baked into the masks / unpool operator; repack if B changes."""
    f_base = hp['convcoder']['f_base']
    f_scale = hp['convcoder']['f_scale']
    G = hp['gf_n']
    assert G % 3 == 0, "gf_n must be divisible by 3 (MaxUnpool(3, stride=3))"
    assert f_scale == f_base, "module requires f_scale == f_base for rb_2 shapes"
    g = G // 3
    C1 = f_base * f_scale
    f_final = hp['policy']['f_final']
    nf = G * G
    R = B * nf
    r = B * g * g

    # --- every per-channel vector -> one (C1, n_slots) array (channels on sublanes)
    def col(v):
        out = np.zeros((C1,), np.float32)
        v = np.asarray(v, np.float32)
        out[:v.shape[0]] = v
        return out

    cols = []
    for blk in params['rb_1']:
        cols += [col(blk[k]) for k in ('g1', 'b1', 'c1', 'g2', 'b2', 'c2')]
    cols += [col(params['ln1_g']), col(params['ln1_b']), col(params['cv1_b'])]
    for blk in params['rb_2']:
        cols += [col(blk[k]) for k in ('g1', 'b1', 'c1', 'g2', 'b2', 'c2')]
    cols += [col(params['ln2_g']), col(params['ln2_b']), col(params['cv2_b']),
             col(params['lnf_g']), col(params['lnf_b'])]
    vecs = np.stack(cols, axis=1)                              # (C1, n_slots)

    # --- channel-mix weights, pre-transposed to (out, in), leading-axis stacked
    w1x1 = np.stack([np.asarray(w, np.float32).T
                     for blk in params['rb_1'] for w in (blk['w1'], blk['w2'])])

    def taps_oi(w, cin, cout):      # (3,3,cin,cout) -> (9, cout, cin), tap-major
        w = np.asarray(w, np.float32).reshape(9, cin, cout)
        return np.transpose(w, (0, 2, 1))

    wcv1 = taps_oi(params['cv1_w'], C1, f_scale)
    wrb2 = np.concatenate([taps_oi(w, f_base, f_base)
                           for blk in params['rb_2']
                           for w in (blk['w1'], blk['w2'])], axis=0)
    wcv2 = taps_oi(params['cv2_w'], f_base, f_final)

    # --- constant geometry: unpool scatter + conv boundary masks ---------------
    ut = np.zeros((r, R), np.float32)       # stride-3 zero-insertion upsample
    for b in range(B):
        for hh in range(g):
            for ww in range(g):
                ut[b * g * g + hh * g + ww,
                   b * nf + (3 * hh) * G + (3 * ww)] = 1.0

    masks = np.zeros((9, R), np.float32)    # tap validity for 'same' padding
    for k in range(9):
        dy, dx = k // 3 - 1, k % 3 - 1
        for b in range(B):
            for hh in range(G):
                for ww in range(G):
                    if 0 <= hh + dy < G and 0 <= ww + dx < G:
                        masks[k, b * nf + hh * G + ww] = 1.0

    return dict(
        vecs=jnp.asarray(vecs),
        w1x1=jnp.asarray(w1x1), wcv1=jnp.asarray(wcv1),
        wrb2=jnp.asarray(wrb2), wcv2=jnp.asarray(wcv2),
        ut=jnp.asarray(ut), masks=jnp.asarray(masks),
        fcw3=jnp.asarray(params['fc_w'], jnp.float32).reshape(f_final, nf, nf + 1),
        fc_b=jnp.asarray(params['fc_b'], jnp.float32).reshape(1, nf + 1),
    )


# --------------------------------- forward -----------------------------------

def policy_head_forward(x, packed, hp):
    B, T, D = x.shape
    f_base = hp['convcoder']['f_base']
    f_scale = hp['convcoder']['f_scale']
    G = hp['gf_n']
    g = G // 3
    C1 = f_base * f_scale
    f_final = hp['policy']['f_final']
    n_id = hp['policy']['n_id']
    n_layer = hp['policy']['n_layer']
    nf = G * G
    R = B * nf
    halo = G + 2                                   # covers tap offsets +/-(G+1)
    scratch_lanes = ((2 * halo + R + 127) // 128) * 128

    # Last-timestep select + NCHW -> channel-major (C1, B*g*g) in the wrapper:
    # one tiny XLA copy instead of operator matmuls / extra timestep DMAs.
    x_cm = (x[:, -1, :].reshape(B, C1, g * g)
            .transpose(1, 0, 2).reshape(C1, B * g * g))

    kernel = functools.partial(
        _policy_head_kernel, n_id=n_id, n_layer=n_layer, B=B, G=G,
        f_base=f_base, f_scale=f_scale, f_final=f_final, halo=halo)

    args = (x_cm, packed['vecs'], packed['w1x1'], packed['wcv1'], packed['wrb2'],
            packed['wcv2'], packed['ut'], packed['fcw3'], packed['fc_b'],
            packed['masks'])

    flops = int(
        n_id * 2 * 2 * C1 * C1 * (B * g * g)           # rb_1 1x1 convs
        + 2 * C1 * (B * g * g) * R                     # unpool scatter matmul
        + 9 * 2 * f_scale * C1 * R                     # cv_1
        + n_layer * 2 * 9 * 2 * f_base * f_base * R    # rb_2
        + 9 * 2 * f_final * f_base * R                 # cv_2
        + B * f_final * 2 * nf * (nf + 1))             # fc_o
    n_bn = 2 * n_id + 1 + 2 * n_layer + 2 + 1
    bytes_accessed = int(sum(int(np.prod(a.shape)) * 4 for a in args)
                         + B * (nf + 1) * 4)

    return pl.pallas_call(
        kernel,
        out_shape=jax.ShapeDtypeStruct((B, nf + 1), jnp.float32),
        in_specs=[pl.BlockSpec(memory_space=pltpu.MemorySpace.VMEM)] * len(args),
        out_specs=pl.BlockSpec(memory_space=pltpu.MemorySpace.VMEM),
        scratch_shapes=[pltpu.VMEM((C1, scratch_lanes), jnp.float32)],
        cost_estimate=pl.CostEstimate(flops=flops,
                                      transcendentals=n_bn * C1,
                                      bytes_accessed=bytes_accessed),
    )(*args)


# ------------------------ pure-jnp reference (validation) --------------------

_PREC = jax.lax.Precision.HIGHEST


def _reference_forward(x, params, hp):
    f_base = hp['convcoder']['f_base']
    f_scale = hp['convcoder']['f_scale']
    G = hp['gf_n']
    C1 = f_base * f_scale
    g = G // 3
    B = x.shape[0]

    def bn4(x4, gamma, beta):
        N, H, W, C = x4.shape
        xf = x4.reshape(N * H * W, C)
        mean = jnp.mean(xf, axis=0, keepdims=True)
        var = jnp.mean((xf - mean) ** 2, axis=0, keepdims=True)
        return ((xf - mean) * jax.lax.rsqrt(var + EPS) * gamma[None]
                + beta[None]).reshape(N, H, W, C)

    def conv1x1(x4, w, b):
        return jnp.einsum('nhwc,cd->nhwd', x4, w, precision=_PREC) + b

    def conv3x3(x4, w, b):
        N, H, W, C = x4.shape
        xp = jnp.pad(x4, ((0, 0), (1, 1), (1, 1), (0, 0)))
        out = jnp.zeros((N, H, W, w.shape[-1]), jnp.float32) + b
        for dy in range(3):
            for dx in range(3):
                out = out + jnp.einsum('nhwc,cd->nhwd',
                                       xp[:, dy:dy + H, dx:dx + W, :],
                                       w[dy, dx], precision=_PREC)
        return out

    x = x[:, -1, :].reshape(B, C1, g, g)
    x = jnp.transpose(x, (0, 2, 3, 1))

    for blk in params['rb_1']:
        h = conv1x1(jnp.maximum(bn4(x, blk['g1'], blk['b1']), 0.0), blk['w1'], blk['c1'])
        x = conv1x1(jnp.maximum(bn4(h, blk['g2'], blk['b2']), 0.0), blk['w2'], blk['c2']) + x

    x = bn4(x, params['ln1_g'], params['ln1_b'])
    up = jnp.zeros((B, g, 3, g, 3, C1), jnp.float32).at[:, :, 0, :, 0, :].set(x)
    x = conv3x3(up.reshape(B, G, G, C1), params['cv1_w'], params['cv1_b'])

    for blk in params['rb_2']:
        h = conv3x3(jnp.maximum(bn4(x, blk['g1'], blk['b1']), 0.0), blk['w1'], blk['c1'])
        x = conv3x3(jnp.maximum(bn4(h, blk['g2'], blk['b2']), 0.0), blk['w2'], blk['c2']) + x

    x = bn4(x, params['ln2_g'], params['ln2_b'])
    x = conv3x3(x, params['cv2_w'], params['cv2_b'])
    x = jnp.maximum(bn4(x, params['lnf_g'], params['lnf_b']), 0.0)
    x = jnp.transpose(x, (0, 3, 1, 2)).reshape(B, -1)
    return jnp.dot(x, params['fc_w'], precision=_PREC) + params['fc_b']


# ----------------------------------- main -------------------------------------

if __name__ == "__main__":
    hp = {
        'policy': {'n_id': 2, 'n_layer': 2, 'f_final': 2},
        'convcoder': {'f_base': 4, 'f_scale': 4},   # module requires f_scale == f_base
        'gf_n': 6,                                  # must be divisible by 3
    }
    key = jax.random.PRNGKey(0)
    pkey, xkey = jax.random.split(key)
    params = init_params(pkey, hp)

    C1 = hp['convcoder']['f_base'] * hp['convcoder']['f_scale']
    g = hp['gf_n'] // 3
    B, T = 2, 3
    x = jax.random.normal(xkey, (B, T, C1 * g * g), jnp.float32)

    packed = pack_inputs(params, hp, B)
    fwd = jax.jit(functools.partial(policy_head_forward, hp=hp))
    logits = fwd(x, packed)
    jax.block_until_ready(logits)

    assert logits.shape == (B, hp['gf_n'] ** 2 + 1), logits.shape
    assert bool(jnp.all(jnp.isfinite(logits)))

    # Validate against the pure-jnp reference (reference convs/fc run at
    # Precision.HIGHEST; 5e-2 headroom covers the kernel's default f32 MXU
    # path amplified by ~14 training-mode BatchNorm rsqrt stages).
    ref = np.asarray(_reference_forward(x, params, hp))
    out = np.asarray(logits)
    assert np.allclose(out, ref, rtol=5e-2, atol=5e-2), float(np.max(np.abs(out - ref)))

    print("KERNEL_OK")
</pallas_src>

<mosaic_0001>
module attributes {stable_mosaic.version = 11 : i64} {
  func.func @_policy_head_kernel(%arg0: memref<16x8xf32, #tpu.memory_space<vmem>>, %arg1: memref<16x32xf32, #tpu.memory_space<vmem>>, %arg2: memref<4x16x16xf32, #tpu.memory_space<vmem>>, %arg3: memref<9x4x16xf32, #tpu.memory_space<vmem>>, %arg4: memref<36x4x4xf32, #tpu.memory_space<vmem>>, %arg5: memref<9x2x4xf32, #tpu.memory_space<vmem>>, %arg6: memref<8x72xf32, #tpu.memory_space<vmem>>, %arg7: memref<2x36x37xf32, #tpu.memory_space<vmem>>, %arg8: memref<1x37xf32, #tpu.memory_space<vmem>>, %arg9: memref<9x72xf32, #tpu.memory_space<vmem>>, %arg10: memref<2x37xf32, #tpu.memory_space<vmem>>, %arg11: memref<16x128xf32, #tpu.memory_space<vmem>>) attributes {dimension_semantics = [], scalar_prefetch = 0 : i64, scratch_operands = 1 : i64, tpu.core_type = #tpu.core_type<tc>} {
    %cst = arith.constant 0.000000e+00 : f32
    %0 = vector.broadcast %cst : f32 to vector<16x128xf32>
    %c0 = arith.constant 0 : index
    %c0_0 = arith.constant 0 : index
    %1 = vector.load %arg11[%c0, %c0_0] : memref<16x128xf32, #tpu.memory_space<vmem>>, vector<16x128xf32>
    tpu.vector_store %arg11[%c0, %c0_0], %0 {strides = array<i32>} : memref<16x128xf32, #tpu.memory_space<vmem>>, vector<16x128xf32>,
    %c0_1 = arith.constant 0 : index
    %c0_2 = arith.constant 0 : index
    %2 = vector.load %arg9[%c0_1, %c0_2] : memref<9x72xf32, #tpu.memory_space<vmem>>, vector<1x72xf32>
    %c1 = arith.constant 1 : index
    %c0_3 = arith.constant 0 : index
    %3 = vector.load %arg9[%c1, %c0_3] : memref<9x72xf32, #tpu.memory_space<vmem>>, vector<1x72xf32>
    %c2 = arith.constant 2 : index
    %c0_4 = arith.constant 0 : index
    %4 = vector.load %arg9[%c2, %c0_4] : memref<9x72xf32, #tpu.memory_space<vmem>>, vector<1x72xf32>
    %c3 = arith.constant 3 : index
    %c0_5 = arith.constant 0 : index
    %5 = vector.load %arg9[%c3, %c0_5] : memref<9x72xf32, #tpu.memory_space<vmem>>, vector<1x72xf32>
    %c4 = arith.constant 4 : index
    %c0_6 = arith.constant 0 : index
    %6 = vector.load %arg9[%c4, %c0_6] : memref<9x72xf32, #tpu.memory_space<vmem>>, vector<1x72xf32>
    %c5 = arith.constant 5 : index
    %c0_7 = arith.constant 0 : index
    %7 = vector.load %arg9[%c5, %c0_7] : memref<9x72xf32, #tpu.memory_space<vmem>>, vector<1x72xf32>
    %c6 = arith.constant 6 : index
    %c0_8 = arith.constant 0 : index
    %8 = vector.load %arg9[%c6, %c0_8] : memref<9x72xf32, #tpu.memory_space<vmem>>, vector<1x72xf32>
    %c7 = arith.constant 7 : index
    %c0_9 = arith.constant 0 : index
    %9 = vector.load %arg9[%c7, %c0_9] : memref<9x72xf32, #tpu.memory_space<vmem>>, vector<1x72xf32>
    %c8 = arith.constant 8 : index
    %c0_10 = arith.constant 0 : index
    %10 = vector.load %arg9[%c8, %c0_10] : memref<9x72xf32, #tpu.memory_space<vmem>>, vector<1x72xf32>
    %c0_11 = arith.constant 0 : index
    %c0_12 = arith.constant 0 : index
    %11 = vector.load %arg0[%c0_11, %c0_12] : memref<16x8xf32, #tpu.memory_space<vmem>>, vector<16x8xf32>
    %cst_13 = arith.constant dense<0.000000e+00> : vector<16xf32>
    %12 = vector.multi_reduction <add>, %11, %cst_13 [1] : vector<16x8xf32> to vector<16xf32>
    %13 = vector.shape_cast %12 : vector<16xf32> to vector<16x1xf32>
    %14 = arith.mulf %11, %11 : vector<16x8xf32>
    %cst_14 = arith.constant dense<0.000000e+00> : vector<16xf32>
    %15 = vector.multi_reduction <add>, %14, %cst_14 [1] : vector<16x8xf32> to vector<16xf32>
    %16 = vector.shape_cast %15 : vector<16xf32> to vector<16x1xf32>
    %cst_15 = arith.constant 1.250000e-01 : f32
    %17 = vector.broadcast %cst_15 : f32 to vector<16x1xf32>
    %18 = arith.mulf %13, %17 : vector<16x1xf32>
    %cst_16 = arith.constant 1.250000e-01 : f32
    %19 = vector.broadcast %cst_16 : f32 to vector<16x1xf32>
    %20 = arith.mulf %16, %19 : vector<16x1xf32>
    %21 = arith.mulf %18, %18 : vector<16x1xf32>
    %22 = arith.subf %20, %21 : vector<16x1xf32>
    %cst_17 = arith.constant 0.000000e+00 : f32
    %23 = vector.broadcast %cst_17 : f32 to vector<16x1xf32>
    %24 = arith.maximumf %22, %23 : vector<16x1xf32>
    %c0_18 = arith.constant 0 : index
    %c0_19 = arith.constant 0 : index
    %25 = vector.load %arg1[%c0_18, %c0_19] : memref<16x32xf32, #tpu.memory_space<vmem>>, vector<16x1xf32>
    %c0_20 = arith.constant 0 : index
    %c1_21 = arith.constant 1 : index
    %26 = vector.load %arg1[%c0_20, %c1_21] : memref<16x32xf32, #tpu.memory_space<vmem>>, vector<16x1xf32>
    %27 = vector.broadcast %18 : vector<16x1xf32> to vector<16x8xf32>
    %28 = arith.subf %11, %27 : vector<16x8xf32>
    %cst_22 = arith.constant 9.99999974E-6 : f32
    %29 = vector.broadcast %cst_22 : f32 to vector<16x1xf32>
    %30 = arith.addf %24, %29 : vector<16x1xf32>
    %31 = math.rsqrt %30 : vector<16x1xf32>
    %32 = vector.broadcast %31 : vector<16x1xf32> to vector<16x8xf32>
    %33 = arith.mulf %28, %32 : vector<16x8xf32>
    %34 = vector.broadcast %25 : vector<16x1xf32> to vector<16x8xf32>
    %35 = arith.mulf %33, %34 : vector<16x8xf32>
    %36 = vector.broadcast %26 : vector<16x1xf32> to vector<16x8xf32>
    %37 = arith.addf %35, %36 : vector<16x8xf32>
    %cst_23 = arith.constant 0.000000e+00 : f32
    %38 = vector.broadcast %cst_23 : f32 to vector<16x8xf32>
    %39 = arith.maximumf %37, %38 : vector<16x8xf32>
    %c0_24 = arith.constant 0 : index
    %c0_25 = arith.constant 0 : index
    %c0_26 = arith.constant 0 : index
    %40 = vector.load %arg2[%c0_24, %c0_25, %c0_26] : memref<4x16x16xf32, #tpu.memory_space<vmem>>, vector<1x16x16xf32>
    %41 = vector.shape_cast %40 : vector<1x16x16xf32> to vector<16x16xf32>
    %cst_27 = arith.constant dense<0.000000e+00> : vector<16x8xf32>
    %42 = tpu.matmul %41, %39, %cst_27 {dimension_numbers = #tpu.dot_dimension_numbers<[1], [0], [0], [1], [0, 0, 1, 1], [], []>} : vector<16x16xf32>, vector<16x8xf32>, vector<16x8xf32> -> vector<16x8xf32>
    %c0_28 = arith.constant 0 : index
    %c2_29 = arith.constant 2 : index
    %43 = vector.load %arg1[%c0_28, %c2_29] : memref<16x32xf32, #tpu.memory_space<vmem>>, vector<16x1xf32>
    %44 = vector.broadcast %43 : vector<16x1xf32> to vector<16x8xf32>
    %45 = arith.addf %42, %44 : vector<16x8xf32>
    %cst_30 = arith.constant dense<0.000000e+00> : vector<16xf32>
    %46 = vector.multi_reduction <add>, %45, %cst_30 [1] : vector<16x8xf32> to vector<16xf32>
    %47 = vector.shape_cast %46 : vector<16xf32> to vector<16x1xf32>
    %48 = arith.mulf %45, %45 : vector<16x8xf32>
    %cst_31 = arith.constant dense<0.000000e+00> : vector<16xf32>
    %49 = vector.multi_reduction <add>, %48, %cst_31 [1] : vector<16x8xf32> to vector<16xf32>
    %50 = vector.shape_cast %49 : vector<16xf32> to vector<16x1xf32>
    %cst_32 = arith.constant 1.250000e-01 : f32
    %51 = vector.broadcast %cst_32 : f32 to vector<16x1xf32>
    %52 = arith.mulf %47, %51 : vector<16x1xf32>
    %cst_33 = arith.constant 1.250000e-01 : f32
    %53 = vector.broadcast %cst_33 : f32 to vector<16x1xf32>
    %54 = arith.mulf %50, %53 : vector<16x1xf32>
    %55 = arith.mulf %52, %52 : vector<16x1xf32>
    %56 = arith.subf %54, %55 : vector<16x1xf32>
    %cst_34 = arith.constant 0.000000e+00 : f32
    %57 = vector.broadcast %cst_34 : f32 to vector<16x1xf32>
    %58 = arith.maximumf %56, %57 : vector<16x1xf32>
    %c0_35 = arith.constant 0 : index
    %c3_36 = arith.constant 3 : index
    %59 = vector.load %arg1[%c0_35, %c3_36] : memref<16x32xf32, #tpu.memory_space<vmem>>, vector<16x1xf32>
    %c0_37 = arith.constant 0 : index
    %c4_38 = arith.constant 4 : index
    %60 = vector.load %arg1[%c0_37, %c4_38] : memref<16x32xf32, #tpu.memory_space<vmem>>, vector<16x1xf32>
    %61 = vector.broadcast %52 : vector<16x1xf32> to vector<16x8xf32>
    %62 = arith.subf %45, %61 : vector<16x8xf32>
    %cst_39 = arith.constant 9.99999974E-6 : f32
    %63 = vector.broadcast %cst_39 : f32 to vector<16x1xf32>
    %64 = arith.addf %58, %63 : vector<16x1xf32>
    %65 = math.rsqrt %64 : vector<16x1xf32>
    %66 = vector.broadcast %65 : vector<16x1xf32> to vector<16x8xf32>
    %67 = arith.mulf %62, %66 : vector<16x8xf32>
    %68 = vector.broadcast %59 : vector<16x1xf32> to vector<16x8xf32>
    %69 = arith.mulf %67, %68 : vector<16x8xf32>
    %70 = vector.broadcast %60 : vector<16x1xf32> to vector<16x8xf32>
    %71 = arith.addf %69, %70 : vector<16x8xf32>
    %cst_40 = arith.constant 0.000000e+00 : f32
    %72 = vector.broadcast %cst_40 : f32 to vector<16x8xf32>
    %73 = arith.maximumf %71, %72 : vector<16x8xf32>
    %c1_41 = arith.constant 1 : index
    %c0_42 = arith.constant 0 : index
    %c0_43 = arith.constant 0 : index
    %74 = vector.load %arg2[%c1_41, %c0_42, %c0_43] : memref<4x16x16xf32, #tpu.memory_space<vmem>>, vector<1x16x16xf32>
    %75 = vector.shape_cast %74 : vector<1x16x16xf32> to vector<16x16xf32>
    %cst_44 = arith.constant dense<0.000000e+00> : vector<16x8xf32>
    %76 = tpu.matmul %75, %73, %cst_44 {dimension_numbers = #tpu.dot_dimension_numbers<[1], [0], [0], [1], [0, 0, 1, 1], [], []>} : vector<16x16xf32>, vector<16x8xf32>, vector<16x8xf32> -> vector<16x8xf32>
    %c0_45 = arith.constant 0 : index
    %c5_46 = arith.constant 5 : index
    %77 = vector.load %arg1[%c0_45, %c5_46] : memref<16x32xf32, #tpu.memory_space<vmem>>, vector<16x1xf32>
    %78 = vector.broadcast %77 : vector<16x1xf32> to vector<16x8xf32>
    %79 = arith.addf %76, %78 : vector<16x8xf32>
    %80 = arith.addf %79, %11 : vector<16x8xf32>
    %cst_47 = arith.constant dense<0.000000e+00> : vector<16xf32>
    %81 = vector.multi_reduction <add>, %80, %cst_47 [1] : vector<16x8xf32> to vector<16xf32>
    %82 = vector.shape_cast %81 : vector<16xf32> to vector<16x1xf32>
    %83 = arith.mulf %80, %80 : vector<16x8xf32>
    %cst_48 = arith.constant dense<0.000000e+00> : vector<16xf32>
    %84 = vector.multi_reduction <add>, %83, %cst_48 [1] : vector<16x8xf32> to vector<16xf32>
    %85 = vector.shape_cast %84 : vector<16xf32> to vector<16x1xf32>
    %cst_49 = arith.constant 1.250000e-01 : f32
    %86 = vector.broadcast %cst_49 : f32 to vector<16x1xf32>
    %87 = arith.mulf %82, %86 : vector<16x1xf32>
    %cst_50 = arith.constant 1.250000e-01 : f32
    %88 = vector.broadcast %cst_50 : f32 to vector<16x1xf32>
    %89 = arith.mulf %85, %88 : vector<16x1xf32>
    %90 = arith.mulf %87, %87 : vector<16x1xf32>
    %91 = arith.subf %89, %90 : vector<16x1xf32>
    %cst_51 = arith.constant 0.000000e+00 : f32
    %92 = vector.broadcast %cst_51 : f32 to vector<16x1xf32>
    %93 = arith.maximumf %91, %92 : vector<16x1xf32>
    %c0_52 = arith.constant 0 : index
    %c6_53 = arith.constant 6 : index
    %94 = vector.load %arg1[%c0_52, %c6_53] : memref<16x32xf32, #tpu.memory_space<vmem>>, vector<16x1xf32>
    %c0_54 = arith.constant 0 : index
    %c7_55 = arith.constant 7 : index
    %95 = vector.load %arg1[%c0_54, %c7_55] : memref<16x32xf32, #tpu.memory_space<vmem>>, vector<16x1xf32>
    %96 = vector.broadcast %87 : vector<16x1xf32> to vector<16x8xf32>
    %97 = arith.subf %80, %96 : vector<16x8xf32>
    %cst_56 = arith.constant 9.99999974E-6 : f32
    %98 = vector.broadcast %cst_56 : f32 to vector<16x1xf32>
    %99 = arith.addf %93, %98 : vector<16x1xf32>
    %100 = math.rsqrt %99 : vector<16x1xf32>
    %101 = vector.broadcast %100 : vector<16x1xf32> to vector<16x8xf32>
    %102 = arith.mulf %97, %101 : vector<16x8xf32>
    %103 = vector.broadcast %94 : vector<16x1xf32> to vector<16x8xf32>
    %104 = arith.mulf %102, %103 : vector<16x8xf32>
    %105 = vector.broadcast %95 : vector<16x1xf32> to vector<16x8xf32>
    %106 = arith.addf %104, %105 : vector<16x8xf32>
    %cst_57 = arith.constant 0.000000e+00 : f32
    %107 = vector.broadcast %cst_57 : f32 to vector<16x8xf32>
    %108 = arith.maximumf %106, %107 : vector<16x8xf32>
    %c2_58 = arith.constant 2 : index
    %c0_59 = arith.constant 0 : index
    %c0_60 = arith.constant 0 : index
    %109 = vector.load %arg2[%c2_58, %c0_59, %c0_60] : memref<4x16x16xf32, #tpu.memory_space<vmem>>, vector<1x16x16xf32>
    %110 = vector.shape_cast %109 : vector<1x16x16xf32> to vector<16x16xf32>
    %cst_61 = arith.constant dense<0.000000e+00> : vector<16x8xf32>
    %111 = tpu.matmul %110, %108, %cst_61 {dimension_numbers = #tpu.dot_dimension_numbers<[1], [0], [0], [1], [0, 0, 1, 1], [], []>} : vector<16x16xf32>, vector<16x8xf32>, vector<16x8xf32> -> vector<16x8xf32>
    %c0_62 = arith.constant 0 : index
    %c8_63 = arith.constant 8 : index
    %112 = vector.load %arg1[%c0_62, %c8_63] : memref<16x32xf32, #tpu.memory_space<vmem>>, vector<16x1xf32>
    %113 = vector.broadcast %112 : vector<16x1xf32> to vector<16x8xf32>
    %114 = arith.addf %111, %113 : vector<16x8xf32>
    %cst_64 = arith.constant dense<0.000000e+00> : vector<16xf32>
    %115 = vector.multi_reduction <add>, %114, %cst_64 [1] : vector<16x8xf32> to vector<16xf32>
    %116 = vector.shape_cast %115 : vector<16xf32> to vector<16x1xf32>
    %117 = arith.mulf %114, %114 : vector<16x8xf32>
    %cst_65 = arith.constant dense<0.000000e+00> : vector<16xf32>
    %118 = vector.multi_reduction <add>, %117, %cst_65 [1] : vector<16x8xf32> to vector<16xf32>
    %119 = vector.shape_cast %118 : vector<16xf32> to vector<16x1xf32>
    %cst_66 = arith.constant 1.250000e-01 : f32
    %120 = vector.broadcast %cst_66 : f32 to vector<16x1xf32>
    %121 = arith.mulf %116, %120 : vector<16x1xf32>
    %cst_67 = arith.constant 1.250000e-01 : f32
    %122 = vector.broadcast %cst_67 : f32 to vector<16x1xf32>
    %123 = arith.mulf %119, %122 : vector<16x1xf32>
    %124 = arith.mulf %121, %121 : vector<16x1xf32>
    %125 = arith.subf %123, %124 : vector<16x1xf32>
    %cst_68 = arith.constant 0.000000e+00 : f32
    %126 = vector.broadcast %cst_68 : f32 to vector<16x1xf32>
    %127 = arith.maximumf %125, %126 : vector<16x1xf32>
    %c0_69 = arith.constant 0 : index
    %c9 = arith.constant 9 : index
    %128 = vector.load %arg1[%c0_69, %c9] : memref<16x32xf32, #tpu.memory_space<vmem>>, vector<16x1xf32>
    %c0_70 = arith.constant 0 : index
    %c10 = arith.constant 10 : index
    %129 = vector.load %arg1[%c0_70, %c10] : memref<16x32xf32, #tpu.memory_space<vmem>>, vector<16x1xf32>
    %130 = vector.broadcast %121 : vector<16x1xf32> to vector<16x8xf32>
    %131 = arith.subf %114, %130 : vector<16x8xf32>
    %cst_71 = arith.constant 9.99999974E-6 : f32
    %132 = vector.broadcast %cst_71 : f32 to vector<16x1xf32>
    %133 = arith.addf %127, %132 : vector<16x1xf32>
    %134 = math.rsqrt %133 : vector<16x1xf32>
    %135 = vector.broadcast %134 : vector<16x1xf32> to vector<16x8xf32>
    %136 = arith.mulf %131, %135 : vector<16x8xf32>
    %137 = vector.broadcast %128 : vector<16x1xf32> to vector<16x8xf32>
    %138 = arith.mulf %136, %137 : vector<16x8xf32>
    %139 = vector.broadcast %129 : vector<16x1xf32> to vector<16x8xf32>
    %140 = arith.addf %138, %139 : vector<16x8xf32>
    %cst_72 = arith.constant 0.000000e+00 : f32
    %141 = vector.broadcast %cst_72 : f32 to vector<16x8xf32>
    %142 = arith.maximumf %140, %141 : vector<16x8xf32>
    %c3_73 = arith.constant 3 : index
    %c0_74 = arith.constant 0 : index
    %c0_75 = arith.constant 0 : index
    %143 = vector.load %arg2[%c3_73, %c0_74, %c0_75] : memref<4x16x16xf32, #tpu.memory_space<vmem>>, vector<1x16x16xf32>
    %144 = vector.shape_cast %143 : vector<1x16x16xf32> to vector<16x16xf32>
    %cst_76 = arith.constant dense<0.000000e+00> : vector<16x8xf32>
    %145 = tpu.matmul %144, %142, %cst_76 {dimension_numbers = #tpu.dot_dimension_numbers<[1], [0], [0], [1], [0, 0, 1, 1], [], []>} : vector<16x16xf32>, vector<16x8xf32>, vector<16x8xf32> -> vector<16x8xf32>
    %c0_77 = arith.constant 0 : index
    %c11 = arith.constant 11 : index
    %146 = vector.load %arg1[%c0_77, %c11] : memref<16x32xf32, #tpu.memory_space<vmem>>, vector<16x1xf32>
    %147 = vector.broadcast %146 : vector<16x1xf32> to vector<16x8xf32>
    %148 = arith.addf %145, %147 : vector<16x8xf32>
    %149 = arith.addf %148, %80 : vector<16x8xf32>
    %cst_78 = arith.constant dense<0.000000e+00> : vector<16xf32>
    %150 = vector.multi_reduction <add>, %149, %cst_78 [1] : vector<16x8xf32> to vector<16xf32>
    %151 = vector.shape_cast %150 : vector<16xf32> to vector<16x1xf32>
    %152 = arith.mulf %149, %149 : vector<16x8xf32>
    %cst_79 = arith.constant dense<0.000000e+00> : vector<16xf32>
    %153 = vector.multi_reduction <add>, %152, %cst_79 [1] : vector<16x8xf32> to vector<16xf32>
    %154 = vector.shape_cast %153 : vector<16xf32> to vector<16x1xf32>
    %cst_80 = arith.constant 1.250000e-01 : f32
    %155 = vector.broadcast %cst_80 : f32 to vector<16x1xf32>
    %156 = arith.mulf %151, %155 : vector<16x1xf32>
    %cst_81 = arith.constant 1.250000e-01 : f32
    %157 = vector.broadcast %cst_81 : f32 to vector<16x1xf32>
    %158 = arith.mulf %154, %157 : vector<16x1xf32>
    %159 = arith.mulf %156, %156 : vector<16x1xf32>
    %160 = arith.subf %158, %159 : vector<16x1xf32>
    %cst_82 = arith.constant 0.000000e+00 : f32
    %161 = vector.broadcast %cst_82 : f32 to vector<16x1xf32>
    %162 = arith.maximumf %160, %161 : vector<16x1xf32>
    %c0_83 = arith.constant 0 : index
    %c12 = arith.constant 12 : index
    %163 = vector.load %arg1[%c0_83, %c12] : memref<16x32xf32, #tpu.memory_space<vmem>>, vector<16x1xf32>
    %c0_84 = arith.constant 0 : index
    %c13 = arith.constant 13 : index
    %164 = vector.load %arg1[%c0_84, %c13] : memref<16x32xf32, #tpu.memory_space<vmem>>, vector<16x1xf32>
    %165 = vector.broadcast %156 : vector<16x1xf32> to vector<16x8xf32>
    %166 = arith.subf %149, %165 : vector<16x8xf32>
    %cst_85 = arith.constant 9.99999974E-6 : f32
    %167 = vector.broadcast %cst_85 : f32 to vector<16x1xf32>
    %168 = arith.addf %162, %167 : vector<16x1xf32>
    %169 = math.rsqrt %168 : vector<16x1xf32>
    %170 = vector.broadcast %169 : vector<16x1xf32> to vector<16x8xf32>
    %171 = arith.mulf %166, %170 : vector<16x8xf32>
    %172 = vector.broadcast %163 : vector<16x1xf32> to vector<16x8xf32>
    %173 = arith.mulf %171, %172 : vector<16x8xf32>
    %174 = vector.broadcast %164 : vector<16x1xf32> to vector<16x8xf32>
    %175 = arith.addf %173, %174 : vector<16x8xf32>
    %c0_86 = arith.constant 0 : index
    %c0_87 = arith.constant 0 : index
    %176 = vector.load %arg6[%c0_86, %c0_87] : memref<8x72xf32, #tpu.memory_space<vmem>>, vector<8x72xf32>
    %cst_88 = arith.constant dense<0.000000e+00> : vector<16x72xf32>
    %177 = tpu.matmul %175, %176, %cst_88 {dimension_numbers = #tpu.dot_dimension_numbers<[1], [0], [0], [1], [0, 0, 1, 1], [], []>} : vector<16x8xf32>, vector<8x72xf32>, vector<16x72xf32> -> vector<16x72xf32>
    %c0_89 = arith.constant 0 : index
    %c8_90 = arith.constant 8 : index
    %178 = vector.load %arg11[%c0_89, %c8_90] : memref<16x128xf32, #tpu.memory_space<vmem>>, vector<16x72xf32>
    tpu.vector_store %arg11[%c0_89, %c8_90], %177 {strides = array<i32>} : memref<16x128xf32, #tpu.memory_space<vmem>>, vector<16x72xf32>,
    %c0_91 = arith.constant 0 : index
    %c1_92 = arith.constant 1 : index
    %179 = vector.load %arg11[%c0_91, %c1_92] : memref<16x128xf32, #tpu.memory_space<vmem>>, vector<16x72xf32>
    %180 = vector.broadcast %2 : vector<1x72xf32> to vector<16x72xf32>
    %181 = arith.mulf %179, %180 : vector<16x72xf32>
    %c0_93 = arith.constant 0 : index
    %c0_94 = arith.constant 0 : index
    %c0_95 = arith.constant 0 : index
    %182 = vector.load %arg3[%c0_93, %c0_94, %c0_95] : memref<9x4x16xf32, #tpu.memory_space<vmem>>, vector<1x4x16xf32>
    %183 = vector.shape_cast %182 : vector<1x4x16xf32> to vector<4x16xf32>
    %cst_96 = arith.constant dense<0.000000e+00> : vector<4x72xf32>
    %184 = tpu.matmul %183, %181, %cst_96 {dimension_numbers = #tpu.dot_dimension_numbers<[1], [0], [0], [1], [0, 0, 1, 1], [], []>} : vector<4x16xf32>, vector<16x72xf32>, vector<4x72xf32> -> vector<4x72xf32>
    %c0_97 = arith.constant 0 : index
    %c2_98 = arith.constant 2 : index
    %185 = vector.load %arg11[%c0_97, %c2_98] : memref<16x128xf32, #tpu.memory_space<vmem>>, vector<16x72xf32>
    %186 = vector.broadcast %3 : vector<1x72xf32> to vector<16x72xf32>
    %187 = arith.mulf %185, %186 : vector<16x72xf32>
    %c1_99 = arith.constant 1 : index
    %c0_100 = arith.constant 0 : index
    %c0_101 = arith.constant 0 : index
    %188 = vector.load %arg3[%c1_99, %c0_100, %c0_101] : memref<9x4x16xf32, #tpu.memory_space<vmem>>, vector<1x4x16xf32>
    %189 = vector.shape_cast %188 : vector<1x4x16xf32> to vector<4x16xf32>
    %cst_102 = arith.constant dense<0.000000e+00> : vector<4x72xf32>
    %190 = tpu.matmul %189, %187, %cst_102 {dimension_numbers = #tpu.dot_dimension_numbers<[1], [0], [0], [1], [0, 0, 1, 1], [], []>} : vector<4x16xf32>, vector<16x72xf32>, vector<4x72xf32> -> vector<4x72xf32>
    %c0_103 = arith.constant 0 : index
    %c3_104 = arith.constant 3 : index
    %191 = vector.load %arg11[%c0_103, %c3_104] : memref<16x128xf32, #tpu.memory_space<vmem>>, vector<16x72xf32>
    %192 = vector.broadcast %4 : vector<1x72xf32> to vector<16x72xf32>
    %193 = arith.mulf %191, %192 : vector<16x72xf32>
    %c2_105 = arith.constant 2 : index
    %c0_106 = arith.constant 0 : index
    %c0_107 = arith.constant 0 : index
    %194 = vector.load %arg3[%c2_105, %c0_106, %c0_107] : memref<9x4x16xf32, #tpu.memory_space<vmem>>, vector<1x4x16xf32>
    %195 = vector.shape_cast %194 : vector<1x4x16xf32> to vector<4x16xf32>
    %cst_108 = arith.constant dense<0.000000e+00> : vector<4x72xf32>
    %196 = tpu.matmul %195, %193, %cst_108 {dimension_numbers = #tpu.dot_dimension_numbers<[1], [0], [0], [1], [0, 0, 1, 1], [], []>} : vector<4x16xf32>, vector<16x72xf32>, vector<4x72xf32> -> vector<4x72xf32>
    %c0_109 = arith.constant 0 : index
    %c7_110 = arith.constant 7 : index
    %197 = vector.load %arg11[%c0_109, %c7_110] : memref<16x128xf32, #tpu.memory_space<vmem>>, vector<16x72xf32>
    %198 = vector.broadcast %5 : vector<1x72xf32> to vector<16x72xf32>
    %199 = arith.mulf %197, %198 : vector<16x72xf32>
    %c3_111 = arith.constant 3 : index
    %c0_112 = arith.constant 0 : index
    %c0_113 = arith.constant 0 : index
    %200 = vector.load %arg3[%c3_111, %c0_112, %c0_113] : memref<9x4x16xf32, #tpu.memory_space<vmem>>, vector<1x4x16xf32>
    %201 = vector.shape_cast %200 : vector<1x4x16xf32> to vector<4x16xf32>
    %cst_114 = arith.constant dense<0.000000e+00> : vector<4x72xf32>
    %202 = tpu.matmul %201, %199, %cst_114 {dimension_numbers = #tpu.dot_dimension_numbers<[1], [0], [0], [1], [0, 0, 1, 1], [], []>} : vector<4x16xf32>, vector<16x72xf32>, vector<4x72xf32> -> vector<4x72xf32>
    %203 = arith.addf %184, %202 : vector<4x72xf32>
    %c0_115 = arith.constant 0 : index
    %c8_116 = arith.constant 8 : index
    %204 = vector.load %arg11[%c0_115, %c8_116] : memref<16x128xf32, #tpu.memory_space<vmem>>, vector<16x72xf32>
    %205 = vector.broadcast %6 : vector<1x72xf32> to vector<16x72xf32>
    %206 = arith.mulf %204, %205 : vector<16x72xf32>
    %c4_117 = arith.constant 4 : index
    %c0_118 = arith.constant 0 : index
    %c0_119 = arith.constant 0 : index
    %207 = vector.load %arg3[%c4_117, %c0_118, %c0_119] : memref<9x4x16xf32, #tpu.memory_space<vmem>>, vector<1x4x16xf32>
    %208 = vector.shape_cast %207 : vector<1x4x16xf32> to vector<4x16xf32>
    %cst_120 = arith.constant dense<0.000000e+00> : vector<4x72xf32>
    %209 = tpu.matmul %208, %206, %cst_120 {dimension_numbers = #tpu.dot_dimension_numbers<[1], [0], [0], [1], [0, 0, 1, 1], [], []>} : vector<4x16xf32>, vector<16x72xf32>, vector<4x72xf32> -> vector<4x72xf32>
    %210 = arith.addf %190, %209 : vector<4x72xf32>
    %c0_121 = arith.constant 0 : index
    %c9_122 = arith.constant 9 : index
    %211 = vector.load %arg11[%c0_121, %c9_122] : memref<16x128xf32, #tpu.memory_space<vmem>>, vector<16x72xf32>
    %212 = vector.broadcast %7 : vector<1x72xf32> to vector<16x72xf32>
    %213 = arith.mulf %211, %212 : vector<16x72xf32>
    %c5_123 = arith.constant 5 : index
    %c0_124 = arith.constant 0 : index
    %c0_125 = arith.constant 0 : index
    %214 = vector.load %arg3[%c5_123, %c0_124, %c0_125] : memref<9x4x16xf32, #tpu.memory_space<vmem>>, vector<1x4x16xf32>
    %215 = vector.shape_cast %214 : vector<1x4x16xf32> to vector<4x16xf32>
    %cst_126 = arith.constant dense<0.000000e+00> : vector<4x72xf32>
    %216 = tpu.matmul %215, %213, %cst_126 {dimension_numbers = #tpu.dot_dimension_numbers<[1], [0], [0], [1], [0, 0, 1, 1], [], []>} : vector<4x16xf32>, vector<16x72xf32>, vector<4x72xf32> -> vector<4x72xf32>
    %217 = arith.addf %196, %216 : vector<4x72xf32>
    %c0_127 = arith.constant 0 : index
    %c13_128 = arith.constant 13 : index
    %218 = vector.load %arg11[%c0_127, %c13_128] : memref<16x128xf32, #tpu.memory_space<vmem>>, vector<16x72xf32>
    %219 = vector.broadcast %8 : vector<1x72xf32> to vector<16x72xf32>
    %220 = arith.mulf %218, %219 : vector<16x72xf32>
    %c6_129 = arith.constant 6 : index
    %c0_130 = arith.constant 0 : index
    %c0_131 = arith.constant 0 : index
    %221 = vector.load %arg3[%c6_129, %c0_130, %c0_131] : memref<9x4x16xf32, #tpu.memory_space<vmem>>, vector<1x4x16xf32>
    %222 = vector.shape_cast %221 : vector<1x4x16xf32> to vector<4x16xf32>
    %cst_132 = arith.constant dense<0.000000e+00> : vector<4x72xf32>
    %223 = tpu.matmul %222, %220, %cst_132 {dimension_numbers = #tpu.dot_dimension_numbers<[1], [0], [0], [1], [0, 0, 1, 1], [], []>} : vector<4x16xf32>, vector<16x72xf32>, vector<4x72xf32> -> vector<4x72xf32>
    %224 = arith.addf %203, %223 : vector<4x72xf32>
    %c0_133 = arith.constant 0 : index
    %c14 = arith.constant 14 : index
    %225 = vector.load %arg11[%c0_133, %c14] : memref<16x128xf32, #tpu.memory_space<vmem>>, vector<16x72xf32>
    %226 = vector.broadcast %9 : vector<1x72xf32> to vector<16x72xf32>
    %227 = arith.mulf %225, %226 : vector<16x72xf32>
    %c7_134 = arith.constant 7 : index
    %c0_135 = arith.constant 0 : index
    %c0_136 = arith.constant 0 : index
    %228 = vector.load %arg3[%c7_134, %c0_135, %c0_136] : memref<9x4x16xf32, #tpu.memory_space<vmem>>, vector<1x4x16xf32>
    %229 = vector.shape_cast %228 : vector<1x4x16xf32> to vector<4x16xf32>
    %cst_137 = arith.constant dense<0.000000e+00> : vector<4x72xf32>
    %230 = tpu.matmul %229, %227, %cst_137 {dimension_numbers = #tpu.dot_dimension_numbers<[1], [0], [0], [1], [0, 0, 1, 1], [], []>} : vector<4x16xf32>, vector<16x72xf32>, vector<4x72xf32> -> vector<4x72xf32>
    %231 = arith.addf %210, %230 : vector<4x72xf32>
    %c0_138 = arith.constant 0 : index
    %c15 = arith.constant 15 : index
    %232 = vector.load %arg11[%c0_138, %c15] : memref<16x128xf32, #tpu.memory_space<vmem>>, vector<16x72xf32>
    %233 = vector.broadcast %10 : vector<1x72xf32> to vector<16x72xf32>
    %234 = arith.mulf %232, %233 : vector<16x72xf32>
    %c8_139 = arith.constant 8 : index
    %c0_140 = arith.constant 0 : index
    %c0_141 = arith.constant 0 : index
    %235 = vector.load %arg3[%c8_139, %c0_140, %c0_141] : memref<9x4x16xf32, #tpu.memory_space<vmem>>, vector<1x4x16xf32>
    %236 = vector.shape_cast %235 : vector<1x4x16xf32> to vector<4x16xf32>
    %cst_142 = arith.constant dense<0.000000e+00> : vector<4x72xf32>
    %237 = tpu.matmul %236, %234, %cst_142 {dimension_numbers = #tpu.dot_dimension_numbers<[1], [0], [0], [1], [0, 0, 1, 1], [], []>} : vector<4x16xf32>, vector<16x72xf32>, vector<4x72xf32> -> vector<4x72xf32>
    %238 = arith.addf %217, %237 : vector<4x72xf32>
    %c0_143 = arith.constant 0 : index
    %c14_144 = arith.constant 14 : index
    %239 = vector.load %arg1[%c0_143, %c14_144] : memref<16x32xf32, #tpu.memory_space<vmem>>, vector<4x1xf32>
    %240 = arith.addf %224, %231 : vector<4x72xf32>
    %241 = arith.addf %240, %238 : vector<4x72xf32>
    %242 = vector.broadcast %239 : vector<4x1xf32> to vector<4x72xf32>
    %243 = arith.addf %241, %242 : vector<4x72xf32>
    %cst_145 = arith.constant dense<0.000000e+00> : vector<4xf32>
    %244 = vector.multi_reduction <add>, %243, %cst_145 [1] : vector<4x72xf32> to vector<4xf32>
    %245 = vector.shape_cast %244 : vector<4xf32> to vector<4x1xf32>
    %246 = arith.mulf %243, %243 : vector<4x72xf32>
    %cst_146 = arith.constant dense<0.000000e+00> : vector<4xf32>
    %247 = vector.multi_reduction <add>, %246, %cst_146 [1] : vector<4x72xf32> to vector<4xf32>
    %248 = vector.shape_cast %247 : vector<4xf32> to vector<4x1xf32>
    %cst_147 = arith.constant 0.013888889 : f32
    %249 = vector.broadcast %cst_147 : f32 to vector<4x1xf32>
    %250 = arith.mulf %245, %249 : vector<4x1xf32>
    %cst_148 = arith.constant 0.013888889 : f32
    %251 = vector.broadcast %cst_148 : f32 to vector<4x1xf32>
    %252 = arith.mulf %248, %251 : vector<4x1xf32>
    %253 = arith.mulf %250, %250 : vector<4x1xf32>
    %254 = arith.subf %252, %253 : vector<4x1xf32>
    %cst_149 = arith.constant 0.000000e+00 : f32
    %255 = vector.broadcast %cst_149 : f32 to vector<4x1xf32>
    %256 = arith.maximumf %254, %255 : vector<4x1xf32>
    %c0_150 = arith.constant 0 : index
    %c15_151 = arith.constant 15 : index
    %257 = vector.load %arg1[%c0_150, %c15_151] : memref<16x32xf32, #tpu.memory_space<vmem>>, vector<4x1xf32>
    %c0_152 = arith.constant 0 : index
    %c16 = arith.constant 16 : index
    %258 = vector.load %arg1[%c0_152, %c16] : memref<16x32xf32, #tpu.memory_space<vmem>>, vector<4x1xf32>
    %259 = vector.broadcast %250 : vector<4x1xf32> to vector<4x72xf32>
    %260 = arith.subf %243, %259 : vector<4x72xf32>
    %cst_153 = arith.constant 9.99999974E-6 : f32
    %261 = vector.broadcast %cst_153 : f32 to vector<4x1xf32>
    %262 = arith.addf %256, %261 : vector<4x1xf32>
    %263 = math.rsqrt %262 : vector<4x1xf32>
    %264 = vector.broadcast %263 : vector<4x1xf32> to vector<4x72xf32>
    %265 = arith.mulf %260, %264 : vector<4x72xf32>
    %266 = vector.broadcast %257 : vector<4x1xf32> to vector<4x72xf32>
    %267 = arith.mulf %265, %266 : vector<4x72xf32>
    %268 = vector.broadcast %258 : vector<4x1xf32> to vector<4x72xf32>
    %269 = arith.addf %267, %268 : vector<4x72xf32>
    %cst_154 = arith.constant 0.000000e+00 : f32
    %270 = vector.broadcast %cst_154 : f32 to vector<4x72xf32>
    %271 = arith.maximumf %269, %270 : vector<4x72xf32>
    %c0_155 = arith.constant 0 : index
    %c8_156 = arith.constant 8 : index
    %272 = vector.load %arg11[%c0_155, %c8_156] : memref<16x128xf32, #tpu.memory_space<vmem>>, vector<4x72xf32>
    tpu.vector_store %arg11[%c0_155, %c8_156], %271 {strides = array<i32>} : memref<16x128xf32, #tpu.memory_space<vmem>>, vector<4x72xf32>,
    %c0_157 = arith.constant 0 : index
    %c1_158 = arith.constant 1 : index
    %273 = vector.load %arg11[%c0_157, %c1_158] : memref<16x128xf32, #tpu.memory_space<vmem>>, vector<4x72xf32>
    %274 = vector.broadcast %2 : vector<1x72xf32> to vector<4x72xf32>
    %275 = arith.mulf %273, %274 : vector<4x72xf32>
    %c0_159 = arith.constant 0 : index
    %c0_160 = arith.constant 0 : index
    %c0_161 = arith.constant 0 : index
    %276 = vector.load %arg4[%c0_159, %c0_160, %c0_161] : memref<36x4x4xf32, #tpu.memory_space<vmem>>, vector<1x4x4xf32>
    %277 = vector.shape_cast %276 : vector<1x4x4xf32> to vector<4x4xf32>
    %cst_162 = arith.constant dense<0.000000e+00> : vector<4x72xf32>
    %278 = tpu.matmul %277, %275, %cst_162 {dimension_numbers = #tpu.dot_dimension_numbers<[1], [0], [0], [1], [0, 0, 1, 1], [], []>} : vector<4x4xf32>, vector<4x72xf32>, vector<4x72xf32> -> vector<4x72xf32>
    %c0_163 = arith.constant 0 : index
    %c2_164 = arith.constant 2 : index
    %279 = vector.load %arg11[%c0_163, %c2_164] : memref<16x128xf32, #tpu.memory_space<vmem>>, vector<4x72xf32>
    %280 = vector.broadcast %3 : vector<1x72xf32> to vector<4x72xf32>
    %281 = arith.mulf %279, %280 : vector<4x72xf32>
    %c1_165 = arith.constant 1 : index
    %c0_166 = arith.constant 0 : index
    %c0_167 = arith.constant 0 : index
    %282 = vector.load %arg4[%c1_165, %c0_166, %c0_167] : memref<36x4x4xf32, #tpu.memory_space<vmem>>, vector<1x4x4xf32>
    %283 = vector.shape_cast %282 : vector<1x4x4xf32> to vector<4x4xf32>
    %cst_168 = arith.constant dense<0.000000e+00> : vector<4x72xf32>
    %284 = tpu.matmul %283, %281, %cst_168 {dimension_numbers = #tpu.dot_dimension_numbers<[1], [0], [0], [1], [0, 0, 1, 1], [], []>} : vector<4x4xf32>, vector<4x72xf32>, vector<4x72xf32> -> vector<4x72xf32>
    %c0_169 = arith.constant 0 : index
    %c3_170 = arith.constant 3 : index
    %285 = vector.load %arg11[%c0_169, %c3_170] : memref<16x128xf32, #tpu.memory_space<vmem>>, vector<4x72xf32>
    %286 = vector.broadcast %4 : vector<1x72xf32> to vector<4x72xf32>
    %287 = arith.mulf %285, %286 : vector<4x72xf32>
    %c2_171 = arith.constant 2 : index
    %c0_172 = arith.constant 0 : index
    %c0_173 = arith.constant 0 : index
    %288 = vector.load %arg4[%c2_171, %c0_172, %c0_173] : memref<36x4x4xf32, #tpu.memory_space<vmem>>, vector<1x4x4xf32>
    %289 = vector.shape_cast %288 : vector<1x4x4xf32> to vector<4x4xf32>
    %cst_174 = arith.constant dense<0.000000e+00> : vector<4x72xf32>
    %290 = tpu.matmul %289, %287, %cst_174 {dimension_numbers = #tpu.dot_dimension_numbers<[1], [0], [0], [1], [0, 0, 1, 1], [], []>} : vector<4x4xf32>, vector<4x72xf32>, vector<4x72xf32> -> vector<4x72xf32>
    %c0_175 = arith.constant 0 : index
    %c7_176 = arith.constant 7 : index
    %291 = vector.load %arg11[%c0_175, %c7_176] : memref<16x128xf32, #tpu.memory_space<vmem>>, vector<4x72xf32>
    %292 = vector.broadcast %5 : vector<1x72xf32> to vector<4x72xf32>
    %293 = arith.mulf %291, %292 : vector<4x72xf32>
    %c3_177 = arith.constant 3 : index
    %c0_178 = arith.constant 0 : index
    %c0_179 = arith.constant 0 : index
    %294 = vector.load %arg4[%c3_177, %c0_178, %c0_179] : memref<36x4x4xf32, #tpu.memory_space<vmem>>, vector<1x4x4xf32>
    %295 = vector.shape_cast %294 : vector<1x4x4xf32> to vector<4x4xf32>
    %cst_180 = arith.constant dense<0.000000e+00> : vector<4x72xf32>
    %296 = tpu.matmul %295, %293, %cst_180 {dimension_numbers = #tpu.dot_dimension_numbers<[1], [0], [0], [1], [0, 0, 1, 1], [], []>} : vector<4x4xf32>, vector<4x72xf32>, vector<4x72xf32> -> vector<4x72xf32>
    %297 = arith.addf %278, %296 : vector<4x72xf32>
    %c0_181 = arith.constant 0 : index
    %c8_182 = arith.constant 8 : index
    %298 = vector.load %arg11[%c0_181, %c8_182] : memref<16x128xf32, #tpu.memory_space<vmem>>, vector<4x72xf32>
    %299 = vector.broadcast %6 : vector<1x72xf32> to vector<4x72xf32>
    %300 = arith.mulf %298, %299 : vector<4x72xf32>
    %c4_183 = arith.constant 4 : index
    %c0_184 = arith.constant 0 : index
    %c0_185 = arith.constant 0 : index
    %301 = vector.load %arg4[%c4_183, %c0_184, %c0_185] : memref<36x4x4xf32, #tpu.memory_space<vmem>>, vector<1x4x4xf32>
    %302 = vector.shape_cast %301 : vector<1x4x4xf32> to vector<4x4xf32>
    %cst_186 = arith.constant dense<0.000000e+00> : vector<4x72xf32>
    %303 = tpu.matmul %302, %300, %cst_186 {dimension_numbers = #tpu.dot_dimension_numbers<[1], [0], [0], [1], [0, 0, 1, 1], [], []>} : vector<4x4xf32>, vector<4x72xf32>, vector<4x72xf32> -> vector<4x72xf32>
    %304 = arith.addf %284, %303 : vector<4x72xf32>
    %c0_187 = arith.constant 0 : index
    %c9_188 = arith.constant 9 : index
    %305 = vector.load %arg11[%c0_187, %c9_188] : memref<16x128xf32, #tpu.memory_space<vmem>>, vector<4x72xf32>
    %306 = vector.broadcast %7 : vector<1x72xf32> to vector<4x72xf32>
    %307 = arith.mulf %305, %306 : vector<4x72xf32>
    %c5_189 = arith.constant 5 : index
    %c0_190 = arith.constant 0 : index
    %c0_191 = arith.constant 0 : index
    %308 = vector.load %arg4[%c5_189, %c0_190, %c0_191] : memref<36x4x4xf32, #tpu.memory_space<vmem>>, vector<1x4x4xf32>
    %309 = vector.shape_cast %308 : vector<1x4x4xf32> to vector<4x4xf32>
    %cst_192 = arith.constant dense<0.000000e+00> : vector<4x72xf32>
    %310 = tpu.matmul %309, %307, %cst_192 {dimension_numbers = #tpu.dot_dimension_numbers<[1], [0], [0], [1], [0, 0, 1, 1], [], []>} : vector<4x4xf32>, vector<4x72xf32>, vector<4x72xf32> -> vector<4x72xf32>
    %311 = arith.addf %290, %310 : vector<4x72xf32>
    %c0_193 = arith.constant 0 : index
    %c13_194 = arith.constant 13 : index
    %312 = vector.load %arg11[%c0_193, %c13_194] : memref<16x128xf32, #tpu.memory_space<vmem>>, vector<4x72xf32>
    %313 = vector.broadcast %8 : vector<1x72xf32> to vector<4x72xf32>
    %314 = arith.mulf %312, %313 : vector<4x72xf32>
    %c6_195 = arith.constant 6 : index
    %c0_196 = arith.constant 0 : index
    %c0_197 = arith.constant 0 : index
    %315 = vector.load %arg4[%c6_195, %c0_196, %c0_197] : memref<36x4x4xf32, #tpu.memory_space<vmem>>, vector<1x4x4xf32>
    %316 = vector.shape_cast %315 : vector<1x4x4xf32> to vector<4x4xf32>
    %cst_198 = arith.constant dense<0.000000e+00> : vector<4x72xf32>
    %317 = tpu.matmul %316, %314, %cst_198 {dimension_numbers = #tpu.dot_dimension_numbers<[1], [0], [0], [1], [0, 0, 1, 1], [], []>} : vector<4x4xf32>, vector<4x72xf32>, vector<4x72xf32> -> vector<4x72xf32>
    %318 = arith.addf %297, %317 : vector<4x72xf32>
    %c0_199 = arith.constant 0 : index
    %c14_200 = arith.constant 14 : index
    %319 = vector.load %arg11[%c0_199, %c14_200] : memref<16x128xf32, #tpu.memory_space<vmem>>, vector<4x72xf32>
    %320 = vector.broadcast %9 : vector<1x72xf32> to vector<4x72xf32>
    %321 = arith.mulf %319, %320 : vector<4x72xf32>
    %c7_201 = arith.constant 7 : index
    %c0_202 = arith.constant 0 : index
    %c0_203 = arith.constant 0 : index
    %322 = vector.load %arg4[%c7_201, %c0_202, %c0_203] : memref<36x4x4xf32, #tpu.memory_space<vmem>>, vector<1x4x4xf32>
    %323 = vector.shape_cast %322 : vector<1x4x4xf32> to vector<4x4xf32>
    %cst_204 = arith.constant dense<0.000000e+00> : vector<4x72xf32>
    %324 = tpu.matmul %323, %321, %cst_204 {dimension_numbers = #tpu.dot_dimension_numbers<[1], [0], [0], [1], [0, 0, 1, 1], [], []>} : vector<4x4xf32>, vector<4x72xf32>, vector<4x72xf32> -> vector<4x72xf32>
    %325 = arith.addf %304, %324 : vector<4x72xf32>
    %c0_205 = arith.constant 0 : index
    %c15_206 = arith.constant 15 : index
    %326 = vector.load %arg11[%c0_205, %c15_206] : memref<16x128xf32, #tpu.memory_space<vmem>>, vector<4x72xf32>
    %327 = vector.broadcast %10 : vector<1x72xf32> to vector<4x72xf32>
    %328 = arith.mulf %326, %327 : vector<4x72xf32>
    %c8_207 = arith.constant 8 : index
    %c0_208 = arith.constant 0 : index
    %c0_209 = arith.constant 0 : index
    %329 = vector.load %arg4[%c8_207, %c0_208, %c0_209] : memref<36x4x4xf32, #tpu.memory_space<vmem>>, vector<1x4x4xf32>
    %330 = vector.shape_cast %329 : vector<1x4x4xf32> to vector<4x4xf32>
    %cst_210 = arith.constant dense<0.000000e+00> : vector<4x72xf32>
    %331 = tpu.matmul %330, %328, %cst_210 {dimension_numbers = #tpu.dot_dimension_numbers<[1], [0], [0], [1], [0, 0, 1, 1], [], []>} : vector<4x4xf32>, vector<4x72xf32>, vector<4x72xf32> -> vector<4x72xf32>
    %332 = arith.addf %311, %331 : vector<4x72xf32>
    %c0_211 = arith.constant 0 : index
    %c17 = arith.constant 17 : index
    %333 = vector.load %arg1[%c0_211, %c17] : memref<16x32xf32, #tpu.memory_space<vmem>>, vector<4x1xf32>
    %334 = arith.addf %318, %325 : vector<4x72xf32>
    %335 = arith.addf %334, %332 : vector<4x72xf32>
    %336 = vector.broadcast %333 : vector<4x1xf32> to vector<4x72xf32>
    %337 = arith.addf %335, %336 : vector<4x72xf32>
    %cst_212 = arith.constant dense<0.000000e+00> : vector<4xf32>
    %338 = vector.multi_reduction <add>, %337, %cst_212 [1] : vector<4x72xf32> to vector<4xf32>
    %339 = vector.shape_cast %338 : vector<4xf32> to vector<4x1xf32>
    %340 = arith.mulf %337, %337 : vector<4x72xf32>
    %cst_213 = arith.constant dense<0.000000e+00> : vector<4xf32>
    %341 = vector.multi_reduction <add>, %340, %cst_213 [1] : vector<4x72xf32> to vector<4xf32>
    %342 = vector.shape_cast %341 : vector<4xf32> to vector<4x1xf32>
    %cst_214 = arith.constant 0.013888889 : f32
    %343 = vector.broadcast %cst_214 : f32 to vector<4x1xf32>
    %344 = arith.mulf %339, %343 : vector<4x1xf32>
    %cst_215 = arith.constant 0.013888889 : f32
    %345 = vector.broadcast %cst_215 : f32 to vector<4x1xf32>
    %346 = arith.mulf %342, %345 : vector<4x1xf32>
    %347 = arith.mulf %344, %344 : vector<4x1xf32>
    %348 = arith.subf %346, %347 : vector<4x1xf32>
    %cst_216 = arith.constant 0.000000e+00 : f32
    %349 = vector.broadcast %cst_216 : f32 to vector<4x1xf32>
    %350 = arith.maximumf %348, %349 : vector<4x1xf32>
    %c0_217 = arith.constant 0 : index
    %c18 = arith.constant 18 : index
    %351 = vector.load %arg1[%c0_217, %c18] : memref<16x32xf32, #tpu.memory_space<vmem>>, vector<4x1xf32>
    %c0_218 = arith.constant 0 : index
    %c19 = arith.constant 19 : index
    %352 = vector.load %arg1[%c0_218, %c19] : memref<16x32xf32, #tpu.memory_space<vmem>>, vector<4x1xf32>
    %353 = vector.broadcast %344 : vector<4x1xf32> to vector<4x72xf32>
    %354 = arith.subf %337, %353 : vector<4x72xf32>
    %cst_219 = arith.constant 9.99999974E-6 : f32
    %355 = vector.broadcast %cst_219 : f32 to vector<4x1xf32>
    %356 = arith.addf %350, %355 : vector<4x1xf32>
    %357 = math.rsqrt %356 : vector<4x1xf32>
    %358 = vector.broadcast %357 : vector<4x1xf32> to vector<4x72xf32>
    %359 = arith.mulf %354, %358 : vector<4x72xf32>
    %360 = vector.broadcast %351 : vector<4x1xf32> to vector<4x72xf32>
    %361 = arith.mulf %359, %360 : vector<4x72xf32>
    %362 = vector.broadcast %352 : vector<4x1xf32> to vector<4x72xf32>
    %363 = arith.addf %361, %362 : vector<4x72xf32>
    %cst_220 = arith.constant 0.000000e+00 : f32
    %364 = vector.broadcast %cst_220 : f32 to vector<4x72xf32>
    %365 = arith.maximumf %363, %364 : vector<4x72xf32>
    %c0_221 = arith.constant 0 : index
    %c8_222 = arith.constant 8 : index
    %366 = vector.load %arg11[%c0_221, %c8_222] : memref<16x128xf32, #tpu.memory_space<vmem>>, vector<4x72xf32>
    tpu.vector_store %arg11[%c0_221, %c8_222], %365 {strides = array<i32>} : memref<16x128xf32, #tpu.memory_space<vmem>>, vector<4x72xf32>,
    %c0_223 = arith.constant 0 : index
    %c1_224 = arith.constant 1 : index
    %367 = vector.load %arg11[%c0_223, %c1_224] : memref<16x128xf32, #tpu.memory_space<vmem>>, vector<4x72xf32>
    %368 = vector.broadcast %2 : vector<1x72xf32> to vector<4x72xf32>
    %369 = arith.mulf %367, %368 : vector<4x72xf32>
    %c9_225 = arith.constant 9 : index
    %c0_226 = arith.constant 0 : index
    %c0_227 = arith.constant 0 : index
    %370 = vector.load %arg4[%c9_225, %c0_226, %c0_227] : memref<36x4x4xf32, #tpu.memory_space<vmem>>, vector<1x4x4xf32>
    %371 = vector.shape_cast %370 : vector<1x4x4xf32> to vector<4x4xf32>
    %cst_228 = arith.constant dense<0.000000e+00> : vector<4x72xf32>
    %372 = tpu.matmul %371, %369, %cst_228 {dimension_numbers = #tpu.dot_dimension_numbers<[1], [0], [0], [1], [0, 0, 1, 1], [], []>} : vector<4x4xf32>, vector<4x72xf32>, vector<4x72xf32> -> vector<4x72xf32>
    %c0_229 = arith.constant 0 : index
    %c2_230 = arith.constant 2 : index
    %373 = vector.load %arg11[%c0_229, %c2_230] : memref<16x128xf32, #tpu.memory_space<vmem>>, vector<4x72xf32>
    %374 = vector.broadcast %3 : vector<1x72xf32> to vector<4x72xf32>
    %375 = arith.mulf %373, %374 : vector<4x72xf32>
    %c10_231 = arith.constant 10 : index
    %c0_232 = arith.constant 0 : index
    %c0_233 = arith.constant 0 : index
    %376 = vector.load %arg4[%c10_231, %c0_232, %c0_233] : memref<36x4x4xf32, #tpu.memory_space<vmem>>, vector<1x4x4xf32>
    %377 = vector.shape_cast %376 : vector<1x4x4xf32> to vector<4x4xf32>
    %cst_234 = arith.constant dense<0.000000e+00> : vector<4x72xf32>
    %378 = tpu.matmul %377, %375, %cst_234 {dimension_numbers = #tpu.dot_dimension_numbers<[1], [0], [0], [1], [0, 0, 1, 1], [], []>} : vector<4x4xf32>, vector<4x72xf32>, vector<4x72xf32> -> vector<4x72xf32>
    %c0_235 = arith.constant 0 : index
    %c3_236 = arith.constant 3 : index
    %379 = vector.load %arg11[%c0_235, %c3_236] : memref<16x128xf32, #tpu.memory_space<vmem>>, vector<4x72xf32>
    %380 = vector.broadcast %4 : vector<1x72xf32> to vector<4x72xf32>
    %381 = arith.mulf %379, %380 : vector<4x72xf32>
    %c11_237 = arith.constant 11 : index
    %c0_238 = arith.constant 0 : index
    %c0_239 = arith.constant 0 : index
    %382 = vector.load %arg4[%c11_237, %c0_238, %c0_239] : memref<36x4x4xf32, #tpu.memory_space<vmem>>, vector<1x4x4xf32>
    %383 = vector.shape_cast %382 : vector<1x4x4xf32> to vector<4x4xf32>
    %cst_240 = arith.constant dense<0.000000e+00> : vector<4x72xf32>
    %384 = tpu.matmul %383, %381, %cst_240 {dimension_numbers = #tpu.dot_dimension_numbers<[1], [0], [0], [1], [0, 0, 1, 1], [], []>} : vector<4x4xf32>, vector<4x72xf32>, vector<4x72xf32> -> vector<4x72xf32>
    %c0_241 = arith.constant 0 : index
    %c7_242 = arith.constant 7 : index
    %385 = vector.load %arg11[%c0_241, %c7_242] : memref<16x128xf32, #tpu.memory_space<vmem>>, vector<4x72xf32>
    %386 = vector.broadcast %5 : vector<1x72xf32> to vector<4x72xf32>
    %387 = arith.mulf %385, %386 : vector<4x72xf32>
    %c12_243 = arith.constant 12 : index
    %c0_244 = arith.constant 0 : index
    %c0_245 = arith.constant 0 : index
    %388 = vector.load %arg4[%c12_243, %c0_244, %c0_245] : memref<36x4x4xf32, #tpu.memory_space<vmem>>, vector<1x4x4xf32>
    %389 = vector.shape_cast %388 : vector<1x4x4xf32> to vector<4x4xf32>
    %cst_246 = arith.constant dense<0.000000e+00> : vector<4x72xf32>
    %390 = tpu.matmul %389, %387, %cst_246 {dimension_numbers = #tpu.dot_dimension_numbers<[1], [0], [0], [1], [0, 0, 1, 1], [], []>} : vector<4x4xf32>, vector<4x72xf32>, vector<4x72xf32> -> vector<4x72xf32>
    %391 = arith.addf %372, %390 : vector<4x72xf32>
    %c0_247 = arith.constant 0 : index
    %c8_248 = arith.constant 8 : index
    %392 = vector.load %arg11[%c0_247, %c8_248] : memref<16x128xf32, #tpu.memory_space<vmem>>, vector<4x72xf32>
    %393 = vector.broadcast %6 : vector<1x72xf32> to vector<4x72xf32>
    %394 = arith.mulf %392, %393 : vector<4x72xf32>
    %c13_249 = arith.constant 13 : index
    %c0_250 = arith.constant 0 : index
    %c0_251 = arith.constant 0 : index
    %395 = vector.load %arg4[%c13_249, %c0_250, %c0_251] : memref<36x4x4xf32, #tpu.memory_space<vmem>>, vector<1x4x4xf32>
    %396 = vector.shape_cast %395 : vector<1x4x4xf32> to vector<4x4xf32>
    %cst_252 = arith.constant dense<0.000000e+00> : vector<4x72xf32>
    %397 = tpu.matmul %396, %394, %cst_252 {dimension_numbers = #tpu.dot_dimension_numbers<[1], [0], [0], [1], [0, 0, 1, 1], [], []>} : vector<4x4xf32>, vector<4x72xf32>, vector<4x72xf32> -> vector<4x72xf32>
    %398 = arith.addf %378, %397 : vector<4x72xf32>
    %c0_253 = arith.constant 0 : index
    %c9_254 = arith.constant 9 : index
    %399 = vector.load %arg11[%c0_253, %c9_254] : memref<16x128xf32, #tpu.memory_space<vmem>>, vector<4x72xf32>
    %400 = vector.broadcast %7 : vector<1x72xf32> to vector<4x72xf32>
    %401 = arith.mulf %399, %400 : vector<4x72xf32>
    %c14_255 = arith.constant 14 : index
    %c0_256 = arith.constant 0 : index
    %c0_257 = arith.constant 0 : index
    %402 = vector.load %arg4[%c14_255, %c0_256, %c0_257] : memref<36x4x4xf32, #tpu.memory_space<vmem>>, vector<1x4x4xf32>
    %403 = vector.shape_cast %402 : vector<1x4x4xf32> to vector<4x4xf32>
    %cst_258 = arith.constant dense<0.000000e+00> : vector<4x72xf32>
    %404 = tpu.matmul %403, %401, %cst_258 {dimension_numbers = #tpu.dot_dimension_numbers<[1], [0], [0], [1], [0, 0, 1, 1], [], []>} : vector<4x4xf32>, vector<4x72xf32>, vector<4x72xf32> -> vector<4x72xf32>
    %405 = arith.addf %384, %404 : vector<4x72xf32>
    %c0_259 = arith.constant 0 : index
    %c13_260 = arith.constant 13 : index
    %406 = vector.load %arg11[%c0_259, %c13_260] : memref<16x128xf32, #tpu.memory_space<vmem>>, vector<4x72xf32>
    %407 = vector.broadcast %8 : vector<1x72xf32> to vector<4x72xf32>
    %408 = arith.mulf %406, %407 : vector<4x72xf32>
    %c15_261 = arith.constant 15 : index
    %c0_262 = arith.constant 0 : index
    %c0_263 = arith.constant 0 : index
    %409 = vector.load %arg4[%c15_261, %c0_262, %c0_263] : memref<36x4x4xf32, #tpu.memory_space<vmem>>, vector<1x4x4xf32>
    %410 = vector.shape_cast %409 : vector<1x4x4xf32> to vector<4x4xf32>
    %cst_264 = arith.constant dense<0.000000e+00> : vector<4x72xf32>
    %411 = tpu.matmul %410, %408, %cst_264 {dimension_numbers = #tpu.dot_dimension_numbers<[1], [0], [0], [1], [0, 0, 1, 1], [], []>} : vector<4x4xf32>, vector<4x72xf32>, vector<4x72xf32> -> vector<4x72xf32>
    %412 = arith.addf %391, %411 : vector<4x72xf32>
    %c0_265 = arith.constant 0 : index
    %c14_266 = arith.constant 14 : index
    %413 = vector.load %arg11[%c0_265, %c14_266] : memref<16x128xf32, #tpu.memory_space<vmem>>, vector<4x72xf32>
    %414 = vector.broadcast %9 : vector<1x72xf32> to vector<4x72xf32>
    %415 = arith.mulf %413, %414 : vector<4x72xf32>
    %c16_267 = arith.constant 16 : index
    %c0_268 = arith.constant 0 : index
    %c0_269 = arith.constant 0 : index
    %416 = vector.load %arg4[%c16_267, %c0_268, %c0_269] : memref<36x4x4xf32, #tpu.memory_space<vmem>>, vector<1x4x4xf32>
    %417 = vector.shape_cast %416 : vector<1x4x4xf32> to vector<4x4xf32>
    %cst_270 = arith.constant dense<0.000000e+00> : vector<4x72xf32>
    %418 = tpu.matmul %417, %415, %cst_270 {dimension_numbers = #tpu.dot_dimension_numbers<[1], [0], [0], [1], [0, 0, 1, 1], [], []>} : vector<4x4xf32>, vector<4x72xf32>, vector<4x72xf32> -> vector<4x72xf32>
    %419 = arith.addf %398, %418 : vector<4x72xf32>
    %c0_271 = arith.constant 0 : index
    %c15_272 = arith.constant 15 : index
    %420 = vector.load %arg11[%c0_271, %c15_272] : memref<16x128xf32, #tpu.memory_space<vmem>>, vector<4x72xf32>
    %421 = vector.broadcast %10 : vector<1x72xf32> to vector<4x72xf32>
    %422 = arith.mulf %420, %421 : vector<4x72xf32>
    %c17_273 = arith.constant 17 : index
    %c0_274 = arith.constant 0 : index
    %c0_275 = arith.constant 0 : index
    %423 = vector.load %arg4[%c17_273, %c0_274, %c0_275] : memref<36x4x4xf32, #tpu.memory_space<vmem>>, vector<1x4x4xf32>
    %424 = vector.shape_cast %423 : vector<1x4x4xf32> to vector<4x4xf32>
    %cst_276 = arith.constant dense<0.000000e+00> : vector<4x72xf32>
    %425 = tpu.matmul %424, %422, %cst_276 {dimension_numbers = #tpu.dot_dimension_numbers<[1], [0], [0], [1], [0, 0, 1, 1], [], []>} : vector<4x4xf32>, vector<4x72xf32>, vector<4x72xf32> -> vector<4x72xf32>
    %426 = arith.addf %405, %425 : vector<4x72xf32>
    %c0_277 = arith.constant 0 : index
    %c20 = arith.constant 20 : index
    %427 = vector.load %arg1[%c0_277, %c20] : memref<16x32xf32, #tpu.memory_space<vmem>>, vector<4x1xf32>
    %428 = arith.addf %412, %419 : vector<4x72xf32>
    %429 = arith.addf %428, %426 : vector<4x72xf32>
    %430 = vector.broadcast %427 : vector<4x1xf32> to vector<4x72xf32>
    %431 = arith.addf %429, %430 : vector<4x72xf32>
    %432 = arith.addf %431, %243 : vector<4x72xf32>
    %cst_278 = arith.constant dense<0.000000e+00> : vector<4xf32>
    %433 = vector.multi_reduction <add>, %432, %cst_278 [1] : vector<4x72xf32> to vector<4xf32>
    %434 = vector.shape_cast %433 : vector<4xf32> to vector<4x1xf32>
    %435 = arith.mulf %432, %432 : vector<4x72xf32>
    %cst_279 = arith.constant dense<0.000000e+00> : vector<4xf32>
    %436 = vector.multi_reduction <add>, %435, %cst_279 [1] : vector<4x72xf32> to vector<4xf32>
    %437 = vector.shape_cast %436 : vector<4xf32> to vector<4x1xf32>
    %cst_280 = arith.constant 0.013888889 : f32
    %438 = vector.broadcast %cst_280 : f32 to vector<4x1xf32>
    %439 = arith.mulf %434, %438 : vector<4x1xf32>
    %cst_281 = arith.constant 0.013888889 : f32
    %440 = vector.broadcast %cst_281 : f32 to vector<4x1xf32>
    %441 = arith.mulf %437, %440 : vector<4x1xf32>
    %442 = arith.mulf %439, %439 : vector<4x1xf32>
    %443 = arith.subf %441, %442 : vector<4x1xf32>
    %cst_282 = arith.constant 0.000000e+00 : f32
    %444 = vector.broadcast %cst_282 : f32 to vector<4x1xf32>
    %445 = arith.maximumf %443, %444 : vector<4x1xf32>
    %c0_283 = arith.constant 0 : index
    %c21 = arith.constant 21 : index
    %446 = vector.load %arg1[%c0_283, %c21] : memref<16x32xf32, #tpu.memory_space<vmem>>, vector<4x1xf32>
    %c0_284 = arith.constant 0 : index
    %c22 = arith.constant 22 : index
    %447 = vector.load %arg1[%c0_284, %c22] : memref<16x32xf32, #tpu.memory_space<vmem>>, vector<4x1xf32>
    %448 = vector.broadcast %439 : vector<4x1xf32> to vector<4x72xf32>
    %449 = arith.subf %432, %448 : vector<4x72xf32>
    %cst_285 = arith.constant 9.99999974E-6 : f32
    %450 = vector.broadcast %cst_285 : f32 to vector<4x1xf32>
    %451 = arith.addf %445, %450 : vector<4x1xf32>
    %452 = math.rsqrt %451 : vector<4x1xf32>
    %453 = vector.broadcast %452 : vector<4x1xf32> to vector<4x72xf32>
    %454 = arith.mulf %449, %453 : vector<4x72xf32>
    %455 = vector.broadcast %446 : vector<4x1xf32> to vector<4x72xf32>
    %456 = arith.mulf %454, %455 : vector<4x72xf32>
    %457 = vector.broadcast %447 : vector<4x1xf32> to vector<4x72xf32>
    %458 = arith.addf %456, %457 : vector<4x72xf32>
    %cst_286 = arith.constant 0.000000e+00 : f32
    %459 = vector.broadcast %cst_286 : f32 to vector<4x72xf32>
    %460 = arith.maximumf %458, %459 : vector<4x72xf32>
    %c0_287 = arith.constant 0 : index
    %c8_288 = arith.constant 8 : index
    %461 = vector.load %arg11[%c0_287, %c8_288] : memref<16x128xf32, #tpu.memory_space<vmem>>, vector<4x72xf32>
    tpu.vector_store %arg11[%c0_287, %c8_288], %460 {strides = array<i32>} : memref<16x128xf32, #tpu.memory_space<vmem>>, vector<4x72xf32>,
    %c0_289 = arith.constant 0 : index
    %c1_290 = arith.constant 1 : index
    %462 = vector.load %arg11[%c0_289, %c1_290] : memref<16x128xf32, #tpu.memory_space<vmem>>, vector<4x72xf32>
    %463 = vector.broadcast %2 : vector<1x72xf32> to vector<4x72xf32>
    %464 = arith.mulf %462, %463 : vector<4x72xf32>
    %c18_291 = arith.constant 18 : index
    %c0_292 = arith.constant 0 : index
    %c0_293 = arith.constant 0 : index
    %465 = vector.load %arg4[%c18_291, %c0_292, %c0_293] : memref<36x4x4xf32, #tpu.memory_space<vmem>>, vector<1x4x4xf32>
    %466 = vector.shape_cast %465 : vector<1x4x4xf32> to vector<4x4xf32>
    %cst_294 = arith.constant dense<0.000000e+00> : vector<4x72xf32>
    %467 = tpu.matmul %466, %464, %cst_294 {dimension_numbers = #tpu.dot_dimension_numbers<[1], [0], [0], [1], [0, 0, 1, 1], [], []>} : vector<4x4xf32>, vector<4x72xf32>, vector<4x72xf32> -> vector<4x72xf32>
    %c0_295 = arith.constant 0 : index
    %c2_296 = arith.constant 2 : index
    %468 = vector.load %arg11[%c0_295, %c2_296] : memref<16x128xf32, #tpu.memory_space<vmem>>, vector<4x72xf32>
    %469 = vector.broadcast %3 : vector<1x72xf32> to vector<4x72xf32>
    %470 = arith.mulf %468, %469 : vector<4x72xf32>
    %c19_297 = arith.constant 19 : index
    %c0_298 = arith.constant 0 : index
    %c0_299 = arith.constant 0 : index
    %471 = vector.load %arg4[%c19_297, %c0_298, %c0_299] : memref<36x4x4xf32, #tpu.memory_space<vmem>>, vector<1x4x4xf32>
    %472 = vector.shape_cast %471 : vector<1x4x4xf32> to vector<4x4xf32>
    %cst_300 = arith.constant dense<0.000000e+00> : vector<4x72xf32>
    %473 = tpu.matmul %472, %470, %cst_300 {dimension_numbers = #tpu.dot_dimension_numbers<[1], [0], [0], [1], [0, 0, 1, 1], [], []>} : vector<4x4xf32>, vector<4x72xf32>, vector<4x72xf32> -> vector<4x72xf32>
    %c0_301 = arith.constant 0 : index
    %c3_302 = arith.constant 3 : index
    %474 = vector.load %arg11[%c0_301, %c3_302] : memref<16x128xf32, #tpu.memory_space<vmem>>, vector<4x72xf32>
    %475 = vector.broadcast %4 : vector<1x72xf32> to vector<4x72xf32>
    %476 = arith.mulf %474, %475 : vector<4x72xf32>
    %c20_303 = arith.constant 20 : index
    %c0_304 = arith.constant 0 : index
    %c0_305 = arith.constant 0 : index
    %477 = vector.load %arg4[%c20_303, %c0_304, %c0_305] : memref<36x4x4xf32, #tpu.memory_space<vmem>>, vector<1x4x4xf32>
    %478 = vector.shape_cast %477 : vector<1x4x4xf32> to vector<4x4xf32>
    %cst_306 = arith.constant dense<0.000000e+00> : vector<4x72xf32>
    %479 = tpu.matmul %478, %476, %cst_306 {dimension_numbers = #tpu.dot_dimension_numbers<[1], [0], [0], [1], [0, 0, 1, 1], [], []>} : vector<4x4xf32>, vector<4x72xf32>, vector<4x72xf32> -> vector<4x72xf32>
    %c0_307 = arith.constant 0 : index
    %c7_308 = arith.constant 7 : index
    %480 = vector.load %arg11[%c0_307, %c7_308] : memref<16x128xf32, #tpu.memory_space<vmem>>, vector<4x72xf32>
    %481 = vector.broadcast %5 : vector<1x72xf32> to vector<4x72xf32>
    %482 = arith.mulf %480, %481 : vector<4x72xf32>
    %c21_309 = arith.constant 21 : index
    %c0_310 = arith.constant 0 : index
    %c0_311 = arith.constant 0 : index
    %483 = vector.load %arg4[%c21_309, %c0_310, %c0_311] : memref<36x4x4xf32, #tpu.memory_space<vmem>>, vector<1x4x4xf32>
    %484 = vector.shape_cast %483 : vector<1x4x4xf32> to vector<4x4xf32>
    %cst_312 = arith.constant dense<0.000000e+00> : vector<4x72xf32>
    %485 = tpu.matmul %484, %482, %cst_312 {dimension_numbers = #tpu.dot_dimension_numbers<[1], [0], [0], [1], [0, 0, 1, 1], [], []>} : vector<4x4xf32>, vector<4x72xf32>, vector<4x72xf32> -> vector<4x72xf32>
    %486 = arith.addf %467, %485 : vector<4x72xf32>
    %c0_313 = arith.constant 0 : index
    %c8_314 = arith.constant 8 : index
    %487 = vector.load %arg11[%c0_313, %c8_314] : memref<16x128xf32, #tpu.memory_space<vmem>>, vector<4x72xf32>
    %488 = vector.broadcast %6 : vector<1x72xf32> to vector<4x72xf32>
    %489 = arith.mulf %487, %488 : vector<4x72xf32>
    %c22_315 = arith.constant 22 : index
    %c0_316 = arith.constant 0 : index
    %c0_317 = arith.constant 0 : index
    %490 = vector.load %arg4[%c22_315, %c0_316, %c0_317] : memref<36x4x4xf32, #tpu.memory_space<vmem>>, vector<1x4x4xf32>
    %491 = vector.shape_cast %490 : vector<1x4x4xf32> to vector<4x4xf32>
    %cst_318 = arith.constant dense<0.000000e+00> : vector<4x72xf32>
    %492 = tpu.matmul %491, %489, %cst_318 {dimension_numbers = #tpu.dot_dimension_numbers<[1], [0], [0], [1], [0, 0, 1, 1], [], []>} : vector<4x4xf32>, vector<4x72xf32>, vector<4x72xf32> -> vector<4x72xf32>
    %493 = arith.addf %473, %492 : vector<4x72xf32>
    %c0_319 = arith.constant 0 : index
    %c9_320 = arith.constant 9 : index
    %494 = vector.load %arg11[%c0_319, %c9_320] : memref<16x128xf32, #tpu.memory_space<vmem>>, vector<4x72xf32>
    %495 = vector.broadcast %7 : vector<1x72xf32> to vector<4x72xf32>
    %496 = arith.mulf %494, %495 : vector<4x72xf32>
    %c23 = arith.constant 23 : index
    %c0_321 = arith.constant 0 : index
    %c0_322 = arith.constant 0 : index
    %497 = vector.load %arg4[%c23, %c0_321, %c0_322] : memref<36x4x4xf32, #tpu.memory_space<vmem>>, vector<1x4x4xf32>
    %498 = vector.shape_cast %497 : vector<1x4x4xf32> to vector<4x4xf32>
    %cst_323 = arith.constant dense<0.000000e+00> : vector<4x72xf32>
    %499 = tpu.matmul %498, %496, %cst_323 {dimension_numbers = #tpu.dot_dimension_numbers<[1], [0], [0], [1], [0, 0, 1, 1], [], []>} : vector<4x4xf32>, vector<4x72xf32>, vector<4x72xf32> -> vector<4x72xf32>
    %500 = arith.addf %479, %499 : vector<4x72xf32>
    %c0_324 = arith.constant 0 : index
    %c13_325 = arith.constant 13 : index
    %501 = vector.load %arg11[%c0_324, %c13_325] : memref<16x128xf32, #tpu.memory_space<vmem>>, vector<4x72xf32>
    %502 = vector.broadcast %8 : vector<1x72xf32> to vector<4x72xf32>
    %503 = arith.mulf %501, %502 : vector<4x72xf32>
    %c24 = arith.constant 24 : index
    %c0_326 = arith.constant 0 : index
    %c0_327 = arith.constant 0 : index
    %504 = vector.load %arg4[%c24, %c0_326, %c0_327] : memref<36x4x4xf32, #tpu.memory_space<vmem>>, vector<1x4x4xf32>
    %505 = vector.shape_cast %504 : vector<1x4x4xf32> to vector<4x4xf32>
    %cst_328 = arith.constant dense<0.000000e+00> : vector<4x72xf32>
    %506 = tpu.matmul %505, %503, %cst_328 {dimension_numbers = #tpu.dot_dimension_numbers<[1], [0], [0], [1], [0, 0, 1, 1], [], []>} : vector<4x4xf32>, vector<4x72xf32>, vector<4x72xf32> -> vector<4x72xf32>
    %507 = arith.addf %486, %506 : vector<4x72xf32>
    %c0_329 = arith.constant 0 : index
    %c14_330 = arith.constant 14 : index
    %508 = vector.load %arg11[%c0_329, %c14_330] : memref<16x128xf32, #tpu.memory_space<vmem>>, vector<4x72xf32>
    %509 = vector.broadcast %9 : vector<1x72xf32> to vector<4x72xf32>
    %510 = arith.mulf %508, %509 : vector<4x72xf32>
    %c25 = arith.constant 25 : index
    %c0_331 = arith.constant 0 : index
    %c0_332 = arith.constant 0 : index
    %511 = vector.load %arg4[%c25, %c0_331, %c0_332] : memref<36x4x4xf32, #tpu.memory_space<vmem>>, vector<1x4x4xf32>
    %512 = vector.shape_cast %511 : vector<1x4x4xf32> to vector<4x4xf32>
    %cst_333 = arith.constant dense<0.000000e+00> : vector<4x72xf32>
    %513 = tpu.matmul %512, %510, %cst_333 {dimension_numbers = #tpu.dot_dimension_numbers<[1], [0], [0], [1], [0, 0, 1, 1], [], []>} : vector<4x4xf32>, vector<4x72xf32>, vector<4x72xf32> -> vector<4x72xf32>
    %514 = arith.addf %493, %513 : vector<4x72xf32>
    %c0_334 = arith.constant 0 : index
    %c15_335 = arith.constant 15 : index
    %515 = vector.load %arg11[%c0_334, %c15_335] : memref<16x128xf32, #tpu.memory_space<vmem>>, vector<4x72xf32>
    %516 = vector.broadcast %10 : vector<1x72xf32> to vector<4x72xf32>
    %517 = arith.mulf %515, %516 : vector<4x72xf32>
    %c26 = arith.constant 26 : index
    %c0_336 = arith.constant 0 : index
    %c0_337 = arith.constant 0 : index
    %518 = vector.load %arg4[%c26, %c0_336, %c0_337] : memref<36x4x4xf32, #tpu.memory_space<vmem>>, vector<1x4x4xf32>
    %519 = vector.shape_cast %518 : vector<1x4x4xf32> to vector<4x4xf32>
    %cst_338 = arith.constant dense<0.000000e+00> : vector<4x72xf32>
    %520 = tpu.matmul %519, %517, %cst_338 {dimension_numbers = #tpu.dot_dimension_numbers<[1], [0], [0], [1], [0, 0, 1, 1], [], []>} : vector<4x4xf32>, vector<4x72xf32>, vector<4x72xf32> -> vector<4x72xf32>
    %521 = arith.addf %500, %520 : vector<4x72xf32>
    %c0_339 = arith.constant 0 : index
    %c23_340 = arith.constant 23 : index
    %522 = vector.load %arg1[%c0_339, %c23_340] : memref<16x32xf32, #tpu.memory_space<vmem>>, vector<4x1xf32>
    %523 = arith.addf %507, %514 : vector<4x72xf32>
    %524 = arith.addf %523, %521 : vector<4x72xf32>
    %525 = vector.broadcast %522 : vector<4x1xf32> to vector<4x72xf32>
    %526 = arith.addf %524, %525 : vector<4x72xf32>
    %cst_341 = arith.constant dense<0.000000e+00> : vector<4xf32>
    %527 = vector.multi_reduction <add>, %526, %cst_341 [1] : vector<4x72xf32> to vector<4xf32>
    %528 = vector.shape_cast %527 : vector<4xf32> to vector<4x1xf32>
    %529 = arith.mulf %526, %526 : vector<4x72xf32>
    %cst_342 = arith.constant dense<0.000000e+00> : vector<4xf32>
    %530 = vector.multi_reduction <add>, %529, %cst_342 [1] : vector<4x72xf32> to vector<4xf32>
    %531 = vector.shape_cast %530 : vector<4xf32> to vector<4x1xf32>
    %cst_343 = arith.constant 0.013888889 : f32
    %532 = vector.broadcast %cst_343 : f32 to vector<4x1xf32>
    %533 = arith.mulf %528, %532 : vector<4x1xf32>
    %cst_344 = arith.constant 0.013888889 : f32
    %534 = vector.broadcast %cst_344 : f32 to vector<4x1xf32>
    %535 = arith.mulf %531, %534 : vector<4x1xf32>
    %536 = arith.mulf %533, %533 : vector<4x1xf32>
    %537 = arith.subf %535, %536 : vector<4x1xf32>
    %cst_345 = arith.constant 0.000000e+00 : f32
    %538 = vector.broadcast %cst_345 : f32 to vector<4x1xf32>
    %539 = arith.maximumf %537, %538 : vector<4x1xf32>
    %c0_346 = arith.constant 0 : index
    %c24_347 = arith.constant 24 : index
    %540 = vector.load %arg1[%c0_346, %c24_347] : memref<16x32xf32, #tpu.memory_space<vmem>>, vector<4x1xf32>
    %c0_348 = arith.constant 0 : index
    %c25_349 = arith.constant 25 : index
    %541 = vector.load %arg1[%c0_348, %c25_349] : memref<16x32xf32, #tpu.memory_space<vmem>>, vector<4x1xf32>
    %542 = vector.broadcast %533 : vector<4x1xf32> to vector<4x72xf32>
    %543 = arith.subf %526, %542 : vector<4x72xf32>
    %cst_350 = arith.constant 9.99999974E-6 : f32
    %544 = vector.broadcast %cst_350 : f32 to vector<4x1xf32>
    %545 = arith.addf %539, %544 : vector<4x1xf32>
    %546 = math.rsqrt %545 : vector<4x1xf32>
    %547 = vector.broadcast %546 : vector<4x1xf32> to vector<4x72xf32>
    %548 = arith.mulf %543, %547 : vector<4x72xf32>
    %549 = vector.broadcast %540 : vector<4x1xf32> to vector<4x72xf32>
    %550 = arith.mulf %548, %549 : vector<4x72xf32>
    %551 = vector.broadcast %541 : vector<4x1xf32> to vector<4x72xf32>
    %552 = arith.addf %550, %551 : vector<4x72xf32>
    %cst_351 = arith.constant 0.000000e+00 : f32
    %553 = vector.broadcast %cst_351 : f32 to vector<4x72xf32>
    %554 = arith.maximumf %552, %553 : vector<4x72xf32>
    %c0_352 = arith.constant 0 : index
    %c8_353 = arith.constant 8 : index
    %555 = vector.load %arg11[%c0_352, %c8_353] : memref<16x128xf32, #tpu.memory_space<vmem>>, vector<4x72xf32>
    tpu.vector_store %arg11[%c0_352, %c8_353], %554 {strides = array<i32>} : memref<16x128xf32, #tpu.memory_space<vmem>>, vector<4x72xf32>,
    %c0_354 = arith.constant 0 : index
    %c1_355 = arith.constant 1 : index
    %556 = vector.load %arg11[%c0_354, %c1_355] : memref<16x128xf32, #tpu.memory_space<vmem>>, vector<4x72xf32>
    %557 = vector.broadcast %2 : vector<1x72xf32> to vector<4x72xf32>
    %558 = arith.mulf %556, %557 : vector<4x72xf32>
    %c27 = arith.constant 27 : index
    %c0_356 = arith.constant 0 : index
    %c0_357 = arith.constant 0 : index
    %559 = vector.load %arg4[%c27, %c0_356, %c0_357] : memref<36x4x4xf32, #tpu.memory_space<vmem>>, vector<1x4x4xf32>
    %560 = vector.shape_cast %559 : vector<1x4x4xf32> to vector<4x4xf32>
    %cst_358 = arith.constant dense<0.000000e+00> : vector<4x72xf32>
    %561 = tpu.matmul %560, %558, %cst_358 {dimension_numbers = #tpu.dot_dimension_numbers<[1], [0], [0], [1], [0, 0, 1, 1], [], []>} : vector<4x4xf32>, vector<4x72xf32>, vector<4x72xf32> -> vector<4x72xf32>
    %c0_359 = arith.constant 0 : index
    %c2_360 = arith.constant 2 : index
    %562 = vector.load %arg11[%c0_359, %c2_360] : memref<16x128xf32, #tpu.memory_space<vmem>>, vector<4x72xf32>
    %563 = vector.broadcast %3 : vector<1x72xf32> to vector<4x72xf32>
    %564 = arith.mulf %562, %563 : vector<4x72xf32>
    %c28 = arith.constant 28 : index
    %c0_361 = arith.constant 0 : index
    %c0_362 = arith.constant 0 : index
    %565 = vector.load %arg4[%c28, %c0_361, %c0_362] : memref<36x4x4xf32, #tpu.memory_space<vmem>>, vector<1x4x4xf32>
    %566 = vector.shape_cast %565 : vector<1x4x4xf32> to vector<4x4xf32>
    %cst_363 = arith.constant dense<0.000000e+00> : vector<4x72xf32>
    %567 = tpu.matmul %566, %564, %cst_363 {dimension_numbers = #tpu.dot_dimension_numbers<[1], [0], [0], [1], [0, 0, 1, 1], [], []>} : vector<4x4xf32>, vector<4x72xf32>, vector<4x72xf32> -> vector<4x72xf32>
    %c0_364 = arith.constant 0 : index
    %c3_365 = arith.constant 3 : index
    %568 = vector.load %arg11[%c0_364, %c3_365] : memref<16x128xf32, #tpu.memory_space<vmem>>, vector<4x72xf32>
    %569 = vector.broadcast %4 : vector<1x72xf32> to vector<4x72xf32>
    %570 = arith.mulf %568, %569 : vector<4x72xf32>
    %c29 = arith.constant 29 : index
    %c0_366 = arith.constant 0 : index
    %c0_367 = arith.constant 0 : index
    %571 = vector.load %arg4[%c29, %c0_366, %c0_367] : memref<36x4x4xf32, #tpu.memory_space<vmem>>, vector<1x4x4xf32>
    %572 = vector.shape_cast %571 : vector<1x4x4xf32> to vector<4x4xf32>
    %cst_368 = arith.constant dense<0.000000e+00> : vector<4x72xf32>
    %573 = tpu.matmul %572, %570, %cst_368 {dimension_numbers = #tpu.dot_dimension_numbers<[1], [0], [0], [1], [0, 0, 1, 1], [], []>} : vector<4x4xf32>, vector<4x72xf32>, vector<4x72xf32> -> vector<4x72xf32>
    %c0_369 = arith.constant 0 : index
    %c7_370 = arith.constant 7 : index
    %574 = vector.load %arg11[%c0_369, %c7_370] : memref<16x128xf32, #tpu.memory_space<vmem>>, vector<4x72xf32>
    %575 = vector.broadcast %5 : vector<1x72xf32> to vector<4x72xf32>
    %576 = arith.mulf %574, %575 : vector<4x72xf32>
    %c30 = arith.constant 30 : index
    %c0_371 = arith.constant 0 : index
    %c0_372 = arith.constant 0 : index
    %577 = vector.load %arg4[%c30, %c0_371, %c0_372] : memref<36x4x4xf32, #tpu.memory_space<vmem>>, vector<1x4x4xf32>
    %578 = vector.shape_cast %577 : vector<1x4x4xf32> to vector<4x4xf32>
    %cst_373 = arith.constant dense<0.000000e+00> : vector<4x72xf32>
    %579 = tpu.matmul %578, %576, %cst_373 {dimension_numbers = #tpu.dot_dimension_numbers<[1], [0], [0], [1], [0, 0, 1, 1], [], []>} : vector<4x4xf32>, vector<4x72xf32>, vector<4x72xf32> -> vector<4x72xf32>
    %580 = arith.addf %561, %579 : vector<4x72xf32>
    %c0_374 = arith.constant 0 : index
    %c8_375 = arith.constant 8 : index
    %581 = vector.load %arg11[%c0_374, %c8_375] : memref<16x128xf32, #tpu.memory_space<vmem>>, vector<4x72xf32>
    %582 = vector.broadcast %6 : vector<1x72xf32> to vector<4x72xf32>
    %583 = arith.mulf %581, %582 : vector<4x72xf32>
    %c31 = arith.constant 31 : index
    %c0_376 = arith.constant 0 : index
    %c0_377 = arith.constant 0 : index
    %584 = vector.load %arg4[%c31, %c0_376, %c0_377] : memref<36x4x4xf32, #tpu.memory_space<vmem>>, vector<1x4x4xf32>
    %585 = vector.shape_cast %584 : vector<1x4x4xf32> to vector<4x4xf32>
    %cst_378 = arith.constant dense<0.000000e+00> : vector<4x72xf32>
    %586 = tpu.matmul %585, %583, %cst_378 {dimension_numbers = #tpu.dot_dimension_numbers<[1], [0], [0], [1], [0, 0, 1, 1], [], []>} : vector<4x4xf32>, vector<4x72xf32>, vector<4x72xf32> -> vector<4x72xf32>
    %587 = arith.addf %567, %586 : vector<4x72xf32>
    %c0_379 = arith.constant 0 : index
    %c9_380 = arith.constant 9 : index
    %588 = vector.load %arg11[%c0_379, %c9_380] : memref<16x128xf32, #tpu.memory_space<vmem>>, vector<4x72xf32>
    %589 = vector.broadcast %7 : vector<1x72xf32> to vector<4x72xf32>
    %590 = arith.mulf %588, %589 : vector<4x72xf32>
    %c32 = arith.constant 32 : index
    %c0_381 = arith.constant 0 : index
    %c0_382 = arith.constant 0 : index
    %591 = vector.load %arg4[%c32, %c0_381, %c0_382] : memref<36x4x4xf32, #tpu.memory_space<vmem>>, vector<1x4x4xf32>
    %592 = vector.shape_cast %591 : vector<1x4x4xf32> to vector<4x4xf32>
    %cst_383 = arith.constant dense<0.000000e+00> : vector<4x72xf32>
    %593 = tpu.matmul %592, %590, %cst_383 {dimension_numbers = #tpu.dot_dimension_numbers<[1], [0], [0], [1], [0, 0, 1, 1], [], []>} : vector<4x4xf32>, vector<4x72xf32>, vector<4x72xf32> -> vector<4x72xf32>
    %594 = arith.addf %573, %593 : vector<4x72xf32>
    %c0_384 = arith.constant 0 : index
    %c13_385 = arith.constant 13 : index
    %595 = vector.load %arg11[%c0_384, %c13_385] : memref<16x128xf32, #tpu.memory_space<vmem>>, vector<4x72xf32>
    %596 = vector.broadcast %8 : vector<1x72xf32> to vector<4x72xf32>
    %597 = arith.mulf %595, %596 : vector<4x72xf32>
    %c33 = arith.constant 33 : index
    %c0_386 = arith.constant 0 : index
    %c0_387 = arith.constant 0 : index
    %598 = vector.load %arg4[%c33, %c0_386, %c0_387] : memref<36x4x4xf32, #tpu.memory_space<vmem>>, vector<1x4x4xf32>
    %599 = vector.shape_cast %598 : vector<1x4x4xf32> to vector<4x4xf32>
    %cst_388 = arith.constant dense<0.000000e+00> : vector<4x72xf32>
    %600 = tpu.matmul %599, %597, %cst_388 {dimension_numbers = #tpu.dot_dimension_numbers<[1], [0], [0], [1], [0, 0, 1, 1], [], []>} : vector<4x4xf32>, vector<4x72xf32>, vector<4x72xf32> -> vector<4x72xf32>
    %601 = arith.addf %580, %600 : vector<4x72xf32>
    %c0_389 = arith.constant 0 : index
    %c14_390 = arith.constant 14 : index
    %602 = vector.load %arg11[%c0_389, %c14_390] : memref<16x128xf32, #tpu.memory_space<vmem>>, vector<4x72xf32>
    %603 = vector.broadcast %9 : vector<1x72xf32> to vector<4x72xf32>
    %604 = arith.mulf %602, %603 : vector<4x72xf32>
    %c34 = arith.constant 34 : index
    %c0_391 = arith.constant 0 : index
    %c0_392 = arith.constant 0 : index
    %605 = vector.load %arg4[%c34, %c0_391, %c0_392] : memref<36x4x4xf32, #tpu.memory_space<vmem>>, vector<1x4x4xf32>
    %606 = vector.shape_cast %605 : vector<1x4x4xf32> to vector<4x4xf32>
    %cst_393 = arith.constant dense<0.000000e+00> : vector<4x72xf32>
    %607 = tpu.matmul %606, %604, %cst_393 {dimension_numbers = #tpu.dot_dimension_numbers<[1], [0], [0], [1], [0, 0, 1, 1], [], []>} : vector<4x4xf32>, vector<4x72xf32>, vector<4x72xf32> -> vector<4x72xf32>
    %608 = arith.addf %587, %607 : vector<4x72xf32>
    %c0_394 = arith.constant 0 : index
    %c15_395 = arith.constant 15 : index
    %609 = vector.load %arg11[%c0_394, %c15_395] : memref<16x128xf32, #tpu.memory_space<vmem>>, vector<4x72xf32>
    %610 = vector.broadcast %10 : vector<1x72xf32> to vector<4x72xf32>
    %611 = arith.mulf %609, %610 : vector<4x72xf32>
    %c35 = arith.constant 35 : index
    %c0_396 = arith.constant 0 : index
    %c0_397 = arith.constant 0 : index
    %612 = vector.load %arg4[%c35, %c0_396, %c0_397] : memref<36x4x4xf32, #tpu.memory_space<vmem>>, vector<1x4x4xf32>
    %613 = vector.shape_cast %612 : vector<1x4x4xf32> to vector<4x4xf32>
    %cst_398 = arith.constant dense<0.000000e+00> : vector<4x72xf32>
    %614 = tpu.matmul %613, %611, %cst_398 {dimension_numbers = #tpu.dot_dimension_numbers<[1], [0], [0], [1], [0, 0, 1, 1], [], []>} : vector<4x4xf32>, vector<4x72xf32>, vector<4x72xf32> -> vector<4x72xf32>
    %615 = arith.addf %594, %614 : vector<4x72xf32>
    %c0_399 = arith.constant 0 : index
    %c26_400 = arith.constant 26 : index
    %616 = vector.load %arg1[%c0_399, %c26_400] : memref<16x32xf32, #tpu.memory_space<vmem>>, vector<4x1xf32>
    %617 = arith.addf %601, %608 : vector<4x72xf32>
    %618 = arith.addf %617, %615 : vector<4x72xf32>
    %619 = vector.broadcast %616 : vector<4x1xf32> to vector<4x72xf32>
    %620 = arith.addf %618, %619 : vector<4x72xf32>
    %621 = arith.addf %620, %432 : vector<4x72xf32>
    %cst_401 = arith.constant dense<0.000000e+00> : vector<4xf32>
    %622 = vector.multi_reduction <add>, %621, %cst_401 [1] : vector<4x72xf32> to vector<4xf32>
    %623 = vector.shape_cast %622 : vector<4xf32> to vector<4x1xf32>
    %624 = arith.mulf %621, %621 : vector<4x72xf32>
    %cst_402 = arith.constant dense<0.000000e+00> : vector<4xf32>
    %625 = vector.multi_reduction <add>, %624, %cst_402 [1] : vector<4x72xf32> to vector<4xf32>
    %626 = vector.shape_cast %625 : vector<4xf32> to vector<4x1xf32>
    %cst_403 = arith.constant 0.013888889 : f32
    %627 = vector.broadcast %cst_403 : f32 to vector<4x1xf32>
    %628 = arith.mulf %623, %627 : vector<4x1xf32>
    %cst_404 = arith.constant 0.013888889 : f32
    %629 = vector.broadcast %cst_404 : f32 to vector<4x1xf32>
    %630 = arith.mulf %626, %629 : vector<4x1xf32>
    %631 = arith.mulf %628, %628 : vector<4x1xf32>
    %632 = arith.subf %630, %631 : vector<4x1xf32>
    %cst_405 = arith.constant 0.000000e+00 : f32
    %633 = vector.broadcast %cst_405 : f32 to vector<4x1xf32>
    %634 = arith.maximumf %632, %633 : vector<4x1xf32>
    %c0_406 = arith.constant 0 : index
    %c27_407 = arith.constant 27 : index
    %635 = vector.load %arg1[%c0_406, %c27_407] : memref<16x32xf32, #tpu.memory_space<vmem>>, vector<4x1xf32>
    %c0_408 = arith.constant 0 : index
    %c28_409 = arith.constant 28 : index
    %636 = vector.load %arg1[%c0_408, %c28_409] : memref<16x32xf32, #tpu.memory_space<vmem>>, vector<4x1xf32>
    %637 = vector.broadcast %628 : vector<4x1xf32> to vector<4x72xf32>
    %638 = arith.subf %621, %637 : vector<4x72xf32>
    %cst_410 = arith.constant 9.99999974E-6 : f32
    %639 = vector.broadcast %cst_410 : f32 to vector<4x1xf32>
    %640 = arith.addf %634, %639 : vector<4x1xf32>
    %641 = math.rsqrt %640 : vector<4x1xf32>
    %642 = vector.broadcast %641 : vector<4x1xf32> to vector<4x72xf32>
    %643 = arith.mulf %638, %642 : vector<4x72xf32>
    %644 = vector.broadcast %635 : vector<4x1xf32> to vector<4x72xf32>
    %645 = arith.mulf %643, %644 : vector<4x72xf32>
    %646 = vector.broadcast %636 : vector<4x1xf32> to vector<4x72xf32>
    %647 = arith.addf %645, %646 : vector<4x72xf32>
    %c0_411 = arith.constant 0 : index
    %c8_412 = arith.constant 8 : index
    %648 = vector.load %arg11[%c0_411, %c8_412] : memref<16x128xf32, #tpu.memory_space<vmem>>, vector<4x72xf32>
    tpu.vector_store %arg11[%c0_411, %c8_412], %647 {strides = array<i32>} : memref<16x128xf32, #tpu.memory_space<vmem>>, vector<4x72xf32>,
    %c0_413 = arith.constant 0 : index
    %c1_414 = arith.constant 1 : index
    %649 = vector.load %arg11[%c0_413, %c1_414] : memref<16x128xf32, #tpu.memory_space<vmem>>, vector<4x72xf32>
    %650 = vector.broadcast %2 : vector<1x72xf32> to vector<4x72xf32>
    %651 = arith.mulf %649, %650 : vector<4x72xf32>
    %c0_415 = arith.constant 0 : index
    %c0_416 = arith.constant 0 : index
    %c0_417 = arith.constant 0 : index
    %652 = vector.load %arg5[%c0_415, %c0_416, %c0_417] : memref<9x2x4xf32, #tpu.memory_space<vmem>>, vector<1x2x4xf32>
    %653 = vector.shape_cast %652 : vector<1x2x4xf32> to vector<2x4xf32>
    %cst_418 = arith.constant dense<0.000000e+00> : vector<2x72xf32>
    %654 = tpu.matmul %653, %651, %cst_418 {dimension_numbers = #tpu.dot_dimension_numbers<[1], [0], [0], [1], [0, 0, 1, 1], [], []>} : vector<2x4xf32>, vector<4x72xf32>, vector<2x72xf32> -> vector<2x72xf32>
    %c0_419 = arith.constant 0 : index
    %c2_420 = arith.constant 2 : index
    %655 = vector.load %arg11[%c0_419, %c2_420] : memref<16x128xf32, #tpu.memory_space<vmem>>, vector<4x72xf32>
    %656 = vector.broadcast %3 : vector<1x72xf32> to vector<4x72xf32>
    %657 = arith.mulf %655, %656 : vector<4x72xf32>
    %c1_421 = arith.constant 1 : index
    %c0_422 = arith.constant 0 : index
    %c0_423 = arith.constant 0 : index
    %658 = vector.load %arg5[%c1_421, %c0_422, %c0_423] : memref<9x2x4xf32, #tpu.memory_space<vmem>>, vector<1x2x4xf32>
    %659 = vector.shape_cast %658 : vector<1x2x4xf32> to vector<2x4xf32>
    %cst_424 = arith.constant dense<0.000000e+00> : vector<2x72xf32>
    %660 = tpu.matmul %659, %657, %cst_424 {dimension_numbers = #tpu.dot_dimension_numbers<[1], [0], [0], [1], [0, 0, 1, 1], [], []>} : vector<2x4xf32>, vector<4x72xf32>, vector<2x72xf32> -> vector<2x72xf32>
    %c0_425 = arith.constant 0 : index
    %c3_426 = arith.constant 3 : index
    %661 = vector.load %arg11[%c0_425, %c3_426] : memref<16x128xf32, #tpu.memory_space<vmem>>, vector<4x72xf32>
    %662 = vector.broadcast %4 : vector<1x72xf32> to vector<4x72xf32>
    %663 = arith.mulf %661, %662 : vector<4x72xf32>
    %c2_427 = arith.constant 2 : index
    %c0_428 = arith.constant 0 : index
    %c0_429 = arith.constant 0 : index
    %664 = vector.load %arg5[%c2_427, %c0_428, %c0_429] : memref<9x2x4xf32, #tpu.memory_space<vmem>>, vector<1x2x4xf32>
    %665 = vector.shape_cast %664 : vector<1x2x4xf32> to vector<2x4xf32>
    %cst_430 = arith.constant dense<0.000000e+00> : vector<2x72xf32>
    %666 = tpu.matmul %665, %663, %cst_430 {dimension_numbers = #tpu.dot_dimension_numbers<[1], [0], [0], [1], [0, 0, 1, 1], [], []>} : vector<2x4xf32>, vector<4x72xf32>, vector<2x72xf32> -> vector<2x72xf32>
    %c0_431 = arith.constant 0 : index
    %c7_432 = arith.constant 7 : index
    %667 = vector.load %arg11[%c0_431, %c7_432] : memref<16x128xf32, #tpu.memory_space<vmem>>, vector<4x72xf32>
    %668 = vector.broadcast %5 : vector<1x72xf32> to vector<4x72xf32>
    %669 = arith.mulf %667, %668 : vector<4x72xf32>
    %c3_433 = arith.constant 3 : index
    %c0_434 = arith.constant 0 : index
    %c0_435 = arith.constant 0 : index
    %670 = vector.load %arg5[%c3_433, %c0_434, %c0_435] : memref<9x2x4xf32, #tpu.memory_space<vmem>>, vector<1x2x4xf32>
    %671 = vector.shape_cast %670 : vector<1x2x4xf32> to vector<2x4xf32>
    %cst_436 = arith.constant dense<0.000000e+00> : vector<2x72xf32>
    %672 = tpu.matmul %671, %669, %cst_436 {dimension_numbers = #tpu.dot_dimension_numbers<[1], [0], [0], [1], [0, 0, 1, 1], [], []>} : vector<2x4xf32>, vector<4x72xf32>, vector<2x72xf32> -> vector<2x72xf32>
    %673 = arith.addf %654, %672 : vector<2x72xf32>
    %c0_437 = arith.constant 0 : index
    %c8_438 = arith.constant 8 : index
    %674 = vector.load %arg11[%c0_437, %c8_438] : memref<16x128xf32, #tpu.memory_space<vmem>>, vector<4x72xf32>
    %675 = vector.broadcast %6 : vector<1x72xf32> to vector<4x72xf32>
    %676 = arith.mulf %674, %675 : vector<4x72xf32>
    %c4_439 = arith.constant 4 : index
    %c0_440 = arith.constant 0 : index
    %c0_441 = arith.constant 0 : index
    %677 = vector.load %arg5[%c4_439, %c0_440, %c0_441] : memref<9x2x4xf32, #tpu.memory_space<vmem>>, vector<1x2x4xf32>
    %678 = vector.shape_cast %677 : vector<1x2x4xf32> to vector<2x4xf32>
    %cst_442 = arith.constant dense<0.000000e+00> : vector<2x72xf32>
    %679 = tpu.matmul %678, %676, %cst_442 {dimension_numbers = #tpu.dot_dimension_numbers<[1], [0], [0], [1], [0, 0, 1, 1], [], []>} : vector<2x4xf32>, vector<4x72xf32>, vector<2x72xf32> -> vector<2x72xf32>
    %680 = arith.addf %660, %679 : vector<2x72xf32>
    %c0_443 = arith.constant 0 : index
    %c9_444 = arith.constant 9 : index
    %681 = vector.load %arg11[%c0_443, %c9_444] : memref<16x128xf32, #tpu.memory_space<vmem>>, vector<4x72xf32>
    %682 = vector.broadcast %7 : vector<1x72xf32> to vector<4x72xf32>
    %683 = arith.mulf %681, %682 : vector<4x72xf32>
    %c5_445 = arith.constant 5 : index
    %c0_446 = arith.constant 0 : index
    %c0_447 = arith.constant 0 : index
    %684 = vector.load %arg5[%c5_445, %c0_446, %c0_447] : memref<9x2x4xf32, #tpu.memory_space<vmem>>, vector<1x2x4xf32>
    %685 = vector.shape_cast %684 : vector<1x2x4xf32> to vector<2x4xf32>
    %cst_448 = arith.constant dense<0.000000e+00> : vector<2x72xf32>
    %686 = tpu.matmul %685, %683, %cst_448 {dimension_numbers = #tpu.dot_dimension_numbers<[1], [0], [0], [1], [0, 0, 1, 1], [], []>} : vector<2x4xf32>, vector<4x72xf32>, vector<2x72xf32> -> vector<2x72xf32>
    %687 = arith.addf %666, %686 : vector<2x72xf32>
    %c0_449 = arith.constant 0 : index
    %c13_450 = arith.constant 13 : index
    %688 = vector.load %arg11[%c0_449, %c13_450] : memref<16x128xf32, #tpu.memory_space<vmem>>, vector<4x72xf32>
    %689 = vector.broadcast %8 : vector<1x72xf32> to vector<4x72xf32>
    %690 = arith.mulf %688, %689 : vector<4x72xf32>
    %c6_451 = arith.constant 6 : index
    %c0_452 = arith.constant 0 : index
    %c0_453 = arith.constant 0 : index
    %691 = vector.load %arg5[%c6_451, %c0_452, %c0_453] : memref<9x2x4xf32, #tpu.memory_space<vmem>>, vector<1x2x4xf32>
    %692 = vector.shape_cast %691 : vector<1x2x4xf32> to vector<2x4xf32>
    %cst_454 = arith.constant dense<0.000000e+00> : vector<2x72xf32>
    %693 = tpu.matmul %692, %690, %cst_454 {dimension_numbers = #tpu.dot_dimension_numbers<[1], [0], [0], [1], [0, 0, 1, 1], [], []>} : vector<2x4xf32>, vector<4x72xf32>, vector<2x72xf32> -> vector<2x72xf32>
    %694 = arith.addf %673, %693 : vector<2x72xf32>
    %c0_455 = arith.constant 0 : index
    %c14_456 = arith.constant 14 : index
    %695 = vector.load %arg11[%c0_455, %c14_456] : memref<16x128xf32, #tpu.memory_space<vmem>>, vector<4x72xf32>
    %696 = vector.broadcast %9 : vector<1x72xf32> to vector<4x72xf32>
    %697 = arith.mulf %695, %696 : vector<4x72xf32>
    %c7_457 = arith.constant 7 : index
    %c0_458 = arith.constant 0 : index
    %c0_459 = arith.constant 0 : index
    %698 = vector.load %arg5[%c7_457, %c0_458, %c0_459] : memref<9x2x4xf32, #tpu.memory_space<vmem>>, vector<1x2x4xf32>
    %699 = vector.shape_cast %698 : vector<1x2x4xf32> to vector<2x4xf32>
    %cst_460 = arith.constant dense<0.000000e+00> : vector<2x72xf32>
    %700 = tpu.matmul %699, %697, %cst_460 {dimension_numbers = #tpu.dot_dimension_numbers<[1], [0], [0], [1], [0, 0, 1, 1], [], []>} : vector<2x4xf32>, vector<4x72xf32>, vector<2x72xf32> -> vector<2x72xf32>
    %701 = arith.addf %680, %700 : vector<2x72xf32>
    %c0_461 = arith.constant 0 : index
    %c15_462 = arith.constant 15 : index
    %702 = vector.load %arg11[%c0_461, %c15_462] : memref<16x128xf32, #tpu.memory_space<vmem>>, vector<4x72xf32>
    %703 = vector.broadcast %10 : vector<1x72xf32> to vector<4x72xf32>
    %704 = arith.mulf %702, %703 : vector<4x72xf32>
    %c8_463 = arith.constant 8 : index
    %c0_464 = arith.constant 0 : index
    %c0_465 = arith.constant 0 : index
    %705 = vector.load %arg5[%c8_463, %c0_464, %c0_465] : memref<9x2x4xf32, #tpu.memory_space<vmem>>, vector<1x2x4xf32>
    %706 = vector.shape_cast %705 : vector<1x2x4xf32> to vector<2x4xf32>
    %cst_466 = arith.constant dense<0.000000e+00> : vector<2x72xf32>
    %707 = tpu.matmul %706, %704, %cst_466 {dimension_numbers = #tpu.dot_dimension_numbers<[1], [0], [0], [1], [0, 0, 1, 1], [], []>} : vector<2x4xf32>, vector<4x72xf32>, vector<2x72xf32> -> vector<2x72xf32>
    %708 = arith.addf %687, %707 : vector<2x72xf32>
    %c0_467 = arith.constant 0 : index
    %c29_468 = arith.constant 29 : index
    %709 = vector.load %arg1[%c0_467, %c29_468] : memref<16x32xf32, #tpu.memory_space<vmem>>, vector<2x1xf32>
    %710 = arith.addf %694, %701 : vector<2x72xf32>
    %711 = arith.addf %710, %708 : vector<2x72xf32>
    %712 = vector.broadcast %709 : vector<2x1xf32> to vector<2x72xf32>
    %713 = arith.addf %711, %712 : vector<2x72xf32>
    %cst_469 = arith.constant dense<0.000000e+00> : vector<2xf32>
    %714 = vector.multi_reduction <add>, %713, %cst_469 [1] : vector<2x72xf32> to vector<2xf32>
    %715 = vector.shape_cast %714 : vector<2xf32> to vector<2x1xf32>
    %716 = arith.mulf %713, %713 : vector<2x72xf32>
    %cst_470 = arith.constant dense<0.000000e+00> : vector<2xf32>
    %717 = vector.multi_reduction <add>, %716, %cst_470 [1] : vector<2x72xf32> to vector<2xf32>
    %718 = vector.shape_cast %717 : vector<2xf32> to vector<2x1xf32>
    %cst_471 = arith.constant 0.013888889 : f32
    %719 = vector.broadcast %cst_471 : f32 to vector<2x1xf32>
    %720 = arith.mulf %715, %719 : vector<2x1xf32>
    %cst_472 = arith.constant 0.013888889 : f32
    %721 = vector.broadcast %cst_472 : f32 to vector<2x1xf32>
    %722 = arith.mulf %718, %721 : vector<2x1xf32>
    %723 = arith.mulf %720, %720 : vector<2x1xf32>
    %724 = arith.subf %722, %723 : vector<2x1xf32>
    %cst_473 = arith.constant 0.000000e+00 : f32
    %725 = vector.broadcast %cst_473 : f32 to vector<2x1xf32>
    %726 = arith.maximumf %724, %725 : vector<2x1xf32>
    %c0_474 = arith.constant 0 : index
    %c30_475 = arith.constant 30 : index
    %727 = vector.load %arg1[%c0_474, %c30_475] : memref<16x32xf32, #tpu.memory_space<vmem>>, vector<2x1xf32>
    %c0_476 = arith.constant 0 : index
    %c31_477 = arith.constant 31 : index
    %728 = vector.load %arg1[%c0_476, %c31_477] : memref<16x32xf32, #tpu.memory_space<vmem>>, vector<2x1xf32>
    %729 = vector.broadcast %720 : vector<2x1xf32> to vector<2x72xf32>
    %730 = arith.subf %713, %729 : vector<2x72xf32>
    %cst_478 = arith.constant 9.99999974E-6 : f32
    %731 = vector.broadcast %cst_478 : f32 to vector<2x1xf32>
    %732 = arith.addf %726, %731 : vector<2x1xf32>
    %733 = math.rsqrt %732 : vector<2x1xf32>
    %734 = vector.broadcast %733 : vector<2x1xf32> to vector<2x72xf32>
    %735 = arith.mulf %730, %734 : vector<2x72xf32>
    %736 = vector.broadcast %727 : vector<2x1xf32> to vector<2x72xf32>
    %737 = arith.mulf %735, %736 : vector<2x72xf32>
    %738 = vector.broadcast %728 : vector<2x1xf32> to vector<2x72xf32>
    %739 = arith.addf %737, %738 : vector<2x72xf32>
    %cst_479 = arith.constant 0.000000e+00 : f32
    %740 = vector.broadcast %cst_479 : f32 to vector<2x72xf32>
    %741 = arith.maximumf %739, %740 : vector<2x72xf32>
    %c0_480 = arith.constant 0 : index
    %c0_481 = arith.constant 0 : index
    %742 = vector.load %arg8[%c0_480, %c0_481] : memref<1x37xf32, #tpu.memory_space<vmem>>, vector<1x37xf32>
    %743 = vector.extract_strided_slice %741 {offsets = [0, 0], sizes = [1, 36], strides = [1, 1]} : vector<2x72xf32> to vector<1x36xf32>
    %c0_482 = arith.constant 0 : index
    %c0_483 = arith.constant 0 : index
    %c0_484 = arith.constant 0 : index
    %744 = vector.load %arg7[%c0_482, %c0_483, %c0_484] : memref<2x36x37xf32, #tpu.memory_space<vmem>>, vector<1x36x37xf32>
    %745 = vector.shape_cast %744 : vector<1x36x37xf32> to vector<36x37xf32>
    %cst_485 = arith.constant dense<0.000000e+00> : vector<1x37xf32>
    %746 = tpu.matmul %743, %745, %cst_485 {dimension_numbers = #tpu.dot_dimension_numbers<[1], [0], [0], [1], [0, 0, 1, 1], [], []>} : vector<1x36xf32>, vector<36x37xf32>, vector<1x37xf32> -> vector<1x37xf32>
    %747 = arith.addf %742, %746 : vector<1x37xf32>
    %748 = vector.extract_strided_slice %741 {offsets = [1, 0], sizes = [1, 36], strides = [1, 1]} : vector<2x72xf32> to vector<1x36xf32>
    %c1_486 = arith.constant 1 : index
    %c0_487 = arith.constant 0 : index
    %c0_488 = arith.constant 0 : index
    %749 = vector.load %arg7[%c1_486, %c0_487, %c0_488] : memref<2x36x37xf32, #tpu.memory_space<vmem>>, vector<1x36x37xf32>
    %750 = vector.shape_cast %749 : vector<1x36x37xf32> to vector<36x37xf32>
    %cst_489 = arith.constant dense<0.000000e+00> : vector<1x37xf32>
    %751 = tpu.matmul %748, %750, %cst_489 {dimension_numbers = #tpu.dot_dimension_numbers<[1], [0], [0], [1], [0, 0, 1, 1], [], []>} : vector<1x36xf32>, vector<36x37xf32>, vector<1x37xf32> -> vector<1x37xf32>
    %752 = arith.addf %747, %751 : vector<1x37xf32>
    %c0_490 = arith.constant 0 : index
    %c0_491 = arith.constant 0 : index
    %753 = vector.load %arg10[%c0_490, %c0_491] : memref<2x37xf32, #tpu.memory_space<vmem>>, vector<1x37xf32>
    tpu.vector_store %arg10[%c0_490, %c0_491], %752 {strides = array<i32>} : memref<2x37xf32, #tpu.memory_space<vmem>>, vector<1x37xf32>,
    %c0_492 = arith.constant 0 : index
    %c0_493 = arith.constant 0 : index
    %754 = vector.load %arg8[%c0_492, %c0_493] : memref<1x37xf32, #tpu.memory_space<vmem>>, vector<1x37xf32>
    %755 = vector.extract_strided_slice %741 {offsets = [0, 36], sizes = [1, 36], strides = [1, 1]} : vector<2x72xf32> to vector<1x36xf32>
    %c0_494 = arith.constant 0 : index
    %c0_495 = arith.constant 0 : index
    %c0_496 = arith.constant 0 : index
    %756 = vector.load %arg7[%c0_494, %c0_495, %c0_496] : memref<2x36x37xf32, #tpu.memory_space<vmem>>, vector<1x36x37xf32>
    %757 = vector.shape_cast %756 : vector<1x36x37xf32> to vector<36x37xf32>
    %cst_497 = arith.constant dense<0.000000e+00> : vector<1x37xf32>
    %758 = tpu.matmul %755, %757, %cst_497 {dimension_numbers = #tpu.dot_dimension_numbers<[1], [0], [0], [1], [0, 0, 1, 1], [], []>} : vector<1x36xf32>, vector<36x37xf32>, vector<1x37xf32> -> vector<1x37xf32>
    %759 = arith.addf %754, %758 : vector<1x37xf32>
    %760 = vector.extract_strided_slice %741 {offsets = [1, 36], sizes = [1, 36], strides = [1, 1]} : vector<2x72xf32> to vector<1x36xf32>
    %c1_498 = arith.constant 1 : index
    %c0_499 = arith.constant 0 : index
    %c0_500 = arith.constant 0 : index
    %761 = vector.load %arg7[%c1_498, %c0_499, %c0_500] : memref<2x36x37xf32, #tpu.memory_space<vmem>>, vector<1x36x37xf32>
    %762 = vector.shape_cast %761 : vector<1x36x37xf32> to vector<36x37xf32>
    %cst_501 = arith.constant dense<0.000000e+00> : vector<1x37xf32>
    %763 = tpu.matmul %760, %762, %cst_501 {dimension_numbers = #tpu.dot_dimension_numbers<[1], [0], [0], [1], [0, 0, 1, 1], [], []>} : vector<1x36xf32>, vector<36x37xf32>, vector<1x37xf32> -> vector<1x37xf32>
    %764 = arith.addf %759, %763 : vector<1x37xf32>
    %c1_502 = arith.constant 1 : index
    %c0_503 = arith.constant 0 : index
    %765 = vector.load %arg10[%c1_502, %c0_503] : memref<2x37xf32, #tpu.memory_space<vmem>>, vector<1x37xf32>
    tpu.vector_store %arg10[%c1_502, %c0_503], %764 {strides = array<i32>} : memref<2x37xf32, #tpu.memory_space<vmem>>, vector<1x37xf32>,
    return
  }
}

</mosaic_0001>

<bundles_post_ra>
// kernel: squeeze.1
= control target key start
LH: loop header
LB: loop body
LE: loop exit
PB: predicated region body
PF: predicated region fallthrough
CT: control target
= control target key end

     0   :  { %s130_s8 = smov 116   ;;  %s131_s9 = smov 120   ;;  %vm7_vm0 = vcmask 31744   ;;  %s221_s0 = inlined_call_operand.vmem [shape: f32[2,1,64], index: 0, kind: input, shape index: {}]   ;;  %s222_s1 = inlined_call_operand.vmem [shape: f32[2,16,4], index: 1, kind: output, shape index: {}]  }
   0x1   :  { %v4_v0 = vld [vmem:[%s221_s0] sm:$0x3]  ;;  %s129_s0 = smov 124   ;;  %s132_s10 = smov 112  }
   0x2   :  { %5 = vst [vmem:[#allocation0] sm:$0x3] %v4_v0  ;;  %s133_s11 = smov 108   ;;  %s134_s12 = smov 104  }
   0x3   :  { %s135_s13 = smov 100   ;;  %s136_s14 = smov 96  }
   0x4   :  { %s137_s17 = smov 92   ;;  %s138_s18 = smov 88  }
   0x5   :  { %s139_s19 = smov 84   ;;  %s140_s20 = smov 80  }
   0x6   :  { %s141_s21 = smov 76   ;;  %s142_s22 = smov 72  }
   0x7   :  { %s143_s23 = smov 68  }
   0x9   :  { %v9_v1 = vld [vmem:[#allocation0] sm:$0x3]  }
   0xa   :  { %v21_v2 = vld [vmem:[#allocation0] sm:$0x3]   ;;  %10 = vrot.lane.b32.xlu0 %v9_v1, %s129_s0 }
   0xb   :  { %22 = vrot.lane.b32.xlu1 %v21_v2, %s130_s8  ;;  %v15_v3 = vld [vmem:[#allocation0] sm:$0x3]  }
   0xc   :  { %v27_v4 = vld [vmem:[#allocation0] sm:$0x3]  }
   0xd   :  { %v33_v5 = vld [vmem:[#allocation0] sm:$0x3]  }
   0xe   :  { %16 = vrot.lane.b32.xlu0 %v15_v3, %s131_s9  ;;  %v39_v6 = vld [vmem:[#allocation0] sm:$0x3]  }
   0xf   :  { %28 = vrot.lane.b32.xlu1 %v27_v4, %s132_s10  ;;  %v45_v7 = vld [vmem:[#allocation0] sm:$0x3]  }
  0x10   :  { %v51_v8 = vld [vmem:[#allocation0] sm:$0x3]  }
  0x11   :  { %v57_v9 = vld [vmem:[#allocation0] sm:$0x3]  }
  0x12   :  { %34 = vrot.lane.b32.xlu0 %v33_v5, %s133_s11  ;;  %v63_v10 = vld [vmem:[#allocation0] sm:$0x3]  }
  0x13   :  { %40 = vrot.lane.b32.xlu1 %v39_v6, %s134_s12  ;;  %v6_v11 = vld [vmem:[#allocation0] sm:$0x3]  }
  0x14   :  { %8 = vst.msk [vmem:[%s222_s1] ss:$16 sm:$0x3] %vm7_vm0, %v6_v11   ;;  %v69_v12 = vld [vmem:[#allocation0] sm:$0x3]  }
  0x15   :  { %v75_v13 = vld [vmem:[#allocation0] sm:$0x3]  }
  0x16   :  { %46 = vrot.lane.b32.xlu0 %v45_v7, %s135_s13  ;;  %v81_v14 = vld [vmem:[#allocation0] sm:$0x3]  }
  0x17   :  { %52 = vrot.lane.b32.xlu1 %v51_v8, %s136_s14  ;;  %v87_v15 = vld [vmem:[#allocation0] sm:$0x3]  }
  0x18   :  { %v93_v16 = vld [vmem:[#allocation0] sm:$0x3]  }
  0x1a   :  { %58 = vrot.lane.b32.xlu0 %v57_v9, %s137_s17 }
  0x1b   :  { %64 = vrot.lane.b32.xlu1 %v63_v10, %s138_s18 }
  0x1e   :  { %70 = vrot.lane.b32.xlu0 %v69_v12, %s139_s19 }
  0x1f   :  { %76 = vrot.lane.b32.xlu1 %v75_v13, %s140_s20 }
  0x22   :  { %82 = vrot.lane.b32.xlu0 %v81_v14, %s141_s21 }
  0x23   :  { %88 = vrot.lane.b32.xlu1 %v87_v15, %s142_s22 }
  0x26   :  { %94 = vrot.lane.b32.xlu0 %v93_v16, %s143_s23 }
  0x7c   :  { %v11_v17 = vpop.permute.xlu0 %10  }
  0x7d   :  { %v23_v18 = vpop.permute.xlu1 %22   ;;  %99 = vst.msk [vmem:[%s222_s1 + $0x1] ss:$16 sm:$0x3] %vm7_vm0, %v11_v17  }
  0x7e   :  { %101 = vst.msk [vmem:[%s222_s1 + $0x3] ss:$16 sm:$0x3] %vm7_vm0, %v23_v18  }
  0x80   :  { %v17_v19 = vpop.permute.xlu0 %16  }
  0x81   :  { %v29_v20 = vpop.permute.xlu1 %28   ;;  %100 = vst.msk [vmem:[%s222_s1 + $0x2] ss:$16 sm:$0x3] %vm7_vm0, %v17_v19  }
  0x82   :  { %102 = vst.msk [vmem:[%s222_s1 + $0x4] ss:$16 sm:$0x3] %vm7_vm0, %v29_v20  }
  0x84   :  { %v35_v21 = vpop.permute.xlu0 %34  }
  0x85   :  { %v41_v22 = vpop.permute.xlu1 %40   ;;  %103 = vst.msk [vmem:[%s222_s1 + $0x5] ss:$16 sm:$0x3] %vm7_vm0, %v35_v21  }
  0x86   :  { %104 = vst.msk [vmem:[%s222_s1 + $0x6] ss:$16 sm:$0x3] %vm7_vm0, %v41_v22  }
  0x88   :  { %v47_v23 = vpop.permute.xlu0 %46  }
  0x89   :  { %v53_v24 = vpop.permute.xlu1 %52   ;;  %105 = vst.msk [vmem:[%s222_s1 + $0x7] ss:$16 sm:$0x3] %vm7_vm0, %v47_v23  }
  0x8a   :  { %106 = vst.msk [vmem:[%s222_s1 + $0x8] ss:$16 sm:$0x3] %vm7_vm0, %v53_v24  }
  0x8c   :  { %v59_v25 = vpop.permute.xlu0 %58  }
  0x8d   :  { %v65_v26 = vpop.permute.xlu1 %64   ;;  %107 = vst.msk [vmem:[%s222_s1 + $0x9] ss:$16 sm:$0x3] %vm7_vm0, %v59_v25  }
  0x8e   :  { %108 = vst.msk [vmem:[%s222_s1 + $0xa] ss:$16 sm:$0x3] %vm7_vm0, %v65_v26  }
  0x90   :  { %v71_v27 = vpop.permute.xlu0 %70  }
  0x91   :  { %v77_v28 = vpop.permute.xlu1 %76   ;;  %109 = vst.msk [vmem:[%s222_s1 + $0xb] ss:$16 sm:$0x3] %vm7_vm0, %v71_v27  }
  0x92   :  { %110 = vst.msk [vmem:[%s222_s1 + $0xc] ss:$16 sm:$0x3] %vm7_vm0, %v77_v28  }
  0x94   :  { %v83_v29 = vpop.permute.xlu0 %82  }
  0x95   :  { %v89_v30 = vpop.permute.xlu1 %88   ;;  %111 = vst.msk [vmem:[%s222_s1 + $0xd] ss:$16 sm:$0x3] %vm7_vm0, %v83_v29  }
  0x96   :  { %112 = vst.msk [vmem:[%s222_s1 + $0xe] ss:$16 sm:$0x3] %vm7_vm0, %v89_v30  }
  0x98   :  { %v95_v31 = vpop.permute.xlu0 %94  }
  0x99   :  { %113 = vst.msk [vmem:[%s222_s1 + $0xf] ss:$16 sm:$0x3] %vm7_vm0, %v95_v31  }

// kernel: policy_head_forward.1
= control target key start
LH: loop header
LB: loop body
LE: loop exit
PB: predicated region body
PF: predicated region fallthrough
CT: control target
= control target key end

     0   :  { %vm49_vm0 = vcmask 64512   ;;  %v6882_v5 = vmov 0   ;;  %s7875_s0 = inlined_call_operand.vmem [shape: f32[16,8], index: 0, kind: input, shape index: {}]   ;;  %s7876_s1 = inlined_call_operand.vmem [shape: f32[16,32], index: 1, kind: input, shape index: {}]   ;;  %s7877_s2 = inlined_call_operand.vmem [shape: f32[4,16,16], index: 2, kind: input, shape index: {}]   ;;  %s7878_s3 = inlined_call_operand.vmem [shape: f32[9,4,16], index: 3, kind: input, shape index: {}]   ;;  %s7879_s4 = inlined_call_operand.vmem [shape: f32[36,4,4], index: 4, kind: input, shape index: {}]   ;;  %s7880_s5 = inlined_call_operand.vmem [shape: f32[9,2,4], index: 5, kind: input, shape index: {}]   ;;  %s7881_s6 = inlined_call_operand.vmem [shape: f32[8,72], index: 6, kind: input, shape index: {}]   ;;  %s7882_s7 = inlined_call_operand.vmem [shape: f32[2,36,37], index: 7, kind: input, shape index: {}]   ;;  %s7883_s8 = inlined_call_operand.vmem [shape: f32[1,37], index: 8, kind: input, shape index: {}]   ;;  %s7884_s9 = inlined_call_operand.vmem [shape: f32[9,72], index: 9, kind: input, shape index: {}]   ;;  %s7885_s10 = inlined_call_operand.hbm [shape: f32[2,37], index: 10, kind: output, shape index: {}]  }
   0x1   :  { %v6995_v0 = vld [vmem:[%s7875_s0] sm:$0xff]  ;;  %v7000_v1 = vld [vmem:[%s7875_s0 + $0x8] sm:$0xff]  ;;  %6744 = vset.pattern.permute.xlu1 %v6882_v5  ;;  %6743 = vset.pattern.permute.xlu0 %v6882_v5 }
   0x2   :  { %v50_v2 = vsel %vm49_vm0, %v6995_v0, 0.0  ;;  %v56_v3 = vmul.f32 %v6995_v0, %v6995_v0  ;;  %v57_v4 = vmul.f32 %v7000_v1, %v7000_v1 }
   0x3   :  { %15 = vsyncpa [#allocation4], 0  ;;  %51 = vadd.xlane.f32.xlu0 %v50_v2  ;;  %v53_v7 = vsel %vm49_vm0, %v7000_v1, 0.0  ;;  %v7015_v9 = vld [vmem:[%s7876_s1 + $0x8] sm:$0xff]  ;;  %v7021_v10 = vld [vmem:[%s7876_s1] sm:$0xff]  ;;  %v6883_v11 = vmov 1  }
   0x4   :  { %v58_v6 = vsel %vm49_vm0, %v56_v3, 0.0  ;;  %v61_v8 = vsel %vm49_vm0, %v57_v4, 0.0  ;;  %v108_v12 = vld [vmem:[%s7877_s2] sm:$0xff]  ;;  %vm118_vm1 = vcmask 130048   ;;  %v6884_v13 = vmov 2   ;;  %v109_v49 = vld [vmem:[%s7877_s2 + $0x8] sm:$0xff] }
   0x5   :  { %59 = vadd.xlane.f32.xlu1 %v58_v6  ;;  %6246 = vmatprep.mubr.msk.f32.mxu0 %vm118_vm1, %v108_v12  ;;  %v6885_v14 = vmov 3   ;;  %v6886_v15 = vmov 4   ;;  %v5891_v62 = vld [vmem:[%s7877_s2 + $0x10] sm:$0xff]  ;;  %v6887_v63 = vmov 5   ;;  %v6888_v2 = vmov 6   ;;  %s6896_s17 = smov 2  }
   0x6   :  { %6253 = vmatprep.mubr.msk.f32.mxu1 %vm118_vm1, %v5891_v62  ;;  %s6897_s20 = smov 3   ;;  %s6898_s23 = smov 14   ;;  %vm784_vm2 = vcmask 654400   ;;  %vm6907_vm3 = vmmov 0   ;;  %vm1637_vm4 = vcmask 584704   ;;  %vm1669_vm5 = vcmask 650304  }
   0x7   :  { %54 = vadd.xlane.f32.xlu0 %v53_v7  ;;  %s6900_s24 = smov 8   ;;  %s6901_s27 = smov 7   ;;  %vm1690_vm6 = vcmask 1043456   ;;  %vm1686_vm7 = vcmask 31744   ;;  %vm5510_vm8 = vcmask 582656   ;;  %vm5544_vm9 = vcmask 293888  }
   0x8   :  { %s6902_s30 = smov 1   ;;  %s6903_s15 = smov 9   ;;  %vm5705_vm10 = vcmask 294912  }
   0x9   :  { %62 = vadd.xlane.f32.xlu1 %v61_v8  ;;  %s6905_s18 = smov 15   ;;  %s6909_s19 = smov 127  }
   0xa   :  { %s6911_s21 = smov 126   ;;  %s6912_s22 = smov 119  }
   0xb   :  { %s6915_s25 = smov 115   ;;  %s6916_s26 = smov 114  }
   0xc   :  { %s6917_s29 = smov 113   ;;  %s6936_s12 = smov [#allocation3]  }
  0x1a   :  { %91 = vperm.xlu1 %6744, %v7015_v9  }
  0x1d   :  { %86 = vperm.xlu0 %6743, %v7021_v10  }
  0x1e   :  { %6745 = vset.pattern.permute.xlu1 %v6883_v11 }
  0x1f   :  { %97 = vperm.xlu1 %6745, %v7021_v10  }
  0x21   :  { %6747 = vset.pattern.permute.xlu0 %v6885_v14 }
  0x23   :  { %101 = vperm.xlu1 %6745, %v7015_v9  }
  0x27   :  { %6746 = vset.pattern.permute.xlu1 %v6884_v13 }
  0x28   :  { %111 = vperm.xlu1 %6746, %v7021_v10  }
  0x2c   :  { %115 = vperm.xlu1 %6746, %v7015_v9  }
  0x30   :  { %6748 = vset.pattern.permute.xlu1 %v6885_v14 }
  0x31   :  { %237 = vperm.xlu1 %6748, %v7015_v9  }
  0x35   :  { %6749 = vset.pattern.permute.xlu1 %v6886_v15 }
  0x36   :  { %243 = vperm.xlu1 %6749, %v7021_v10  }
  0x90   :  { %v52_v16 = vpop.xlane.xlu0 %51 }
  0x91   :  { %v64_v17 = vmul.f32 0.125, %v52_v16 }
  0x92   :  { %v60_v18 = vpop.xlane.xlu1 %59 }
  0x93   :  { %v68_v19 = vmul.f32 %v64_v17, %v64_v17  ;;  %v66_v20 = vmul.f32 0.125, %v60_v18  ;;  %v76_v33 = vsub.f32 %v6995_v0, %v64_v17 }
  0x94   :  { %v55_v21 = vpop.xlane.xlu0 %54 }
  0x95   :  { %v70_v22 = vsub.f32 %v66_v20, %v68_v19  ;;  %v65_v23 = vmul.f32 0.125, %v55_v21 }
  0x96   :  { %v63_v24 = vpop.xlane.xlu1 %62 }
  0x97   :  { %v72_v25 = vmax.f32 %v70_v22, 0.0  ;;  %v69_v26 = vmul.f32 %v65_v23, %v65_v23  ;;  %v67_v27 = vmul.f32 0.125, %v63_v24  ;;  %v77_v38 = vsub.f32 %v7000_v1, %v65_v23 }
  0x99   :  { %v78_v28 = vadd.f32 1e-05, %v72_v25  ;;  %v71_v29 = vsub.f32 %v67_v27, %v69_v26 }
  0x9a   :  { %v92_v32 = vpop.permute.xlu1 %91 }
  0x9b   :  { %6826 = vrsqrt.f32 %v78_v28  ;;  %v73_v30 = vmax.f32 %v71_v29, 0.0 }
  0x9c   :  { %v87_v35 = vpop.permute.xlu0 %86 }
  0x9d   :  { %v79_v31 = vadd.f32 1e-05, %v73_v30 }
  0x9e   :  { %v98_v37 = vpop.permute.xlu1 %97 }
  0x9f   :  { %6828 = vrsqrt.f32 %v79_v31 }
  0xa2   :  { %v102_v44 = vpop.permute.xlu1 %101 }
  0xa5   :  { %v6827_v34 = vpop.eup %6826 }
  0xa6   :  { %v82_v36 = vmul.f32 %v6827_v34, %v76_v33 }
  0xa7   :  { %v112_v50 = vpop.permute.xlu1 %111 }
  0xa8   :  { %v94_v39 = vmul.f32 %v87_v35, %v82_v36 }
  0xa9   :  { %v6829_v40 = vpop.eup %6828 }
  0xaa   :  { %v83_v41 = vmul.f32 %v6829_v40, %v77_v38  ;;  %v104_v43 = vadd.f32 %v98_v37, %v94_v39  ;;  %v5892_v38 = vld [vmem:[%s7877_s2 + $0x18] sm:$0xff]  ;;  %v6889_v39 = vmov 7  }
  0xab   :  { %v116_v51 = vpop.permute.xlu1 %115 }
  0xac   :  { %v95_v42 = vmul.f32 %v92_v32, %v83_v41  ;;  %v106_v46 = vmax.f32 %v104_v43, 0.0 }
  0xae   :  { %v105_v45 = vadd.f32 %v102_v44, %v95_v42 }
  0xb0   :  { %v107_v47 = vmax.f32 %v105_v45, 0.0  ;;  %v238_v3 = vpop.permute.xlu1 %237 }
  0xb2   :  { %v6615_v48 = vpack.c.bf16 %v107_v47, %v106_v46 }
  0xb4   :  { %6616 = vmatprep.subr.bf16.mxu0 %v6615_v48 }
  0xb5   :  { %6618 = vmatpush3.bf16.msra.mxu0 %v6615_v48  ;;  %v244_v4 = vpop.permute.xlu1 %243 }
  0xb8   :  { %6247 = vmatmul.mubr.msk.f32.vlgmr.msra.gmra.mrb[0].mxu0 %vm118_vm1, %v109_v49 }
 0x18b   :  { %v6248_v52 = vpop.f32.mrb[0].mxu0 }
 0x18c   :  { %v197_v53 = vadd.f32 %v6248_v52, %v116_v51  ;;  %v191_v54 = vpop.f32.mrb[1].mxu0  ;;  %v5895_v52 = vld [vmem:[%s7877_s2 + $0x20] sm:$0xff] }
 0x18d   :  { %v192_v55 = vadd.f32 %v191_v54, %v112_v50  ;;  %6260 = vmatprep.mubr.msk.f32.mxu0 %vm118_vm1, %v5895_v52  ;;  %v6891_v54 = vmov 9  }
 0x18e   :  { %v203_v56 = vsel %vm49_vm0, %v197_v53, 0.0  ;;  %v207_v58 = vmul.f32 %v197_v53, %v197_v53 }
 0x18f   :  { %204 = vadd.xlane.f32.xlu0 %v203_v56  ;;  %v200_v57 = vsel %vm49_vm0, %v192_v55, 0.0  ;;  %v206_v60 = vmul.f32 %v192_v55, %v192_v55 }
 0x190   :  { %201 = vadd.xlane.f32.xlu1 %v200_v57  ;;  %v211_v59 = vsel %vm49_vm0, %v207_v58, 0.0 }
 0x191   :  { %v208_v61 = vsel %vm49_vm0, %v206_v60, 0.0 }
 0x194   :  { %212 = vadd.xlane.f32.xlu1 %v211_v59 }
 0x198   :  { %209 = vadd.xlane.f32.xlu1 %v208_v61 }
 0x1a5   :  { %233 = vperm.xlu0 %6747, %v7021_v10  }
 0x1a9   :  { %247 = vperm.xlu1 %6749, %v7015_v9   ;;  %6752 = vset.pattern.permute.xlu0 %v6888_v2 }
 0x1ad   :  { %6750 = vset.pattern.permute.xlu1 %v6887_v63 }
 0x1ae   :  { %258 = vperm.xlu1 %6750, %v7021_v10  }
 0x1b2   :  { %262 = vperm.xlu1 %6750, %v7015_v9  }
 0x1b6   :  { %6751 = vset.pattern.permute.xlu1 %v6888_v2 }
 0x1b7   :  { %381 = vperm.xlu1 %6751, %v7021_v10  }
 0x1bb   :  { %6753 = vset.pattern.permute.xlu1 %v6889_v39 }
 0x21c   :  { %v205_v5 = vpop.xlane.xlu0 %204 }
 0x21d   :  { %v202_v6 = vpop.xlane.xlu1 %201  ;;  %v215_v7 = vmul.f32 0.125, %v205_v5 }
 0x21e   :  { %v214_v12 = vmul.f32 0.125, %v202_v6 }
 0x21f   :  { %v219_v11 = vmul.f32 %v215_v7, %v215_v7  ;;  %v225_v23 = vsub.f32 %v197_v53, %v215_v7  ;;  %v6890_v53 = vmov 8  }
 0x220   :  { %v218_v16 = vmul.f32 %v214_v12, %v214_v12  ;;  %v224_v26 = vsub.f32 %v192_v55, %v214_v12  ;;  %v6892_v55 = vmov 10  }
 0x221   :  { %v213_v8 = vpop.xlane.xlu1 %212 }
 0x222   :  { %v217_v13 = vmul.f32 0.125, %v213_v8 }
 0x224   :  { %v221_v14 = vsub.f32 %v217_v13, %v219_v11  ;;  %v234_v29 = vpop.permute.xlu0 %233 }
 0x225   :  { %v210_v15 = vpop.xlane.xlu1 %209 }
 0x226   :  { %v223_v17 = vmax.f32 %v221_v14, 0.0  ;;  %v216_v18 = vmul.f32 0.125, %v210_v15 }
 0x228   :  { %v227_v19 = vadd.f32 1e-05, %v223_v17  ;;  %v220_v20 = vsub.f32 %v216_v18, %v218_v16 }
 0x229   :  { %v248_v31 = vpop.permute.xlu1 %247 }
 0x22a   :  { %6830 = vrsqrt.f32 %v227_v19  ;;  %v222_v21 = vmax.f32 %v220_v20, 0.0 }
 0x22c   :  { %v226_v22 = vadd.f32 1e-05, %v222_v21 }
 0x22d   :  { %v259_v40 = vpop.permute.xlu1 %258 }
 0x22e   :  { %6832 = vrsqrt.f32 %v226_v22 }
 0x231   :  { %v263_v41 = vpop.permute.xlu1 %262 }
 0x234   :  { %v6831_v24 = vpop.eup %6830 }
 0x235   :  { %v231_v25 = vmul.f32 %v6831_v24, %v225_v23 }
 0x236   :  { %v382_v59 = vpop.permute.xlu1 %381 }
 0x237   :  { %v241_v27 = vmul.f32 %v238_v3, %v231_v25 }
 0x238   :  { %v6833_v28 = vpop.eup %6832 }
 0x239   :  { %v230_v30 = vmul.f32 %v6833_v28, %v224_v26  ;;  %v251_v32 = vadd.f32 %v248_v31, %v241_v27 }
 0x23b   :  { %v240_v33 = vmul.f32 %v234_v29, %v230_v30  ;;  %v253_v35 = vmax.f32 %v251_v32, 0.0  ;;  %v5896_v29 = vld [vmem:[%s7877_s2 + $0x28] sm:$0xff] }
 0x23d   :  { %v250_v34 = vadd.f32 %v244_v4, %v240_v33 }
 0x23f   :  { %v252_v36 = vmax.f32 %v250_v34, 0.0 }
 0x241   :  { %v6619_v37 = vpack.c.bf16 %v253_v35, %v252_v36 }
 0x243   :  { %6620 = vmatprep.subr.bf16.mxu1 %v6619_v37 }
 0x244   :  { %6622 = vmatpush3.bf16.msra.mxu1 %v6619_v37 }
 0x247   :  { %6254 = vmatmul.mubr.msk.f32.vlgmr.msra.gmra.mrb[0].mxu1 %vm118_vm1, %v5892_v38 }
 0x31a   :  { %v6255_v42 = vpop.f32.mrb[0].mxu1 }
 0x31b   :  { %v343_v43 = vadd.f32 %v6255_v42, %v263_v41  ;;  %v337_v44 = vpop.f32.mrb[1].mxu1  ;;  %v5899_v42 = vld [vmem:[%s7877_s2 + $0x30] sm:$0xff] }
 0x31c   :  { %v338_v45 = vadd.f32 %v337_v44, %v259_v40  ;;  %6267 = vmatprep.mubr.msk.f32.mxu1 %vm118_vm1, %v5899_v42  ;;  %v6894_v44 = vmov 12  }
 0x31d   :  { %v7058_v46 = vadd.f32 %v343_v43, %v7000_v1  ;;  %v6893_v43 = vmov 11  }
 0x31e   :  { %v7061_v47 = vadd.f32 %v338_v45, %v6995_v0  ;;  %v6895_v45 = vmov 13  }
 0x31f   :  { %v351_v48 = vsel %vm49_vm0, %v7058_v46, 0.0  ;;  %v355_v49 = vmul.f32 %v7058_v46, %v7058_v46 }
 0x320   :  { %352 = vadd.xlane.f32.xlu0 %v351_v48  ;;  %v348_v50 = vsel %vm49_vm0, %v7061_v47, 0.0  ;;  %v354_v0 = vmul.f32 %v7061_v47, %v7061_v47 }
 0x321   :  { %349 = vadd.xlane.f32.xlu1 %v348_v50  ;;  %v359_v51 = vsel %vm49_vm0, %v355_v49, 0.0 }
 0x322   :  { %v356_v1 = vsel %vm49_vm0, %v354_v0, 0.0 }
 0x324   :  { %360 = vadd.xlane.f32.xlu0 %v359_v51 }
 0x332   :  { %391 = vperm.xlu1 %6753, %v7021_v10  }
 0x33a   :  { %385 = vperm.xlu0 %6752, %v7015_v9  }
 0x33e   :  { %6756 = vset.pattern.permute.xlu0 %v6891_v54 }
 0x356   :  { %357 = vadd.xlane.f32.xlu1 %v356_v1 }
 0x367   :  { %395 = vperm.xlu1 %6753, %v7015_v9  }
 0x36b   :  { %6754 = vset.pattern.permute.xlu1 %v6890_v53 }
 0x36c   :  { %406 = vperm.xlu1 %6754, %v7021_v10  }
 0x370   :  { %410 = vperm.xlu1 %6754, %v7015_v9  }
 0x374   :  { %6755 = vset.pattern.permute.xlu1 %v6891_v54 }
 0x375   :  { %527 = vperm.xlu1 %6755, %v7021_v10  }
 0x379   :  { %6757 = vset.pattern.permute.xlu1 %v6892_v55 }
 0x37a   :  { %537 = vperm.xlu1 %6757, %v7021_v10  }
 0x3ad   :  { %v353_v56 = vpop.xlane.xlu0 %352 }
 0x3ae   :  { %v363_v58 = vmul.f32 0.125, %v353_v56  ;;  %v350_v62 = vpop.xlane.xlu1 %349 }
 0x3af   :  { %v362_v4 = vmul.f32 0.125, %v350_v62 }
 0x3b0   :  { %v367_v61 = vmul.f32 %v363_v58, %v363_v58  ;;  %v373_v15 = vsub.f32 %v7058_v46, %v363_v58 }
 0x3b1   :  { %v361_v57 = vpop.xlane.xlu0 %360  ;;  %v366_v7 = vmul.f32 %v362_v4, %v362_v4  ;;  %v372_v18 = vsub.f32 %v7061_v47, %v362_v4 }
 0x3b2   :  { %v365_v60 = vmul.f32 0.125, %v361_v57  ;;  %v392_v3 = vpop.permute.xlu1 %391 }
 0x3b4   :  { %v369_v63 = vsub.f32 %v365_v60, %v367_v61 }
 0x3b6   :  { %v371_v2 = vmax.f32 %v369_v63, 0.0 }
 0x3b8   :  { %v375_v5 = vadd.f32 1e-05, %v371_v2 }
 0x3b9   :  { %v386_v17 = vpop.permute.xlu0 %385 }
 0x3ba   :  { %6834 = vrsqrt.f32 %v375_v5 }
 0x3c4   :  { %v6835_v14 = vpop.eup %6834 }
 0x3c5   :  { %v379_v16 = vmul.f32 %v6835_v14, %v373_v15 }
 0x3c7   :  { %v389_v21 = vmul.f32 %v386_v17, %v379_v16 }
 0x3e3   :  { %v358_v6 = vpop.xlane.xlu1 %357 }
 0x3e4   :  { %v364_v8 = vmul.f32 0.125, %v358_v6 }
 0x3e6   :  { %v368_v11 = vsub.f32 %v364_v8, %v366_v7 }
 0x3e7   :  { %v396_v20 = vpop.permute.xlu1 %395 }
 0x3e8   :  { %v370_v12 = vmax.f32 %v368_v11, 0.0  ;;  %v399_v23 = vadd.f32 %v396_v20, %v389_v21 }
 0x3ea   :  { %v374_v13 = vadd.f32 1e-05, %v370_v12  ;;  %v401_v26 = vmax.f32 %v399_v23, 0.0 }
 0x3eb   :  { %v407_v30 = vpop.permute.xlu1 %406 }
 0x3ec   :  { %6836 = vrsqrt.f32 %v374_v13 }
 0x3ef   :  { %v411_v31 = vpop.permute.xlu1 %410 }
 0x3f4   :  { %v528_v48 = vpop.permute.xlu1 %527 }
 0x3f6   :  { %v6837_v19 = vpop.eup %6836 }
 0x3f7   :  { %v378_v22 = vmul.f32 %v6837_v19, %v372_v18  ;;  %v5900_v19 = vld [vmem:[%s7877_s2 + $0x38] sm:$0xff] }
 0x3f9   :  { %v388_v24 = vmul.f32 %v382_v59, %v378_v22  ;;  %v538_v49 = vpop.permute.xlu1 %537 }
 0x3fb   :  { %v398_v25 = vadd.f32 %v392_v3, %v388_v24 }
 0x3fd   :  { %v400_v27 = vmax.f32 %v398_v25, 0.0 }
 0x3ff   :  { %v6623_v28 = vpack.c.bf16 %v401_v26, %v400_v27 }
 0x401   :  { %6624 = vmatprep.subr.bf16.mxu0 %v6623_v28 }
 0x402   :  { %6626 = vmatpush3.bf16.msra.mxu0 %v6623_v28 }
 0x405   :  { %6261 = vmatmul.mubr.msk.f32.vlgmr.msra.gmra.mrb[2].mxu0 %vm118_vm1, %v5896_v29 }
 0x4d8   :  { %v6262_v32 = vpop.f32.mrb[2].mxu0 }
 0x4d9   :  { %v491_v33 = vadd.f32 %v6262_v32, %v411_v31  ;;  %v485_v34 = vpop.f32.mrb[3].mxu0 }
 0x4da   :  { %v486_v35 = vadd.f32 %v485_v34, %v407_v30 }
 0x4db   :  { %v497_v36 = vsel %vm49_vm0, %v491_v33, 0.0  ;;  %v501_v38 = vmul.f32 %v491_v33, %v491_v33 }
 0x4dc   :  { %498 = vadd.xlane.f32.xlu0 %v497_v36  ;;  %v494_v37 = vsel %vm49_vm0, %v486_v35, 0.0  ;;  %v500_v40 = vmul.f32 %v486_v35, %v486_v35 }
 0x4dd   :  { %495 = vadd.xlane.f32.xlu1 %v494_v37  ;;  %v505_v39 = vsel %vm49_vm0, %v501_v38, 0.0 }
 0x4de   :  { %v502_v41 = vsel %vm49_vm0, %v500_v40, 0.0 }
 0x4e1   :  { %506 = vadd.xlane.f32.xlu1 %v505_v39 }
 0x4e5   :  { %503 = vadd.xlane.f32.xlu1 %v502_v41 }
 0x4f2   :  { %531 = vperm.xlu0 %6756, %v7015_v9  }
 0x4f6   :  { %541 = vperm.xlu1 %6757, %v7015_v9   ;;  %6759 = vset.pattern.permute.xlu0 %v6894_v44 }
 0x4fa   :  { %6758 = vset.pattern.permute.xlu1 %v6893_v43 }
 0x4fb   :  { %552 = vperm.xlu1 %6758, %v7021_v10  }
 0x4ff   :  { %556 = vperm.xlu1 %6758, %v7015_v9  }
 0x503   :  { %6760 = vset.pattern.permute.xlu1 %v6894_v44 }
 0x504   :  { %679 = vperm.xlu1 %6760, %v7015_v9  }
 0x508   :  { %6761 = vset.pattern.permute.xlu1 %v6895_v45 }
 0x509   :  { %685 = vperm.xlu1 %6761, %v7021_v10  }
 0x569   :  { %v499_v50 = vpop.xlane.xlu0 %498 }
 0x56a   :  { %v496_v51 = vpop.xlane.xlu1 %495  ;;  %v509_v0 = vmul.f32 0.125, %v499_v50 }
 0x56b   :  { %v508_v53 = vmul.f32 0.125, %v496_v51 }
 0x56c   :  { %v513_v52 = vmul.f32 %v509_v0, %v509_v0  ;;  %v519_v2 = vsub.f32 %v491_v33, %v509_v0 }
 0x56d   :  { %v512_v57 = vmul.f32 %v508_v53, %v508_v53  ;;  %v518_v6 = vsub.f32 %v486_v35, %v508_v53 }
 0x56e   :  { %v507_v1 = vpop.xlane.xlu1 %506 }
 0x56f   :  { %v511_v54 = vmul.f32 0.125, %v507_v1 }
 0x571   :  { %v515_v55 = vsub.f32 %v511_v54, %v513_v52  ;;  %v532_v4 = vpop.permute.xlu0 %531 }
 0x572   :  { %v504_v56 = vpop.xlane.xlu1 %503 }
 0x573   :  { %v517_v58 = vmax.f32 %v515_v55, 0.0  ;;  %v510_v59 = vmul.f32 0.125, %v504_v56 }
 0x575   :  { %v521_v60 = vadd.f32 1e-05, %v517_v58  ;;  %v514_v61 = vsub.f32 %v510_v59, %v512_v57 }
 0x576   :  { %v542_v12 = vpop.permute.xlu1 %541 }
 0x577   :  { %6838 = vrsqrt.f32 %v521_v60  ;;  %v516_v62 = vmax.f32 %v514_v61, 0.0  ;;  %v5906_v61 = vld [vmem:[%s7884_s9 + $0x1] ss:$0 sm:$0xff] }
 0x579   :  { %v520_v63 = vadd.f32 1e-05, %v516_v62  ;;  %v5908_v62 = vld [vmem:[%s7884_s9 + $0x2] ss:$0 sm:$0xff] }
 0x57a   :  { %v553_v20 = vpop.permute.xlu1 %552 }
 0x57b   :  { %6840 = vrsqrt.f32 %v520_v63  ;;  %v5925_v63 = vld [vmem:[%s7884_s9 + $0x7] ss:$0 sm:$0xff] }
 0x57e   :  { %v557_v21 = vpop.permute.xlu1 %556 }
 0x581   :  { %v6839_v3 = vpop.eup %6838 }
 0x582   :  { %v525_v5 = vmul.f32 %v6839_v3, %v519_v2  ;;  %v6899_v2 = vmov 0.0  }
 0x583   :  { %37 = vst [vmem:[#allocation2 + $0x8] sm:$0xff] %v6899_v2  ;;  %36 = vst [vmem:[#allocation2] sm:$0xff] %v6899_v2 }
 0x584   :  { %v535_v7 = vmul.f32 %v532_v4, %v525_v5  ;;  %v5910_v5 = vld [vmem:[%s7884_s9 + $0x3] ss:$0 sm:$0xff] }
 0x585   :  { %v6841_v8 = vpop.eup %6840 }
 0x586   :  { %v524_v11 = vmul.f32 %v6841_v8, %v518_v6  ;;  %v545_v13 = vadd.f32 %v542_v12, %v535_v7  ;;  %v5905_v6 = vld [vmem:[%s7884_s9] ss:$0 sm:$0xff]  ;;  %v5914_v7 = vld [vmem:[%s7884_s9 + $0x4] ss:$0 sm:$0xff]  ;;  %v5918_v8 = vld [vmem:[%s7884_s9 + $0x5] ss:$0 sm:$0xff] }
 0x587   :  { %v5928_v12 = vld [vmem:[%s7884_s9 + $0x8] ss:$0 sm:$0xff] }
 0x588   :  { %v534_v14 = vmul.f32 %v528_v48, %v524_v11  ;;  %v547_v16 = vmax.f32 %v545_v13, 0.0  ;;  %v5922_v11 = vld [vmem:[%s7884_s9 + $0x6] ss:$0 sm:$0xff]  ;;  %s6908_s9 = smov 121  }
 0x58a   :  { %v544_v15 = vadd.f32 %v538_v49, %v534_v14 }
 0x58c   :  { %v546_v17 = vmax.f32 %v544_v15, 0.0  ;;  %v6906_v15 = vmov 0.0|0.0  }
 0x58e   :  { %v6627_v18 = vpack.c.bf16 %v547_v16, %v546_v17 }
 0x590   :  { %6628 = vmatprep.subr.bf16.mxu1 %v6627_v18 }
 0x591   :  { %6630 = vmatpush3.bf16.msra.mxu1 %v6627_v18 }
 0x592   :  { %6631 = vmatprep.subr.bf16.mxu1 %v6906_v15 }
 0x594   :  { %6268 = vmatmul.mubr.msk.f32.vlgmr.msra.gmra.mrb[2].mxu1 %vm118_vm1, %v5900_v19 }
 0x595   :  { %6279 = vmatprep.mubr.msk.f32.mxu1 %vm6907_vm3, %v6899_v2 }
 0x667   :  { %v6269_v22 = vpop.f32.mrb[2].mxu1 }
 0x668   :  { %v637_v23 = vadd.f32 %v6269_v22, %v557_v21  ;;  %v631_v24 = vpop.f32.mrb[3].mxu1 }
 0x669   :  { %v632_v25 = vadd.f32 %v631_v24, %v553_v20 }
 0x66a   :  { %v641_v26 = vadd.f32 %v637_v23, %v7058_v46  ;;  %v694_v46 = vld [vmem:[%s7881_s6] sm:$0xff]  ;;  %s6904_s6 = smov 13  }
 0x66b   :  { %v640_v27 = vadd.f32 %v632_v25, %v7061_v47  ;;  %6270 = vmatprep.subr.mxu0 %v694_v46  ;;  %v680_v47 = vpop.permute.xlu1 %679 }
 0x66c   :  { %v645_v28 = vsel %vm49_vm0, %v641_v26, 0.0  ;;  %v649_v30 = vmul.f32 %v641_v26, %v641_v26  ;;  %6271 = vmatpush3.msra.mxu0 %v694_v46 }
 0x66d   :  { %646 = vadd.xlane.f32.xlu0 %v645_v28  ;;  %v642_v29 = vsel %vm49_vm0, %v640_v27, 0.0  ;;  %v648_v32 = vmul.f32 %v640_v27, %v640_v27  ;;  %6634 = vmatprep.subr.bf16.mxu0 %v6906_v15 }
 0x66e   :  { %643 = vadd.xlane.f32.xlu1 %v642_v29  ;;  %v653_v31 = vsel %vm49_vm0, %v649_v30, 0.0 }
 0x66f   :  { %v650_v33 = vsel %vm49_vm0, %v648_v32, 0.0  ;;  %v686_v34 = vpop.permute.xlu1 %685 }
 0x672   :  { %654 = vadd.xlane.f32.xlu1 %v653_v31 }
 0x676   :  { %651 = vadd.xlane.f32.xlu1 %v650_v33 }
 0x683   :  { %675 = vperm.xlu0 %6759, %v7021_v10  }
 0x687   :  { %689 = vperm.xlu1 %6761, %v7015_v9   ;;  %805 = vrot.lane.b32.xlu0 %v5906_v61, %s6896_s17 }
 0x68b   :  { %817 = vrot.lane.b32.xlu0 %v5908_v62, %s6897_s20  ;;  %s6910_s20 = smov 120  }
 0x68f   :  { %1445 = vrot.lane.b32.xlu0 %v5925_v63, %s6898_s23  ;;  %s6913_s23 = smov 125  }
 0x6fa   :  { %v647_v35 = vpop.xlane.xlu0 %646 }
 0x6fb   :  { %v644_v36 = vpop.xlane.xlu1 %643  ;;  %v657_v37 = vmul.f32 0.125, %v647_v35 }
 0x6fc   :  { %v656_v40 = vmul.f32 0.125, %v644_v36 }
 0x6fd   :  { %v661_v39 = vmul.f32 %v657_v37, %v657_v37  ;;  %v667_v0 = vsub.f32 %v641_v26, %v657_v37 }
 0x6fe   :  { %v660_v10 = vmul.f32 %v656_v40, %v656_v40  ;;  %v666_v52 = vsub.f32 %v640_v27, %v656_v40 }
 0x6ff   :  { %v655_v38 = vpop.xlane.xlu1 %654 }
 0x700   :  { %v659_v41 = vmul.f32 0.125, %v655_v38 }
 0x702   :  { %v663_v42 = vsub.f32 %v659_v41, %v661_v39  ;;  %v676_v54 = vpop.permute.xlu0 %675 }
 0x703   :  { %v652_v43 = vpop.xlane.xlu1 %651 }
 0x704   :  { %v665_v44 = vmax.f32 %v663_v42, 0.0  ;;  %v658_v9 = vmul.f32 0.125, %v652_v43 }
 0x706   :  { %v669_v45 = vadd.f32 1e-05, %v665_v44  ;;  %v662_v48 = vsub.f32 %v658_v9, %v660_v10  ;;  %v7157_v17 = vpop.permute.xlu0 %805 }
 0x707   :  { %v690_v58 = vpop.permute.xlu1 %689 }
 0x708   :  { %6842 = vrsqrt.f32 %v669_v45  ;;  %v664_v49 = vmax.f32 %v662_v48, 0.0 }
 0x70a   :  { %v668_v50 = vadd.f32 1e-05, %v664_v49  ;;  %v7170_v28 = vpop.permute.xlu0 %817  ;;  %v6914_v49 = vmov 14  }
 0x70b   :  { %6807 = vset.pattern.permute.xlu1 %v6914_v49 }
 0x70c   :  { %6844 = vrsqrt.f32 %v668_v50 }
 0x70e   :  { %v7187_v38 = vpop.permute.xlu0 %1445 }
 0x712   :  { %v6843_v51 = vpop.eup %6842 }
 0x713   :  { %v673_v1 = vmul.f32 %v6843_v51, %v667_v0  ;;  %v7206_v0 = vld [vmem:[%s7876_s1] sm:$0xf] }
 0x715   :  { %v683_v56 = vmul.f32 %v680_v47, %v673_v1 }
 0x716   :  { %v6845_v53 = vpop.eup %6844 }
 0x717   :  { %v672_v55 = vmul.f32 %v6845_v53, %v666_v52  ;;  %v693_v60 = vadd.f32 %v690_v58, %v683_v56 }
 0x719   :  { %v682_v57 = vmul.f32 %v676_v54, %v672_v55 }
 0x71b   :  { %v692_v59 = vadd.f32 %v686_v34, %v682_v57 }
 0x71d   :  { %6272 = vmatprep.mubr.msk.f32.mxu0 %vm49_vm0, %v692_v59 }
 0x71e   :  { %6273 = vmatmul.mubr.msk.f32.vlgmr.msra.gmra.mrb[4].mxu0 %vm49_vm0, %v693_v60 }
 0x71f   :  { %6286 = vmatprep.mubr.msk.f32.mxu0 %vm6907_vm3, %v6899_v2 }
 0x7f1   :  { %v6274_v3 = vpop.f32.mrb[4].mxu0 }
 0x7f2   :  { %780 = vrot.lane.b32.xlu1 %v6274_v3, %s6900_s24  ;;  %v767_v4 = vpop.f32.mrb[5].mxu0 }
 0x7f6   :  { %778 = vrot.lane.b32.xlu1 %v767_v4, %s6900_s24 }
 0x7fa   :  { %829 = vrot.lane.b32.xlu1 %v5910_v5, %s6901_s27  ;;  %v5911_v5 = vld [vmem:[%s7878_s3 + $0xc] sm:$0xf] }
 0x7fe   :  { %794 = vrot.lane.b32.xlu1 %v5905_v6, %s6902_s30  ;;  %v799_v6 = vld [vmem:[%s7878_s3] sm:$0xf] }
 0x802   :  { %1003 = vrot.lane.b32.xlu1 %v5914_v7, %s6900_s24 }
 0x806   :  { %1177 = vrot.lane.b32.xlu1 %v5918_v8, %s6903_s15 }
 0x80a   :  { %1351 = vrot.lane.b32.xlu1 %v5922_v11, %s6904_s6  ;;  %s6935_s6 = smov 92  }
 0x80e   :  { %1539 = vrot.lane.b32.xlu1 %v5928_v12, %s6905_s18 }
 0x864   :  { %v781_v13 = vpop.permute.xlu1 %780 }
 0x865   :  { %786 = vst.msk [vmem:[#allocation2 + $0x8] sm:$0xff] %vm784_vm2, %v781_v13 }
 0x868   :  { %v779_v14 = vpop.permute.xlu1 %778 }
 0x869   :  { %785 = vst.msk [vmem:[#allocation2] sm:$0xff] %vm784_vm2, %v779_v14 }
 0x86c   :  { %v7155_v16 = vpop.permute.xlu1 %829  ;;  %v788_v18 = vld [vmem:[#allocation2 + $0x8] sm:$0xff] }
 0x86d   :  { %v833_v22 = vmul.f32 %v7155_v16, %v788_v18  ;;  %v809_v32 = vmul.f32 %v7157_v17, %v788_v18  ;;  %v821_v37 = vmul.f32 %v7170_v28, %v788_v18  ;;  %v1449_v44 = vmul.f32 %v7187_v38, %v788_v18 }
 0x870   :  { %v787_v19 = vld [vmem:[#allocation2] sm:$0xff]  ;;  %v7163_v20 = vpop.permute.xlu1 %794 }
 0x871   :  { %v832_v21 = vmul.f32 %v7155_v16, %v787_v19  ;;  %v797_v23 = vmul.f32 %v7163_v20, %v787_v19  ;;  %v798_v24 = vmul.f32 %v7163_v20, %v788_v18  ;;  %v808_v27 = vmul.f32 %v7157_v17, %v787_v19 }
 0x872   :  { %v820_v47 = vmul.f32 %v7170_v28, %v787_v19  ;;  %v1448_v41 = vmul.f32 %v7187_v38, %v787_v19 }
 0x873   :  { %v6762_v25 = vpack.i.bf16 %v833_v22, %v832_v21  ;;  %v6767_v26 = vpack.i.bf16 %v798_v24, %v797_v23  ;;  %v6777_v46 = vpack.i.bf16 %v809_v32, %v808_v27  ;;  %v5915_v21 = vld [vmem:[%s7878_s3 + $0x10] sm:$0xf]  ;;  %v5907_v22 = vld [vmem:[%s7878_s3 + $0x4] sm:$0xf] }
 0x874   :  { %v7172_v29 = vpop.permute.xlu1 %1003  ;;  %v6787_v40 = vpack.i.bf16 %v821_v37, %v820_v47  ;;  %v6797_v45 = vpack.i.bf16 %v1449_v44, %v1448_v41  ;;  %v5926_v41 = vld [vmem:[%s7878_s3 + $0x1c] sm:$0xf]  ;;  %v6918_v44 = vmov 15  }
 0x875   :  { %6763 = vrot.lane.b32.xlu0 %v6762_v25, %s6908_s9  ;;  %6768 = vrot.lane.b32.xlu1 %v6767_v26, %s6909_s19  ;;  %v1006_v30 = vmul.f32 %v7172_v29, %v787_v19  ;;  %v1007_v31 = vmul.f32 %v7172_v29, %v788_v18 }
 0x876   :  { %6808 = vset.pattern.permute.xlu0 %v6918_v44 }
 0x877   :  { %v6772_v33 = vpack.i.bf16 %v1007_v31, %v1006_v30 }
 0x878   :  { %v7180_v34 = vpop.permute.xlu1 %1177 }
 0x879   :  { %6773 = vrot.lane.b32.xlu0 %v6772_v33, %s6910_s20  ;;  %6778 = vrot.lane.b32.xlu1 %v6777_v46, %s6911_s21  ;;  %v1180_v35 = vmul.f32 %v7180_v34, %v787_v19  ;;  %v1181_v36 = vmul.f32 %v7180_v34, %v788_v18  ;;  %v5919_v33 = vld [vmem:[%s7878_s3 + $0x14] sm:$0xf]  ;;  %v5909_v46 = vld [vmem:[%s7878_s3 + $0x8] sm:$0xf] }
 0x87b   :  { %v6782_v39 = vpack.i.bf16 %v1181_v36, %v1180_v35 }
 0x87c   :  { %v7190_v42 = vpop.permute.xlu1 %1351 }
 0x87d   :  { %6783 = vrot.lane.b32.xlu0 %v6782_v39, %s6912_s22  ;;  %6788 = vrot.lane.b32.xlu1 %v6787_v40, %s6913_s23  ;;  %v1354_v43 = vmul.f32 %v7190_v42, %v787_v19  ;;  %v1355_v10 = vmul.f32 %v7190_v42, %v788_v18  ;;  %v5923_v40 = vld [vmem:[%s7878_s3 + $0x18] sm:$0xf] }
 0x87f   :  { %v6792_v9 = vpack.i.bf16 %v1355_v10, %v1354_v43  ;;  %v5929_v10 = vld [vmem:[%s7878_s3 + $0x20] sm:$0xf] }
 0x880   :  { %v7197_v48 = vpop.permute.xlu1 %1539 }
 0x881   :  { %6793 = vrot.lane.b32.xlu0 %v6792_v9, %s6915_s25  ;;  %6798 = vrot.lane.b32.xlu1 %v6797_v45, %s6916_s26  ;;  %v1542_v50 = vmul.f32 %v7197_v48, %v787_v19  ;;  %v1543_v51 = vmul.f32 %v7197_v48, %v788_v18  ;;  %v6919_v9 = vmov 16  }
 0x883   :  { %v6802_v1 = vpack.i.bf16 %v1543_v51, %v1542_v50 }
 0x885   :  { %6803 = vrot.lane.b32.xlu0 %v6802_v1, %s6917_s29  ;;  %1633 = vperm.xlu1 %6807, %v7206_v0  }
 0x889   :  { %6809 = vset.pattern.permute.xlu1 %v6919_v9 }
 0x8e7   :  { %v6764_v52 = vpop.permute.xlu0 %6763  ;;  %v6769_v53 = vpop.permute.xlu1 %6768 }
 0x8e8   :  { %v6766_v54 = vunpack.i.h.bf16 %v6764_v52  ;;  %v6765_v55 = vunpack.i.l.bf16 %v6764_v52  ;;  %v6771_v56 = vunpack.i.h.bf16 %v6769_v53  ;;  %v6770_v57 = vunpack.i.l.bf16 %v6769_v53 }
 0x8ea   :  { %v6632_v58 = vpack.c.bf16 %v6766_v54, %v6765_v55  ;;  %v6635_v59 = vpack.c.bf16 %v6771_v56, %v6770_v57 }
 0x8eb   :  { %v6774_v60 = vpop.permute.xlu0 %6773  ;;  %v6779_v61 = vpop.permute.xlu1 %6778 }
 0x8ec   :  { %v6776_v62 = vunpack.i.h.bf16 %v6774_v60  ;;  %v6775_v63 = vunpack.i.l.bf16 %v6774_v60  ;;  %v6781_v3 = vunpack.i.h.bf16 %v6779_v61  ;;  %v6780_v4 = vunpack.i.l.bf16 %v6779_v61  ;;  %6633 = vmatpush3.bf16.msra.mxu1 %v6632_v58  ;;  %6636 = vmatpush3.bf16.msra.mxu0 %v6635_v59 }
 0x8ed   :  { %6637 = vmatprep.subr.bf16.mxu1 %v6906_v15  ;;  %6640 = vmatprep.subr.bf16.mxu0 %v6906_v15 }
 0x8ee   :  { %v6638_v7 = vpack.c.bf16 %v6776_v62, %v6775_v63  ;;  %v6641_v8 = vpack.c.bf16 %v6781_v3, %v6780_v4 }
 0x8ef   :  { %v6784_v11 = vpop.permute.xlu0 %6783  ;;  %6280 = vmatmul.mubr.msk.f32.vlgmr.msra.gmra.mrb[4].mxu1 %vm118_vm1, %v5911_v5  ;;  %v6789_v12 = vpop.permute.xlu1 %6788  ;;  %6287 = vmatmul.mubr.msk.f32.vlgmr.msra.gmra.mrb[6].mxu0 %vm118_vm1, %v799_v6 }
 0x8f0   :  { %v6786_v13 = vunpack.i.h.bf16 %v6784_v11  ;;  %v6785_v14 = vunpack.i.l.bf16 %v6784_v11  ;;  %v6791_v18 = vunpack.i.h.bf16 %v6789_v12  ;;  %v6790_v19 = vunpack.i.l.bf16 %v6789_v12  ;;  %6639 = vmatpush3.bf16.msra.mxu1 %v6638_v7  ;;  %6642 = vmatpush3.bf16.msra.mxu0 %v6641_v8 }
 0x8f1   :  { %6293 = vmatprep.mubr.msk.f32.mxu1 %vm6907_vm3, %v6899_v2  ;;  %6300 = vmatprep.mubr.msk.f32.mxu0 %vm6907_vm3, %v6899_v2 }
 0x8f2   :  { %v6644_v23 = vpack.c.bf16 %v6786_v13, %v6785_v14  ;;  %v6647_v24 = vpack.c.bf16 %v6791_v18, %v6790_v19  ;;  %6643 = vmatprep.subr.bf16.mxu1 %v6906_v15  ;;  %6646 = vmatprep.subr.bf16.mxu0 %v6906_v15 }
 0x8f3   :  { %v6794_v25 = vpop.permute.xlu0 %6793  ;;  %6294 = vmatmul.mubr.msk.f32.vlgmr.msra.gmra.mrb[6].mxu1 %vm118_vm1, %v5915_v21  ;;  %v6799_v26 = vpop.permute.xlu1 %6798  ;;  %6301 = vmatmul.mubr.msk.f32.vlgmr.msra.gmra.mrb[8].mxu0 %vm118_vm1, %v5907_v22 }
 0x8f4   :  { %v6796_v27 = vunpack.i.h.bf16 %v6794_v25  ;;  %v6795_v30 = vunpack.i.l.bf16 %v6794_v25  ;;  %v6801_v31 = vunpack.i.h.bf16 %v6799_v26  ;;  %v6800_v32 = vunpack.i.l.bf16 %v6799_v26  ;;  %6645 = vmatpush3.bf16.msra.mxu1 %v6644_v23  ;;  %6648 = vmatpush3.bf16.msra.mxu0 %v6647_v24 }
 0x8f5   :  { %6307 = vmatprep.mubr.msk.f32.mxu1 %vm6907_vm3, %v6899_v2  ;;  %6314 = vmatprep.mubr.msk.f32.mxu0 %vm6907_vm3, %v6899_v2 }
 0x8f6   :  { %v6650_v47 = vpack.c.bf16 %v6796_v27, %v6795_v30  ;;  %v6653_v35 = vpack.c.bf16 %v6801_v31, %v6800_v32  ;;  %6649 = vmatprep.subr.bf16.mxu1 %v6906_v15  ;;  %6652 = vmatprep.subr.bf16.mxu0 %v6906_v15 }
 0x8f7   :  { %v6804_v36 = vpop.permute.xlu0 %6803  ;;  %6308 = vmatmul.mubr.msk.f32.vlgmr.msra.gmra.mrb[8].mxu1 %vm118_vm1, %v5919_v33  ;;  %6315 = vmatmul.mubr.msk.f32.vlgmr.msra.gmra.mrb[10].mxu0 %vm118_vm1, %v5909_v46 }
 0x8f8   :  { %v6806_v37 = vunpack.i.h.bf16 %v6804_v36  ;;  %v6805_v39 = vunpack.i.l.bf16 %v6804_v36  ;;  %6651 = vmatpush3.bf16.msra.mxu1 %v6650_v47  ;;  %6654 = vmatpush3.bf16.msra.mxu0 %v6653_v35 }
 0x8f9   :  { %6321 = vmatprep.mubr.msk.f32.mxu1 %vm6907_vm3, %v6899_v2  ;;  %6328 = vmatprep.mubr.msk.f32.mxu0 %vm6907_vm3, %v6899_v2 }
 0x8fa   :  { %v6656_v43 = vpack.c.bf16 %v6806_v37, %v6805_v39  ;;  %6655 = vmatprep.subr.bf16.mxu1 %v6906_v15  ;;  %6338 = vmatprep.subr.mxu0 %v6899_v2 }
 0x8fb   :  { %6322 = vmatmul.mubr.msk.f32.vlgmr.msra.gmra.mrb[10].mxu1 %vm118_vm1, %v5923_v40  ;;  %6329 = vmatmul.mubr.msk.f32.vlgmr.msra.gmra.mrb[12].mxu0 %vm118_vm1, %v5926_v41 }
 0x8fc   :  { %6657 = vmatpush3.bf16.msra.mxu1 %v6656_v43  ;;  %6335 = vmatprep.mubr.msk.f32.mxu1 %vm6907_vm3, %v6899_v2 }
 0x8fd   :  { %6343 = vmatprep.subr.mxu1 %v6899_v2  ;;  %6340 = vmatprep.mubr.msk.f32.mxu0 %vm6907_vm3, %v6899_v2 }
 0x8ff   :  { %6336 = vmatmul.mubr.msk.f32.vlgmr.msra.gmra.mrb[12].mxu1 %vm118_vm1, %v5929_v10 }
 0x900   :  { %6345 = vmatprep.mubr.msk.f32.mxu1 %vm6907_vm3, %v6899_v2 }
 0x904   :  { %v1634_v13 = vpop.permute.xlu1 %1633 }
 0x9c2   :  { %v913_v45 = vpop.f32.mrb[4].mxu1  ;;  %v994_v49 = vpop.f32.mrb[6].mxu0 }
 0x9c3   :  { %v995_v50 = vadd.f32 %v994_v49, %v913_v45  ;;  %v6281_v51 = vpop.f32.mrb[5].mxu1  ;;  %v6288_v1 = vpop.f32.mrb[7].mxu0 }
 0x9c4   :  { %v6920_v51 = vmov 17  }
 0x9c6   :  { %v1087_v52 = vpop.f32.mrb[6].mxu1  ;;  %v1168_v53 = vpop.f32.mrb[8].mxu0 }
 0x9c7   :  { %v1169_v54 = vadd.f32 %v1168_v53, %v1087_v52  ;;  %v6295_v55 = vpop.f32.mrb[7].mxu1  ;;  %v6302_v56 = vpop.f32.mrb[9].mxu0 }
 0x9c8   :  { %v1673_v56 = vld [vmem:[%s7879_s4] sm:$0xf] }
 0x9ca   :  { %v1261_v57 = vpop.f32.mrb[8].mxu1  ;;  %v1342_v58 = vpop.f32.mrb[10].mxu0 }
 0x9cb   :  { %v1343_v59 = vadd.f32 %v1342_v58, %v1261_v57  ;;  %v6309_v60 = vpop.f32.mrb[9].mxu1  ;;  %v6316_v61 = vpop.f32.mrb[11].mxu0  ;;  %v5938_v58 = vld [vmem:[%s7879_s4 + $0x10] sm:$0xf] }
 0x9cc   :  { %v5931_v60 = vld [vmem:[%s7879_s4 + $0x4] sm:$0xf] }
 0x9ce   :  { %v1435_v62 = vpop.f32.mrb[10].mxu1  ;;  %v1529_v63 = vpop.f32.mrb[12].mxu0 }
 0x9cf   :  { %v1439_v3 = vadd.f32 %v1435_v62, %v995_v50  ;;  %v1533_v4 = vadd.f32 %v1529_v63, %v1169_v54  ;;  %v6323_v5 = vpop.f32.mrb[11].mxu1  ;;  %v6330_v6 = vpop.f32.mrb[13].mxu0  ;;  %v7300_v50 = vld [vmem:[%s7876_s1] sm:$0xf]  ;;  %v5933_v54 = vld [vmem:[%s7879_s4 + $0xc] sm:$0xf] }
 0x9d0   :  { %v5943_v63 = vld [vmem:[%s7879_s4 + $0x14] sm:$0xf]  ;;  %v5948_v6 = vld [vmem:[%s7879_s4 + $0x18] sm:$0xf] }
 0x9d1   :  { %v1629_v7 = vadd.f32 %v1533_v4, %v1439_v3  ;;  %v5932_v3 = vld [vmem:[%s7879_s4 + $0x8] sm:$0xf] }
 0x9d2   :  { %v1623_v8 = vpop.f32.mrb[12].mxu1 }
 0x9d3   :  { %v1627_v11 = vadd.f32 %v1623_v8, %v1343_v59  ;;  %v6337_v12 = vpop.f32.mrb[13].mxu1 }
 0x9d5   :  { %v1630_v14 = vadd.f32 %v1629_v7, %v1627_v11  ;;  %v5951_v7 = vld [vmem:[%s7879_s4 + $0x1c] sm:$0xf]  ;;  %v5954_v11 = vld [vmem:[%s7879_s4 + $0x20] sm:$0xf] }
 0x9d7   :  { %v7273_v18 = vadd.f32 %v1634_v13, %v1630_v14  ;;  %v6921_v13 = vmov 18   ;;  %v6922_v14 = vmov 19  }
 0x9d9   :  { %v1638_v19 = vsel %vm1637_vm4, %v7273_v18, 0.0  ;;  %v1641_v21 = vmul.f32 %v7273_v18, %v7273_v18 }
 0x9da   :  { %1639 = vadd.xlane.f32.xlu0 %v1638_v19 }
 0x9db   :  { %v1642_v22 = vsel %vm1637_vm4, %v1641_v21, 0.0 }
 0x9dc   :  { %1643 = vadd.xlane.f32.xlu1 %v1642_v22 }
 0x9ed   :  { %1660 = vperm.xlu1 %6809, %v7206_v0  }
 0x9f0   :  { %1655 = vperm.xlu0 %6808, %v7206_v0  }
 0x9f1   :  { %6812 = vset.pattern.permute.xlu1 %v6922_v14 }
 0x9f4   :  { %6810 = vset.pattern.permute.xlu0 %v6920_v51 }
 0xa67   :  { %v1640_v23 = vpop.xlane.xlu0 %1639 }
 0xa68   :  { %v1645_v24 = vmul.f32 0.013888889, %v1640_v23 }
 0xa69   :  { %v1644_v25 = vpop.xlane.xlu1 %1643 }
 0xa6a   :  { %v1647_v26 = vmul.f32 %v1645_v24, %v1645_v24  ;;  %v1646_v27 = vmul.f32 0.013888889, %v1644_v25  ;;  %v1650_v33 = vsub.f32 %v7273_v18, %v1645_v24 }
 0xa6c   :  { %v1648_v30 = vsub.f32 %v1646_v27, %v1647_v26 }
 0xa6d   :  { %v1661_v36 = vpop.permute.xlu1 %1660 }
 0xa6e   :  { %v1649_v31 = vmax.f32 %v1648_v30, 0.0 }
 0xa6f   :  { %v1656_v47 = vpop.permute.xlu0 %1655 }
 0xa70   :  { %v1651_v32 = vadd.f32 1e-05, %v1649_v31 }
 0xa72   :  { %6846 = vrsqrt.f32 %v1651_v32 }
 0xa7c   :  { %v6847_v46 = vpop.eup %6846 }
 0xa7d   :  { %v1653_v35 = vmul.f32 %v6847_v46, %v1650_v33 }
 0xa7f   :  { %v1658_v37 = vmul.f32 %v1656_v47, %v1653_v35 }
 0xa81   :  { %v1663_v39 = vadd.f32 %v1661_v36, %v1658_v37 }
 0xa83   :  { %v1664_v40 = vmax.f32 %v1663_v39, 0.0 }
 0xa85   :  { %1666 = vrot.lane.b32.xlu1 %v1664_v40, %s6900_s24 }
 0xaf7   :  { %v1667_v0 = vpop.permute.xlu1 %1666 }
 0xaf8   :  { %1670 = vst.msk [vmem:[#allocation2] sm:$0xf] %vm1669_vm5, %v1667_v0 }
 0xaff   :  { %v1671_v41 = vld [vmem:[#allocation2] sm:$0xf] }
 0xb00   :  { %v1680_v43 = vmul.f32 %v1671_v41, %v7155_v16  ;;  %v1677_v10 = vmul.f32 %v1671_v41, %v7170_v28  ;;  %v2241_v44 = vmul.f32 %v1671_v41, %v7187_v38  ;;  %v1672_v9 = vmul.f32 %v1671_v41, %v7163_v20 }
 0xb01   :  { %v1841_v45 = vmul.f32 %v1671_v41, %v7172_v29  ;;  %v1674_v49 = vmul.f32 %v1671_v41, %v7157_v17  ;;  %v2000_v1 = vmul.f32 %v1671_v41, %v7180_v34  ;;  %v2159_v52 = vmul.f32 %v1671_v41, %v7190_v42 }
 0xb02   :  { %1684 = vrot.lane.b32.xlu1 %v1680_v43, %s6908_s9  ;;  %2082 = vrot.lane.b32.xlu0 %v1677_v10, %s6913_s23  ;;  %v2323_v53 = vmul.f32 %v1671_v41, %v7197_v48 }
 0xb06   :  { %2245 = vrot.lane.b32.xlu0 %v2241_v44, %s6916_s26  ;;  %1764 = vrot.lane.b32.xlu1 %v1672_v9, %s6909_s19 }
 0xb0a   :  { %1845 = vrot.lane.b32.xlu1 %v1841_v45, %s6910_s20  ;;  %2410 = vperm.xlu0 %6810, %v7300_v50  }
 0xb0e   :  { %1923 = vrot.lane.b32.xlu1 %v1674_v49, %s6911_s21  ;;  %6811 = vset.pattern.permute.xlu0 %v6921_v13 }
 0xb12   :  { %2004 = vrot.lane.b32.xlu1 %v2000_v1, %s6912_s22 }
 0xb16   :  { %2163 = vrot.lane.b32.xlu1 %v2159_v52, %s6915_s25 }
 0xb1a   :  { %2327 = vrot.lane.b32.xlu1 %v2323_v53, %s6917_s29 }
 0xb74   :  { %v1685_v55 = vpop.permute.xlu1 %1684  ;;  %v2083_v61 = vpop.permute.xlu0 %2082 }
 0xb75   :  { %6339 = vmatpush3.msk.msra.mxu0 %vm1690_vm6, %v1685_v55 }
 0xb76   :  { %6348 = vmatprep.subr.mxu0 %v6899_v2  ;;  %6341 = vmatmul.mubr.msk.f32.vlgmr.msra.gmra.mrb[14].mxu0 %vm1686_vm7, %v5933_v54 }
 0xb77   :  { %6350 = vmatprep.mubr.msk.f32.mxu0 %vm6907_vm3, %v6899_v2 }
 0xb78   :  { %v1765_v57 = vpop.permute.xlu1 %1764  ;;  %v2246_v5 = vpop.permute.xlu0 %2245 }
 0xb79   :  { %6344 = vmatpush3.msk.msra.mxu1 %vm1690_vm6, %v1765_v57 }
 0xb7a   :  { %6346 = vmatmul.mubr.msk.f32.vlgmr.msra.gmra.mrb[14].mxu1 %vm1686_vm7, %v1673_v56  ;;  %6353 = vmatprep.subr.mxu1 %v6899_v2 }
 0xb7b   :  { %6355 = vmatprep.mubr.msk.f32.mxu1 %vm6907_vm3, %v6899_v2 }
 0xb7c   :  { %v1846_v59 = vpop.permute.xlu1 %1845 }
 0xb7d   :  { %6349 = vmatpush3.msk.msra.mxu0 %vm1690_vm6, %v1846_v59 }
 0xb7e   :  { %6351 = vmatmul.mubr.msk.f32.vlgmr.msra.gmra.mrb[16].mxu0 %vm1686_vm7, %v5938_v58  ;;  %6358 = vmatprep.subr.mxu0 %v6899_v2 }
 0xb7f   :  { %6360 = vmatprep.mubr.msk.f32.mxu0 %vm6907_vm3, %v6899_v2 }
 0xb80   :  { %v1924_v62 = vpop.permute.xlu1 %1923 }
 0xb81   :  { %6354 = vmatpush3.msk.msra.mxu1 %vm1690_vm6, %v1924_v62 }
 0xb82   :  { %6356 = vmatmul.mubr.msk.f32.vlgmr.msra.gmra.mrb[16].mxu1 %vm1686_vm7, %v5931_v60  ;;  %6363 = vmatprep.subr.mxu1 %v6899_v2 }
 0xb83   :  { %6364 = vmatpush3.msk.msra.mxu1 %vm1690_vm6, %v2083_v61  ;;  %6365 = vmatprep.mubr.msk.f32.mxu1 %vm6907_vm3, %v6899_v2 }
 0xb84   :  { %v2005_v4 = vpop.permute.xlu1 %2004  ;;  %6373 = vmatprep.subr.mxu1 %v6899_v2 }
 0xb85   :  { %6359 = vmatpush3.msk.msra.mxu0 %vm1690_vm6, %v2005_v4 }
 0xb86   :  { %6361 = vmatmul.mubr.msk.f32.vlgmr.msra.gmra.mrb[18].mxu0 %vm1686_vm7, %v5943_v63  ;;  %6366 = vmatmul.mubr.msk.f32.vlgmr.msra.gmra.mrb[18].mxu1 %vm1686_vm7, %v5932_v3 }
 0xb87   :  { %6374 = vmatpush3.msk.msra.mxu1 %vm1690_vm6, %v2246_v5  ;;  %6368 = vmatprep.subr.mxu0 %v6899_v2 }
 0xb88   :  { %v2164_v8 = vpop.permute.xlu1 %2163  ;;  %6370 = vmatprep.mubr.msk.f32.mxu0 %vm6907_vm3, %v6899_v2  ;;  %6375 = vmatprep.mubr.msk.f32.mxu1 %vm6907_vm3, %v6899_v2 }
 0xb89   :  { %6369 = vmatpush3.msk.msra.mxu0 %vm1690_vm6, %v2164_v8  ;;  %6383 = vmatprep.subr.mxu1 %v6899_v2  ;;  %v2411_v45 = vpop.permute.xlu0 %2410 }
 0xb8a   :  { %6371 = vmatmul.mubr.msk.f32.vlgmr.msra.gmra.mrb[20].mxu0 %vm1686_vm7, %v5948_v6  ;;  %6376 = vmatmul.mubr.msk.f32.vlgmr.msra.gmra.mrb[20].mxu1 %vm1686_vm7, %v5951_v7 }
 0xb8b   :  { %6378 = vmatprep.subr.mxu0 %v6899_v2  ;;  %6380 = vmatprep.mubr.msk.f32.mxu0 %vm6907_vm3, %v6899_v2 }
 0xb8c   :  { %v2328_v12 = vpop.permute.xlu1 %2327  ;;  %6385 = vmatprep.mubr.msk.f32.mxu1 %vm6907_vm3, %v6899_v2 }
 0xb8d   :  { %6379 = vmatpush3.msk.msra.mxu0 %vm1690_vm6, %v2328_v12 }
 0xb8e   :  { %6381 = vmatmul.mubr.msk.f32.vlgmr.msra.gmra.mrb[22].mxu0 %vm1686_vm7, %v5954_v11  ;;  %6388 = vmatprep.subr.mxu0 %v6899_v2 }
 0xb8f   :  { %6390 = vmatprep.mubr.msk.f32.mxu0 %vm6907_vm3, %v6899_v2 }
 0xc49   :  { %v1759_v19 = vpop.f32.mrb[14].mxu0 }
 0xc4a   :  { %v6342_v21 = vpop.f32.mrb[15].mxu0 }
 0xc4d   :  { %v1837_v22 = vpop.f32.mrb[14].mxu1 }
 0xc4e   :  { %v1838_v23 = vadd.f32 %v1837_v22, %v1759_v19  ;;  %v6347_v24 = vpop.f32.mrb[15].mxu1 }
 0xc51   :  { %v1918_v25 = vpop.f32.mrb[16].mxu0 }
 0xc52   :  { %v6352_v26 = vpop.f32.mrb[17].mxu0 }
 0xc55   :  { %v1996_v27 = vpop.f32.mrb[16].mxu1 }
 0xc56   :  { %v1997_v30 = vadd.f32 %v1996_v27, %v1918_v25  ;;  %v6357_v31 = vpop.f32.mrb[17].mxu1  ;;  %v7408_v27 = vld [vmem:[%s7876_s1] sm:$0xf] }
 0xc59   :  { %v2077_v32 = vpop.f32.mrb[18].mxu0  ;;  %v2155_v33 = vpop.f32.mrb[18].mxu1 }
 0xc5a   :  { %v2156_v46 = vadd.f32 %v2155_v33, %v2077_v32  ;;  %v6362_v47 = vpop.f32.mrb[19].mxu0  ;;  %v6367_v35 = vpop.f32.mrb[19].mxu1  ;;  %v5957_v32 = vld [vmem:[%s7879_s4 + $0x24] sm:$0xf] }
 0xc5b   :  { %v5958_v35 = vld [vmem:[%s7879_s4 + $0x28] sm:$0xf] }
 0xc5d   :  { %v2236_v36 = vpop.f32.mrb[20].mxu0  ;;  %v2318_v37 = vpop.f32.mrb[20].mxu1 }
 0xc5e   :  { %v2240_v39 = vadd.f32 %v2236_v36, %v1838_v23  ;;  %v2322_v40 = vadd.f32 %v2318_v37, %v1997_v30  ;;  %v6372_v0 = vpop.f32.mrb[21].mxu0  ;;  %v6377_v41 = vpop.f32.mrb[21].mxu1  ;;  %v6923_v23 = vmov 20   ;;  %v5960_v30 = vld [vmem:[%s7879_s4 + $0x30] sm:$0xf] }
 0xc5f   :  { %v5970_v37 = vld [vmem:[%s7879_s4 + $0x38] sm:$0xf]  ;;  %v5959_v0 = vld [vmem:[%s7879_s4 + $0x2c] sm:$0xf]  ;;  %v5975_v41 = vld [vmem:[%s7879_s4 + $0x3c] sm:$0xf] }
 0xc60   :  { %v2406_v43 = vadd.f32 %v2322_v40, %v2240_v39 }
 0xc61   :  { %v2400_v10 = vpop.f32.mrb[22].mxu0 }
 0xc62   :  { %v2404_v44 = vadd.f32 %v2400_v10, %v2156_v46  ;;  %v6382_v9 = vpop.f32.mrb[23].mxu0  ;;  %v5965_v46 = vld [vmem:[%s7879_s4 + $0x34] sm:$0xf] }
 0xc63   :  { %v5981_v9 = vld [vmem:[%s7879_s4 + $0x44] sm:$0xf] }
 0xc64   :  { %v2407_v49 = vadd.f32 %v2406_v43, %v2404_v44  ;;  %v5978_v44 = vld [vmem:[%s7879_s4 + $0x40] sm:$0xf] }
 0xc66   :  { %v2413_v51 = vadd.f32 %v2411_v45, %v2407_v49  ;;  %v6924_v49 = vmov 21  }
 0xc68   :  { %v2414_v1 = vsel %vm1637_vm4, %v2413_v51, 0.0  ;;  %v2417_v52 = vmul.f32 %v2413_v51, %v2413_v51 }
 0xc69   :  { %2415 = vadd.xlane.f32.xlu1 %v2414_v1 }
 0xc6a   :  { %v2418_v53 = vsel %vm1637_vm4, %v2417_v52, 0.0 }
 0xc6b   :  { %2419 = vadd.xlane.f32.xlu0 %v2418_v53 }
 0xc7a   :  { %2436 = vperm.xlu1 %6812, %v7300_v50  }
 0xc7e   :  { %6813 = vset.pattern.permute.xlu1 %v6923_v23 }
 0xc81   :  { %2431 = vperm.xlu0 %6811, %v7300_v50  }
 0xc85   :  { %6814 = vset.pattern.permute.xlu0 %v6924_v49 }
 0xcf6   :  { %v2416_v54 = vpop.xlane.xlu1 %2415 }
 0xcf7   :  { %v2421_v55 = vmul.f32 0.013888889, %v2416_v54 }
 0xcf8   :  { %v2420_v56 = vpop.xlane.xlu0 %2419 }
 0xcf9   :  { %v2423_v57 = vmul.f32 %v2421_v55, %v2421_v55  ;;  %v2422_v58 = vmul.f32 0.013888889, %v2420_v56  ;;  %v2426_v62 = vsub.f32 %v2413_v51, %v2421_v55  ;;  %v6925_v51 = vmov 22  }
 0xcfa   :  { %v2437_v5 = vpop.permute.xlu1 %2436 }
 0xcfb   :  { %v2424_v59 = vsub.f32 %v2422_v58, %v2423_v57 }
 0xcfd   :  { %v2425_v60 = vmax.f32 %v2424_v59, 0.0 }
 0xcff   :  { %v2427_v61 = vadd.f32 1e-05, %v2425_v60 }
 0xd00   :  { %v2432_v3 = vpop.permute.xlu0 %2431 }
 0xd01   :  { %6848 = vrsqrt.f32 %v2427_v61 }
 0xd0b   :  { %v6849_v63 = vpop.eup %6848 }
 0xd0c   :  { %v2429_v4 = vmul.f32 %v6849_v63, %v2426_v62 }
 0xd0e   :  { %v2434_v6 = vmul.f32 %v2432_v3, %v2429_v4 }
 0xd10   :  { %v2439_v7 = vadd.f32 %v2437_v5, %v2434_v6 }
 0xd12   :  { %v2440_v8 = vmax.f32 %v2439_v7, 0.0 }
 0xd14   :  { %2442 = vrot.lane.b32.xlu1 %v2440_v8, %s6900_s24 }
 0xd86   :  { %v2443_v50 = vpop.permute.xlu1 %2442 }
 0xd87   :  { %2445 = vst.msk [vmem:[#allocation2] sm:$0xf] %vm1669_vm5, %v2443_v50 }
 0xd8e   :  { %v2446_v11 = vld [vmem:[#allocation2] sm:$0xf] }
 0xd8f   :  { %v2933_v12 = vmul.f32 %v2446_v11, %v7190_v42  ;;  %v2456_v13 = vmul.f32 %v2446_v11, %v7155_v16  ;;  %v3097_v14 = vmul.f32 %v2446_v11, %v7197_v48  ;;  %v2447_v19 = vmul.f32 %v2446_v11, %v7163_v20 }
 0xd90   :  { %v2615_v21 = vmul.f32 %v2446_v11, %v7172_v29  ;;  %v2450_v22 = vmul.f32 %v2446_v11, %v7157_v17  ;;  %v2774_v24 = vmul.f32 %v2446_v11, %v7180_v34  ;;  %v2453_v25 = vmul.f32 %v2446_v11, %v7170_v28 }
 0xd91   :  { %2937 = vrot.lane.b32.xlu0 %v2933_v12, %s6915_s25  ;;  %2460 = vrot.lane.b32.xlu1 %v2456_v13, %s6908_s9  ;;  %v3015_v26 = vmul.f32 %v2446_v11, %v7187_v38 }
 0xd95   :  { %3101 = vrot.lane.b32.xlu0 %v3097_v14, %s6917_s29  ;;  %2538 = vrot.lane.b32.xlu1 %v2447_v19, %s6909_s19 }
 0xd99   :  { %2619 = vrot.lane.b32.xlu1 %v2615_v21, %s6910_s20 }
 0xd9d   :  { %2697 = vrot.lane.b32.xlu1 %v2450_v22, %s6911_s21 }
 0xda1   :  { %2778 = vrot.lane.b32.xlu1 %v2774_v24, %s6912_s22 }
 0xda5   :  { %2856 = vrot.lane.b32.xlu1 %v2453_v25, %s6913_s23 }
 0xda9   :  { %3019 = vrot.lane.b32.xlu1 %v3015_v26, %s6916_s26 }
 0xdad   :  { %3184 = vperm.xlu1 %6813, %v7408_v27  }
 0xdb1   :  { %6815 = vset.pattern.permute.xlu1 %v6925_v51 }
 0xe03   :  { %v2461_v31 = vpop.permute.xlu1 %2460  ;;  %v2938_v39 = vpop.permute.xlu0 %2937 }
 0xe04   :  { %6384 = vmatpush3.msk.msra.mxu1 %vm1690_vm6, %v2461_v31 }
 0xe05   :  { %6393 = vmatprep.subr.mxu1 %v6899_v2  ;;  %6386 = vmatmul.mubr.msk.f32.vlgmr.msra.gmra.mrb[22].mxu1 %vm1686_vm7, %v5960_v30 }
 0xe06   :  { %6395 = vmatprep.mubr.msk.f32.mxu1 %vm6907_vm3, %v6899_v2 }
 0xe07   :  { %v2539_v33 = vpop.permute.xlu1 %2538  ;;  %v3102_v10 = vpop.permute.xlu0 %3101 }
 0xe08   :  { %6389 = vmatpush3.msk.msra.mxu0 %vm1690_vm6, %v2539_v33 }
 0xe09   :  { %6391 = vmatmul.mubr.msk.f32.vlgmr.msra.gmra.mrb[24].mxu0 %vm1686_vm7, %v5957_v32  ;;  %6398 = vmatprep.subr.mxu0 %v6899_v2 }
 0xe0a   :  { %6400 = vmatprep.mubr.msk.f32.mxu0 %vm6907_vm3, %v6899_v2 }
 0xe0b   :  { %v2620_v47 = vpop.permute.xlu1 %2619 }
 0xe0c   :  { %6394 = vmatpush3.msk.msra.mxu1 %vm1690_vm6, %v2620_v47 }
 0xe0d   :  { %6396 = vmatmul.mubr.msk.f32.vlgmr.msra.gmra.mrb[24].mxu1 %vm1686_vm7, %v5965_v46  ;;  %6403 = vmatprep.subr.mxu1 %v6899_v2 }
 0xe0e   :  { %6405 = vmatprep.mubr.msk.f32.mxu1 %vm6907_vm3, %v6899_v2 }
 0xe0f   :  { %v2698_v36 = vpop.permute.xlu1 %2697 }
 0xe10   :  { %6399 = vmatpush3.msk.msra.mxu0 %vm1690_vm6, %v2698_v36 }
 0xe11   :  { %6401 = vmatmul.mubr.msk.f32.vlgmr.msra.gmra.mrb[26].mxu0 %vm1686_vm7, %v5958_v35  ;;  %6408 = vmatprep.subr.mxu0 %v6899_v2 }
 0xe12   :  { %6410 = vmatprep.mubr.msk.f32.mxu0 %vm6907_vm3, %v6899_v2 }
 0xe13   :  { %v2779_v40 = vpop.permute.xlu1 %2778 }
 0xe14   :  { %6404 = vmatpush3.msk.msra.mxu1 %vm1690_vm6, %v2779_v40 }
 0xe15   :  { %6406 = vmatmul.mubr.msk.f32.vlgmr.msra.gmra.mrb[26].mxu1 %vm1686_vm7, %v5970_v37  ;;  %6413 = vmatprep.subr.mxu1 %v6899_v2 }
 0xe16   :  { %6414 = vmatpush3.msk.msra.mxu1 %vm1690_vm6, %v2938_v39  ;;  %6415 = vmatprep.mubr.msk.f32.mxu1 %vm6907_vm3, %v6899_v2 }
 0xe17   :  { %v2857_v43 = vpop.permute.xlu1 %2856  ;;  %6423 = vmatprep.subr.mxu1 %v6899_v2 }
 0xe18   :  { %6409 = vmatpush3.msk.msra.mxu0 %vm1690_vm6, %v2857_v43 }
 0xe19   :  { %6411 = vmatmul.mubr.msk.f32.vlgmr.msra.gmra.mrb[28].mxu0 %vm1686_vm7, %v5959_v0  ;;  %6416 = vmatmul.mubr.msk.f32.vlgmr.msra.gmra.mrb[28].mxu1 %vm1686_vm7, %v5975_v41 }
 0xe1a   :  { %6424 = vmatpush3.msk.msra.mxu1 %vm1690_vm6, %v3102_v10  ;;  %6418 = vmatprep.subr.mxu0 %v6899_v2 }
 0xe1b   :  { %v3020_v45 = vpop.permute.xlu1 %3019  ;;  %6420 = vmatprep.mubr.msk.f32.mxu0 %vm6907_vm3, %v6899_v2  ;;  %6425 = vmatprep.mubr.msk.f32.mxu1 %vm6907_vm3, %v6899_v2 }
 0xe1c   :  { %6419 = vmatpush3.msk.msra.mxu0 %vm1690_vm6, %v3020_v45  ;;  %6433 = vmatprep.subr.mxu1 %v6899_v2 }
 0xe1d   :  { %6421 = vmatmul.mubr.msk.f32.vlgmr.msra.gmra.mrb[30].mxu0 %vm1686_vm7, %v5978_v44  ;;  %6426 = vmatmul.mubr.msk.f32.vlgmr.msra.gmra.mrb[30].mxu1 %vm1686_vm7, %v5981_v9 }
 0xe1e   :  { %6428 = vmatprep.subr.mxu0 %v6899_v2  ;;  %6430 = vmatprep.mubr.msk.f32.mxu0 %vm6907_vm3, %v6899_v2 }
 0xe1f   :  { %6435 = vmatprep.mubr.msk.f32.mxu1 %vm6907_vm3, %v6899_v2 }
 0xe2c   :  { %v3185_v21 = vpop.permute.xlu1 %3184 }
 0xed8   :  { %v2533_v1 = vpop.f32.mrb[22].mxu1 }
 0xed9   :  { %v6387_v52 = vpop.f32.mrb[23].mxu1 }
 0xedc   :  { %v2611_v53 = vpop.f32.mrb[24].mxu0 }
 0xedd   :  { %v2612_v54 = vadd.f32 %v2611_v53, %v2533_v1  ;;  %v6392_v55 = vpop.f32.mrb[25].mxu0 }
 0xede   :  { %v6926_v55 = vmov 23  }
 0xee0   :  { %v2692_v56 = vpop.f32.mrb[24].mxu1 }
 0xee1   :  { %v6397_v57 = vpop.f32.mrb[25].mxu1 }
 0xee4   :  { %v2770_v58 = vpop.f32.mrb[26].mxu0 }
 0xee5   :  { %v2771_v59 = vadd.f32 %v2770_v58, %v2692_v56  ;;  %v6402_v60 = vpop.f32.mrb[27].mxu0 }
 0xee8   :  { %v2851_v61 = vpop.f32.mrb[26].mxu1 }
 0xee9   :  { %v6407_v62 = vpop.f32.mrb[27].mxu1 }
 0xeec   :  { %v2929_v63 = vpop.f32.mrb[28].mxu0  ;;  %v3010_v3 = vpop.f32.mrb[28].mxu1 }
 0xeed   :  { %v2930_v4 = vadd.f32 %v2929_v63, %v2851_v61  ;;  %v3014_v5 = vadd.f32 %v3010_v3, %v2612_v54  ;;  %v6412_v6 = vpop.f32.mrb[29].mxu0  ;;  %v6417_v7 = vpop.f32.mrb[29].mxu1  ;;  %v7511_v54 = vld [vmem:[%s7876_s1] sm:$0xf]  ;;  %v5984_v61 = vld [vmem:[%s7879_s4 + $0x48] sm:$0xf] }
 0xeee   :  { %v5992_v63 = vld [vmem:[%s7879_s4 + $0x58] sm:$0xf]  ;;  %v5997_v7 = vld [vmem:[%s7879_s4 + $0x5c] sm:$0xf] }
 0xef0   :  { %v3092_v8 = vpop.f32.mrb[30].mxu0  ;;  %v3174_v50 = vpop.f32.mrb[30].mxu1 }
 0xef1   :  { %v3096_v11 = vadd.f32 %v3092_v8, %v2771_v59  ;;  %v3178_v12 = vadd.f32 %v3174_v50, %v2930_v4  ;;  %v6422_v13 = vpop.f32.mrb[31].mxu0  ;;  %v6427_v14 = vpop.f32.mrb[31].mxu1  ;;  %v5987_v59 = vld [vmem:[%s7879_s4 + $0x54] sm:$0xf]  ;;  %v5985_v4 = vld [vmem:[%s7879_s4 + $0x4c] sm:$0xf] }
 0xef2   :  { %v5986_v8 = vld [vmem:[%s7879_s4 + $0x50] sm:$0xf]  ;;  %v6005_v13 = vld [vmem:[%s7879_s4 + $0x64] sm:$0xf] }
 0xef3   :  { %v3180_v19 = vadd.f32 %v3096_v11, %v3014_v5 }
 0xef5   :  { %v3181_v22 = vadd.f32 %v3180_v19, %v3178_v12  ;;  %v6002_v12 = vld [vmem:[%s7879_s4 + $0x60] sm:$0xf]  ;;  %v6008_v19 = vld [vmem:[%s7879_s4 + $0x68] sm:$0xf] }
 0xef7   :  { %v3187_v23 = vadd.f32 %v3185_v21, %v3181_v22  ;;  %v6927_v22 = vmov 24  }
 0xef9   :  { %v7484_v24 = vadd.f32 %v3187_v23, %v7273_v18  ;;  %v6928_v23 = vmov 25  }
 0xefb   :  { %v3189_v25 = vsel %vm1637_vm4, %v7484_v24, 0.0  ;;  %v3192_v26 = vmul.f32 %v7484_v24, %v7484_v24 }
 0xefc   :  { %3190 = vadd.xlane.f32.xlu0 %v3189_v25 }
 0xefd   :  { %v3193_v30 = vsel %vm1637_vm4, %v3192_v26, 0.0 }
 0xefe   :  { %3194 = vadd.xlane.f32.xlu1 %v3193_v30 }
 0xf0f   :  { %3211 = vperm.xlu1 %6815, %v7408_v27  }
 0xf12   :  { %3206 = vperm.xlu0 %6814, %v7408_v27  }
 0xf13   :  { %6818 = vset.pattern.permute.xlu1 %v6928_v23 }
 0xf16   :  { %6816 = vset.pattern.permute.xlu0 %v6926_v55 }
 0xf89   :  { %v3191_v31 = vpop.xlane.xlu0 %3190 }
 0xf8a   :  { %v3196_v32 = vmul.f32 0.013888889, %v3191_v31 }
 0xf8b   :  { %v3195_v33 = vpop.xlane.xlu1 %3194 }
 0xf8c   :  { %v3198_v46 = vmul.f32 %v3196_v32, %v3196_v32  ;;  %v3197_v18 = vmul.f32 0.013888889, %v3195_v33  ;;  %v3201_v37 = vsub.f32 %v7484_v24, %v3196_v32 }
 0xf8e   :  { %v3199_v47 = vsub.f32 %v3197_v18, %v3198_v46 }
 0xf8f   :  { %v3212_v41 = vpop.permute.xlu1 %3211 }
 0xf90   :  { %v3200_v35 = vmax.f32 %v3199_v47, 0.0 }
 0xf91   :  { %v3207_v40 = vpop.permute.xlu0 %3206 }
 0xf92   :  { %v3202_v36 = vadd.f32 1e-05, %v3200_v35 }
 0xf94   :  { %6850 = vrsqrt.f32 %v3202_v36 }
 0xf9e   :  { %v6851_v39 = vpop.eup %6850 }
 0xf9f   :  { %v3204_v0 = vmul.f32 %v6851_v39, %v3201_v37 }
 0xfa1   :  { %v3209_v43 = vmul.f32 %v3207_v40, %v3204_v0 }
 0xfa3   :  { %v3214_v10 = vadd.f32 %v3212_v41, %v3209_v43 }
 0xfa5   :  { %v3215_v44 = vmax.f32 %v3214_v10, 0.0 }
 0xfa7   :  { %3217 = vrot.lane.b32.xlu1 %v3215_v44, %s6900_s24 }
0x1019   :  { %v3218_v27 = vpop.permute.xlu1 %3217 }
0x101a   :  { %3220 = vst.msk [vmem:[#allocation2] sm:$0xf] %vm1669_vm5, %v3218_v27 }
0x1021   :  { %v3221_v9 = vld [vmem:[#allocation2] sm:$0xf] }
0x1022   :  { %v3231_v45 = vmul.f32 %v3221_v9, %v7155_v16  ;;  %v3228_v49 = vmul.f32 %v3221_v9, %v7170_v28  ;;  %v3790_v51 = vmul.f32 %v3221_v9, %v7187_v38  ;;  %v3222_v1 = vmul.f32 %v3221_v9, %v7163_v20 }
0x1023   :  { %v3390_v52 = vmul.f32 %v3221_v9, %v7172_v29  ;;  %v3225_v53 = vmul.f32 %v3221_v9, %v7157_v17  ;;  %v3549_v56 = vmul.f32 %v3221_v9, %v7180_v34  ;;  %v3708_v57 = vmul.f32 %v3221_v9, %v7190_v42 }
0x1024   :  { %3235 = vrot.lane.b32.xlu1 %v3231_v45, %s6908_s9  ;;  %3631 = vrot.lane.b32.xlu0 %v3228_v49, %s6913_s23  ;;  %v3872_v58 = vmul.f32 %v3221_v9, %v7197_v48 }
0x1028   :  { %3794 = vrot.lane.b32.xlu0 %v3790_v51, %s6916_s26  ;;  %3313 = vrot.lane.b32.xlu1 %v3222_v1, %s6909_s19 }
0x102c   :  { %3394 = vrot.lane.b32.xlu1 %v3390_v52, %s6910_s20  ;;  %3959 = vperm.xlu0 %6816, %v7511_v54  }
0x1030   :  { %3472 = vrot.lane.b32.xlu1 %v3225_v53, %s6911_s21  ;;  %6817 = vset.pattern.permute.xlu0 %v6927_v22 }
0x1034   :  { %3553 = vrot.lane.b32.xlu1 %v3549_v56, %s6912_s22 }
0x1038   :  { %3712 = vrot.lane.b32.xlu1 %v3708_v57, %s6915_s25 }
0x103c   :  { %3876 = vrot.lane.b32.xlu1 %v3872_v58, %s6917_s29 }
0x1096   :  { %v3236_v60 = vpop.permute.xlu1 %3235  ;;  %v3632_v5 = vpop.permute.xlu0 %3631 }
0x1097   :  { %6429 = vmatpush3.msk.msra.mxu0 %vm1690_vm6, %v3236_v60 }
0x1098   :  { %6438 = vmatprep.subr.mxu0 %v6899_v2  ;;  %6431 = vmatmul.mubr.msk.f32.vlgmr.msra.gmra.mrb[32].mxu0 %vm1686_vm7, %v5987_v59 }
0x1099   :  { %6440 = vmatprep.mubr.msk.f32.mxu0 %vm6907_vm3, %v6899_v2 }
0x109a   :  { %v3314_v62 = vpop.permute.xlu1 %3313  ;;  %v3795_v11 = vpop.permute.xlu0 %3794 }
0x109b   :  { %6434 = vmatpush3.msk.msra.mxu1 %vm1690_vm6, %v3314_v62 }
0x109c   :  { %6436 = vmatmul.mubr.msk.f32.vlgmr.msra.gmra.mrb[32].mxu1 %vm1686_vm7, %v5984_v61  ;;  %6443 = vmatprep.subr.mxu1 %v6899_v2 }
0x109d   :  { %6445 = vmatprep.mubr.msk.f32.mxu1 %vm6907_vm3, %v6899_v2 }
0x109e   :  { %v3395_v3 = vpop.permute.xlu1 %3394 }
0x109f   :  { %6439 = vmatpush3.msk.msra.mxu0 %vm1690_vm6, %v3395_v3 }
0x10a0   :  { %6441 = vmatmul.mubr.msk.f32.vlgmr.msra.gmra.mrb[34].mxu0 %vm1686_vm7, %v5992_v63  ;;  %6448 = vmatprep.subr.mxu0 %v6899_v2 }
0x10a1   :  { %6450 = vmatprep.mubr.msk.f32.mxu0 %vm6907_vm3, %v6899_v2 }
0x10a2   :  { %v3473_v6 = vpop.permute.xlu1 %3472 }
0x10a3   :  { %6444 = vmatpush3.msk.msra.mxu1 %vm1690_vm6, %v3473_v6 }
0x10a4   :  { %6446 = vmatmul.mubr.msk.f32.vlgmr.msra.gmra.mrb[34].mxu1 %vm1686_vm7, %v5985_v4  ;;  %6453 = vmatprep.subr.mxu1 %v6899_v2 }
0x10a5   :  { %6454 = vmatpush3.msk.msra.mxu1 %vm1690_vm6, %v3632_v5  ;;  %6455 = vmatprep.mubr.msk.f32.mxu1 %vm6907_vm3, %v6899_v2 }
0x10a6   :  { %v3554_v50 = vpop.permute.xlu1 %3553  ;;  %6463 = vmatprep.subr.mxu1 %v6899_v2 }
0x10a7   :  { %6449 = vmatpush3.msk.msra.mxu0 %vm1690_vm6, %v3554_v50 }
0x10a8   :  { %6451 = vmatmul.mubr.msk.f32.vlgmr.msra.gmra.mrb[36].mxu0 %vm1686_vm7, %v5997_v7  ;;  %6456 = vmatmul.mubr.msk.f32.vlgmr.msra.gmra.mrb[36].mxu1 %vm1686_vm7, %v5986_v8 }
0x10a9   :  { %6464 = vmatpush3.msk.msra.mxu1 %vm1690_vm6, %v3795_v11  ;;  %6458 = vmatprep.subr.mxu0 %v6899_v2 }
0x10aa   :  { %v3713_v14 = vpop.permute.xlu1 %3712  ;;  %6460 = vmatprep.mubr.msk.f32.mxu0 %vm6907_vm3, %v6899_v2  ;;  %6465 = vmatprep.mubr.msk.f32.mxu1 %vm6907_vm3, %v6899_v2 }
0x10ab   :  { %6459 = vmatpush3.msk.msra.mxu0 %vm1690_vm6, %v3713_v14  ;;  %6473 = vmatprep.subr.mxu1 %v6899_v2  ;;  %v3960_v52 = vpop.permute.xlu0 %3959 }
0x10ac   :  { %6461 = vmatmul.mubr.msk.f32.vlgmr.msra.gmra.mrb[38].mxu0 %vm1686_vm7, %v6002_v12  ;;  %6466 = vmatmul.mubr.msk.f32.vlgmr.msra.gmra.mrb[38].mxu1 %vm1686_vm7, %v6005_v13 }
0x10ad   :  { %6468 = vmatprep.subr.mxu0 %v6899_v2  ;;  %6470 = vmatprep.mubr.msk.f32.mxu0 %vm6907_vm3, %v6899_v2 }
0x10ae   :  { %v3877_v21 = vpop.permute.xlu1 %3876  ;;  %6475 = vmatprep.mubr.msk.f32.mxu1 %vm6907_vm3, %v6899_v2 }
0x10af   :  { %6469 = vmatpush3.msk.msra.mxu0 %vm1690_vm6, %v3877_v21 }
0x10b0   :  { %6471 = vmatmul.mubr.msk.f32.vlgmr.msra.gmra.mrb[40].mxu0 %vm1686_vm7, %v6008_v19  ;;  %6478 = vmatprep.subr.mxu0 %v6899_v2 }
0x10b1   :  { %6480 = vmatprep.mubr.msk.f32.mxu0 %vm6907_vm3, %v6899_v2 }
0x116b   :  { %v3308_v25 = vpop.f32.mrb[32].mxu0 }
0x116c   :  { %v6432_v26 = vpop.f32.mrb[33].mxu0 }
0x116f   :  { %v3386_v30 = vpop.f32.mrb[32].mxu1 }
0x1170   :  { %v3387_v31 = vadd.f32 %v3386_v30, %v3308_v25  ;;  %v6437_v32 = vpop.f32.mrb[33].mxu1 }
0x1173   :  { %v3467_v33 = vpop.f32.mrb[34].mxu0 }
0x1174   :  { %v6442_v46 = vpop.f32.mrb[35].mxu0 }
0x1177   :  { %v3545_v18 = vpop.f32.mrb[34].mxu1 }
0x1178   :  { %v3546_v47 = vadd.f32 %v3545_v18, %v3467_v33  ;;  %v6447_v35 = vpop.f32.mrb[35].mxu1  ;;  %v7619_v18 = vld [vmem:[%s7876_s1] sm:$0xf] }
0x117b   :  { %v3626_v36 = vpop.f32.mrb[36].mxu0  ;;  %v3704_v37 = vpop.f32.mrb[36].mxu1 }
0x117c   :  { %v3705_v39 = vadd.f32 %v3704_v37, %v3626_v36  ;;  %v6452_v40 = vpop.f32.mrb[37].mxu0  ;;  %v6457_v0 = vpop.f32.mrb[37].mxu1  ;;  %v6011_v36 = vld [vmem:[%s7879_s4 + $0x6c] sm:$0xf] }
0x117d   :  { %v6012_v0 = vld [vmem:[%s7879_s4 + $0x70] sm:$0xf] }
0x117f   :  { %v3785_v41 = vpop.f32.mrb[38].mxu0  ;;  %v3867_v43 = vpop.f32.mrb[38].mxu1 }
0x1180   :  { %v3789_v10 = vadd.f32 %v3785_v41, %v3387_v31  ;;  %v3871_v44 = vadd.f32 %v3867_v43, %v3546_v47  ;;  %v6462_v27 = vpop.f32.mrb[39].mxu0  ;;  %v6467_v9 = vpop.f32.mrb[39].mxu1  ;;  %v6929_v31 = vmov 26   ;;  %v6014_v47 = vld [vmem:[%s7879_s4 + $0x78] sm:$0xf] }
0x1181   :  { %v6024_v43 = vld [vmem:[%s7879_s4 + $0x80] sm:$0xf]  ;;  %v6013_v27 = vld [vmem:[%s7879_s4 + $0x74] sm:$0xf]  ;;  %v6029_v9 = vld [vmem:[%s7879_s4 + $0x84] sm:$0xf] }
0x1182   :  { %v3955_v45 = vadd.f32 %v3871_v44, %v3789_v10 }
0x1183   :  { %v3949_v49 = vpop.f32.mrb[40].mxu0 }
0x1184   :  { %v3953_v51 = vadd.f32 %v3949_v49, %v3705_v39  ;;  %v6472_v1 = vpop.f32.mrb[41].mxu0  ;;  %v6019_v39 = vld [vmem:[%s7879_s4 + $0x7c] sm:$0xf] }
0x1185   :  { %v6035_v1 = vld [vmem:[%s7879_s4 + $0x8c] sm:$0xf] }
0x1186   :  { %v3956_v53 = vadd.f32 %v3955_v45, %v3953_v51  ;;  %v6032_v51 = vld [vmem:[%s7879_s4 + $0x88] sm:$0xf] }
0x1188   :  { %v3962_v55 = vadd.f32 %v3960_v52, %v3956_v53  ;;  %v6930_v53 = vmov 27  }
0x118a   :  { %v3963_v56 = vsel %vm1637_vm4, %v3962_v55, 0.0  ;;  %v3966_v57 = vmul.f32 %v3962_v55, %v3962_v55 }
0x118b   :  { %3964 = vadd.xlane.f32.xlu1 %v3963_v56 }
0x118c   :  { %v3967_v58 = vsel %vm1637_vm4, %v3966_v57, 0.0 }
0x118d   :  { %3968 = vadd.xlane.f32.xlu0 %v3967_v58 }
0x119c   :  { %3985 = vperm.xlu1 %6818, %v7511_v54  }
0x11a0   :  { %6819 = vset.pattern.permute.xlu1 %v6929_v31 }
0x11a3   :  { %3980 = vperm.xlu0 %6817, %v7511_v54  }
0x11a7   :  { %6820 = vset.pattern.permute.xlu0 %v6930_v53 }
0x1218   :  { %v3965_v59 = vpop.xlane.xlu1 %3964 }
0x1219   :  { %v3970_v60 = vmul.f32 0.013888889, %v3965_v59 }
0x121a   :  { %v3969_v61 = vpop.xlane.xlu0 %3968 }
0x121b   :  { %v3972_v62 = vmul.f32 %v3970_v60, %v3970_v60  ;;  %v3971_v63 = vmul.f32 0.013888889, %v3969_v61  ;;  %v3975_v6 = vsub.f32 %v3962_v55, %v3970_v60  ;;  %v6931_v55 = vmov 28  }
0x121c   :  { %v3986_v11 = vpop.permute.xlu1 %3985 }
0x121d   :  { %v3973_v3 = vsub.f32 %v3971_v63, %v3972_v62 }
0x121f   :  { %v3974_v4 = vmax.f32 %v3973_v3, 0.0 }
0x1221   :  { %v3976_v5 = vadd.f32 1e-05, %v3974_v4 }
0x1222   :  { %v3981_v8 = vpop.permute.xlu0 %3980 }
0x1223   :  { %6852 = vrsqrt.f32 %v3976_v5 }
0x122d   :  { %v6853_v7 = vpop.eup %6852 }
0x122e   :  { %v3978_v50 = vmul.f32 %v6853_v7, %v3975_v6 }
0x1230   :  { %v3983_v12 = vmul.f32 %v3981_v8, %v3978_v50 }
0x1232   :  { %v3988_v13 = vadd.f32 %v3986_v11, %v3983_v12 }
0x1234   :  { %v3989_v14 = vmax.f32 %v3988_v13, 0.0 }
0x1236   :  { %3991 = vrot.lane.b32.xlu1 %v3989_v14, %s6900_s24 }
0x12a8   :  { %v3992_v54 = vpop.permute.xlu1 %3991 }
0x12a9   :  { %3994 = vst.msk [vmem:[#allocation2] sm:$0xf] %vm1669_vm5, %v3992_v54 }
0x12b0   :  { %v3995_v19 = vld [vmem:[#allocation2] sm:$0xf] }
0x12b1   :  { %v4482_v21 = vmul.f32 %v3995_v19, %v7190_v42  ;;  %v4005_v22 = vmul.f32 %v3995_v19, %v7155_v16  ;;  %v4646_v23 = vmul.f32 %v3995_v19, %v7197_v48  ;;  %v3996_v25 = vmul.f32 %v3995_v19, %v7163_v20 }
0x12b2   :  { %v4164_v26 = vmul.f32 %v3995_v19, %v7172_v29  ;;  %v3999_v30 = vmul.f32 %v3995_v19, %v7157_v17  ;;  %v4323_v32 = vmul.f32 %v3995_v19, %v7180_v34  ;;  %v4002_v33 = vmul.f32 %v3995_v19, %v7170_v28 }
0x12b3   :  { %4486 = vrot.lane.b32.xlu0 %v4482_v21, %s6915_s25  ;;  %4009 = vrot.lane.b32.xlu1 %v4005_v22, %s6908_s9  ;;  %v4564_v46 = vmul.f32 %v3995_v19, %v7187_v38 }
0x12b7   :  { %4650 = vrot.lane.b32.xlu0 %v4646_v23, %s6917_s29  ;;  %4087 = vrot.lane.b32.xlu1 %v3996_v25, %s6909_s19 }
0x12bb   :  { %4168 = vrot.lane.b32.xlu1 %v4164_v26, %s6910_s20 }
0x12bf   :  { %4246 = vrot.lane.b32.xlu1 %v3999_v30, %s6911_s21 }
0x12c3   :  { %4327 = vrot.lane.b32.xlu1 %v4323_v32, %s6912_s22 }
0x12c7   :  { %4405 = vrot.lane.b32.xlu1 %v4002_v33, %s6913_s23 }
0x12cb   :  { %4568 = vrot.lane.b32.xlu1 %v4564_v46, %s6916_s26 }
0x12cf   :  { %4733 = vperm.xlu1 %6819, %v7619_v18  }
0x12d3   :  { %6821 = vset.pattern.permute.xlu1 %v6931_v55 }
0x1325   :  { %v4010_v35 = vpop.permute.xlu1 %4009  ;;  %v4487_v10 = vpop.permute.xlu0 %4486 }
0x1326   :  { %6474 = vmatpush3.msk.msra.mxu1 %vm1690_vm6, %v4010_v35 }
0x1327   :  { %6483 = vmatprep.subr.mxu1 %v6899_v2  ;;  %6476 = vmatmul.mubr.msk.f32.vlgmr.msra.gmra.mrb[40].mxu1 %vm1686_vm7, %v6014_v47 }
0x1328   :  { %6485 = vmatprep.mubr.msk.f32.mxu1 %vm6907_vm3, %v6899_v2 }
0x1329   :  { %v4088_v37 = vpop.permute.xlu1 %4087  ;;  %v4651_v49 = vpop.permute.xlu0 %4650 }
0x132a   :  { %6479 = vmatpush3.msk.msra.mxu0 %vm1690_vm6, %v4088_v37 }
0x132b   :  { %6481 = vmatmul.mubr.msk.f32.vlgmr.msra.gmra.mrb[42].mxu0 %vm1686_vm7, %v6011_v36  ;;  %6488 = vmatprep.subr.mxu0 %v6899_v2 }
0x132c   :  { %6490 = vmatprep.mubr.msk.f32.mxu0 %vm6907_vm3, %v6899_v2 }
0x132d   :  { %v4169_v40 = vpop.permute.xlu1 %4168 }
0x132e   :  { %6484 = vmatpush3.msk.msra.mxu1 %vm1690_vm6, %v4169_v40 }
0x132f   :  { %6486 = vmatmul.mubr.msk.f32.vlgmr.msra.gmra.mrb[42].mxu1 %vm1686_vm7, %v6019_v39  ;;  %6493 = vmatprep.subr.mxu1 %v6899_v2 }
0x1330   :  { %6495 = vmatprep.mubr.msk.f32.mxu1 %vm6907_vm3, %v6899_v2 }
0x1331   :  { %v4247_v41 = vpop.permute.xlu1 %4246 }
0x1332   :  { %6489 = vmatpush3.msk.msra.mxu0 %vm1690_vm6, %v4247_v41 }
0x1333   :  { %6491 = vmatmul.mubr.msk.f32.vlgmr.msra.gmra.mrb[44].mxu0 %vm1686_vm7, %v6012_v0  ;;  %6498 = vmatprep.subr.mxu0 %v6899_v2 }
0x1334   :  { %6500 = vmatprep.mubr.msk.f32.mxu0 %vm6907_vm3, %v6899_v2 }
0x1335   :  { %v4328_v44 = vpop.permute.xlu1 %4327 }
0x1336   :  { %6494 = vmatpush3.msk.msra.mxu1 %vm1690_vm6, %v4328_v44 }
0x1337   :  { %6496 = vmatmul.mubr.msk.f32.vlgmr.msra.gmra.mrb[44].mxu1 %vm1686_vm7, %v6024_v43  ;;  %6503 = vmatprep.subr.mxu1 %v6899_v2 }
0x1338   :  { %6504 = vmatpush3.msk.msra.mxu1 %vm1690_vm6, %v4487_v10  ;;  %6505 = vmatprep.mubr.msk.f32.mxu1 %vm6907_vm3, %v6899_v2 }
0x1339   :  { %v4406_v45 = vpop.permute.xlu1 %4405  ;;  %6513 = vmatprep.subr.mxu1 %v6899_v2 }
0x133a   :  { %6499 = vmatpush3.msk.msra.mxu0 %vm1690_vm6, %v4406_v45 }
0x133b   :  { %6501 = vmatmul.mubr.msk.f32.vlgmr.msra.gmra.mrb[46].mxu0 %vm1686_vm7, %v6013_v27  ;;  %6506 = vmatmul.mubr.msk.f32.vlgmr.msra.gmra.mrb[46].mxu1 %vm1686_vm7, %v6029_v9 }
0x133c   :  { %6514 = vmatpush3.msk.msra.mxu1 %vm1690_vm6, %v4651_v49  ;;  %6508 = vmatprep.subr.mxu0 %v6899_v2 }
0x133d   :  { %v4569_v52 = vpop.permute.xlu1 %4568  ;;  %6510 = vmatprep.mubr.msk.f32.mxu0 %vm6907_vm3, %v6899_v2  ;;  %6515 = vmatprep.mubr.msk.f32.mxu1 %vm6907_vm3, %v6899_v2 }
0x133e   :  { %6509 = vmatpush3.msk.msra.mxu0 %vm1690_vm6, %v4569_v52  ;;  %6523 = vmatprep.subr.mxu1 %v6899_v2 }
0x133f   :  { %6511 = vmatmul.mubr.msk.f32.vlgmr.msra.gmra.mrb[48].mxu0 %vm1686_vm7, %v6032_v51  ;;  %6516 = vmatmul.mubr.msk.f32.vlgmr.msra.gmra.mrb[48].mxu1 %vm1686_vm7, %v6035_v1 }
0x1340   :  { %6518 = vmatprep.subr.mxu0 %v6899_v2  ;;  %6520 = vmatprep.mubr.msk.f32.mxu0 %vm6907_vm3, %v6899_v2 }
0x1341   :  { %6525 = vmatprep.mubr.msk.f32.mxu1 %vm6907_vm3, %v6899_v2 }
0x134e   :  { %v4734_v26 = vpop.permute.xlu1 %4733 }
0x13fa   :  { %v4082_v56 = vpop.f32.mrb[40].mxu1 }
0x13fb   :  { %v6477_v57 = vpop.f32.mrb[41].mxu1 }
0x13fc   :  { %v6040_v57 = vld [vmem:[%s7880_s5 + $0x6] sm:$0x3] }
0x13fe   :  { %v4160_v58 = vpop.f32.mrb[42].mxu0 }
0x13ff   :  { %v4161_v59 = vadd.f32 %v4160_v58, %v4082_v56  ;;  %v6482_v60 = vpop.f32.mrb[43].mxu0 }
0x1400   :  { %v6038_v60 = vld [vmem:[%s7880_s5 + $0x2] sm:$0x3] }
0x1402   :  { %v4241_v61 = vpop.f32.mrb[42].mxu1 }
0x1403   :  { %v6487_v62 = vpop.f32.mrb[43].mxu1 }
0x1406   :  { %v4319_v63 = vpop.f32.mrb[44].mxu0 }
0x1407   :  { %v4320_v3 = vadd.f32 %v4319_v63, %v4241_v61  ;;  %v6492_v4 = vpop.f32.mrb[45].mxu0  ;;  %v6050_v63 = vld [vmem:[%s7880_s5 + $0xa] sm:$0x3] }
0x140a   :  { %v4400_v5 = vpop.f32.mrb[44].mxu1 }
0x140b   :  { %v6497_v6 = vpop.f32.mrb[45].mxu1 }
0x140c   :  { %v6055_v6 = vld [vmem:[%s7880_s5 + $0xc] sm:$0x3] }
0x140e   :  { %v4478_v7 = vpop.f32.mrb[46].mxu0  ;;  %v4559_v8 = vpop.f32.mrb[46].mxu1 }
0x140f   :  { %v4479_v50 = vadd.f32 %v4478_v7, %v4400_v5  ;;  %v4563_v11 = vadd.f32 %v4559_v8, %v4161_v59  ;;  %v6502_v12 = vpop.f32.mrb[47].mxu0  ;;  %v6507_v13 = vpop.f32.mrb[47].mxu1  ;;  %v6058_v7 = vld [vmem:[%s7880_s5 + $0xe] sm:$0x3] }
0x1410   :  { %v6933_v12 = vmov 30   ;;  %v6934_v13 = vmov 31  }
0x1412   :  { %v4641_v14 = vpop.f32.mrb[48].mxu0  ;;  %v4723_v54 = vpop.f32.mrb[48].mxu1 }
0x1413   :  { %v4645_v19 = vadd.f32 %v4641_v14, %v4320_v3  ;;  %v4727_v21 = vadd.f32 %v4723_v54, %v4479_v50  ;;  %v6512_v22 = vpop.f32.mrb[49].mxu0  ;;  %v6517_v23 = vpop.f32.mrb[49].mxu1  ;;  %v6039_v3 = vld [vmem:[%s7880_s5 + $0x4] sm:$0x3]  ;;  %v6061_v50 = vld [vmem:[%s7880_s5 + $0x10] sm:$0x3] }
0x1415   :  { %v4729_v25 = vadd.f32 %v4645_v19, %v4563_v11 }
0x1417   :  { %v4730_v30 = vadd.f32 %v4729_v25, %v4727_v21 }
0x1419   :  { %v4736_v31 = vadd.f32 %v4734_v26, %v4730_v30 }
0x141b   :  { %v4737_v32 = vadd.f32 %v4736_v31, %v7484_v24 }
0x141d   :  { %v4738_v33 = vsel %vm1637_vm4, %v4737_v32, 0.0  ;;  %v4741_v46 = vmul.f32 %v4737_v32, %v4737_v32 }
0x141e   :  { %4739 = vadd.xlane.f32.xlu0 %v4738_v33 }
0x141f   :  { %v4742_v47 = vsel %vm1637_vm4, %v4741_v46, 0.0 }
0x1420   :  { %4743 = vadd.xlane.f32.xlu1 %v4742_v47 }
0x1431   :  { %4760 = vperm.xlu1 %6821, %v7619_v18  }
0x1434   :  { %4755 = vperm.xlu0 %6820, %v7619_v18  }
0x1435   :  { %6824 = vset.pattern.permute.xlu1 %v6934_v13 }
0x14ab   :  { %v4740_v35 = vpop.xlane.xlu0 %4739 }
0x14ac   :  { %v4745_v36 = vmul.f32 0.013888889, %v4740_v35 }
0x14ad   :  { %v4744_v37 = vpop.xlane.xlu1 %4743 }
0x14ae   :  { %v4747_v39 = vmul.f32 %v4745_v36, %v4745_v36  ;;  %v4746_v40 = vmul.f32 0.013888889, %v4744_v37  ;;  %v4750_v24 = vsub.f32 %v4737_v32, %v4745_v36 }
0x14b0   :  { %v4748_v0 = vsub.f32 %v4746_v40, %v4747_v39 }
0x14b1   :  { %v4761_v9 = vpop.permute.xlu1 %4760 }
0x14b2   :  { %v4749_v41 = vmax.f32 %v4748_v0, 0.0 }
0x14b3   :  { %v4756_v44 = vpop.permute.xlu0 %4755 }
0x14b4   :  { %v4751_v43 = vadd.f32 1e-05, %v4749_v41 }
0x14b6   :  { %6854 = vrsqrt.f32 %v4751_v43 }
0x14c0   :  { %v6855_v10 = vpop.eup %6854 }
0x14c1   :  { %v4753_v27 = vmul.f32 %v6855_v10, %v4750_v24 }
0x14c3   :  { %v4758_v45 = vmul.f32 %v4756_v44, %v4753_v27 }
0x14c5   :  { %v4763_v49 = vadd.f32 %v4761_v9, %v4758_v45 }
0x14c7   :  { %4765 = vrot.lane.b32.xlu1 %v4763_v49, %s6900_s24 }
0x1539   :  { %v4766_v51 = vpop.permute.xlu1 %4765 }
0x153a   :  { %4768 = vst.msk [vmem:[#allocation2] sm:$0xf] %vm1669_vm5, %v4766_v51 }
0x1541   :  { %v4769_v18 = vld [vmem:[#allocation2] sm:$0xf] }
0x1542   :  { %v4778_v1 = vmul.f32 %v4769_v18, %v7155_v16  ;;  %v4775_v52 = vmul.f32 %v4769_v18, %v7170_v28  ;;  %v5337_v53 = vmul.f32 %v4769_v18, %v7187_v38  ;;  %v4770_v55 = vmul.f32 %v4769_v18, %v7163_v20  ;;  %v7716_v28 = vld [vmem:[%s7876_s1] sm:$0x3] }
0x1543   :  { %v4937_v56 = vmul.f32 %v4769_v18, %v7172_v29  ;;  %v4772_v16 = vmul.f32 %v4769_v18, %v7157_v17  ;;  %v6932_v38 = vmov 29   ;;  %v5096_v20 = vmul.f32 %v4769_v18, %v7180_v34  ;;  %v4771_v34 = vld [vmem:[%s7880_s5] sm:$0x3] }
0x1544   :  { %4782 = vrot.lane.b32.xlu1 %v4778_v1, %s6908_s9  ;;  %5178 = vrot.lane.b32.xlu0 %v4775_v52, %s6913_s23  ;;  %v5255_v29 = vmul.f32 %v4769_v18, %v7190_v42  ;;  %v5419_v17 = vmul.f32 %v4769_v18, %v7197_v48  ;;  %v6045_v48 = vld [vmem:[%s7880_s5 + $0x8] sm:$0x3]  ;;  %v5539_v1 = vld [vmem:[%s7882_s7] sm:$0xff] }
0x1545   :  { %6822 = vset.pattern.permute.xlu0 %v6932_v38  ;;  %v5540_v52 = vld [vmem:[%s7882_s7 + $0x8] sm:$0xff]  ;;  %v5712_v38 = vld [vmem:[%s7882_s7 + $0x20] sm:$0xf] }
0x1548   :  { %5341 = vrot.lane.b32.xlu0 %v5337_v53, %s6916_s26  ;;  %4860 = vrot.lane.b32.xlu1 %v4770_v55, %s6909_s19  ;;  %v6659_v53 = vpack.c.bf16 %v5540_v52, %v5539_v1  ;;  %v5541_v55 = vld [vmem:[%s7882_s7 + $0x10] sm:$0xff] }
0x154c   :  { %4941 = vrot.lane.b32.xlu1 %v4937_v56, %s6910_s20  ;;  %5506 = vperm.xlu0 %6822, %v7716_v28   ;;  %v5542_v56 = vld [vmem:[%s7882_s7 + $0x18] sm:$0xff] }
0x1550   :  { %5019 = vrot.lane.b32.xlu1 %v4772_v16, %s6911_s21  ;;  %6823 = vset.pattern.permute.xlu0 %v6933_v12  ;;  %v6662_v16 = vpack.c.bf16 %v5542_v56, %v5541_v55 }
0x1554   :  { %5100 = vrot.lane.b32.xlu1 %v5096_v20, %s6912_s22 }
0x1558   :  { %5259 = vrot.lane.b32.xlu1 %v5255_v29, %s6915_s25 }
0x155c   :  { %5423 = vrot.lane.b32.xlu1 %v5419_v17, %s6917_s29 }
0x15b6   :  { %v4783_v58 = vpop.permute.xlu1 %4782  ;;  %v5179_v61 = vpop.permute.xlu0 %5178 }
0x15b7   :  { %6519 = vmatpush3.msk.msra.mxu0 %vm1690_vm6, %v4783_v58 }
0x15b8   :  { %6528 = vmatprep.subr.mxu0 %v6899_v2  ;;  %6521 = vmatmul.mubr.msk.f32.vlgmr.msra.gmra.mrb[50].mxu0 %vm1686_vm7, %v6040_v57 }
0x15b9   :  { %6530 = vmatprep.mubr.msk.f32.mxu0 %vm6907_vm3, %v6899_v2 }
0x15ba   :  { %v4861_v42 = vpop.permute.xlu1 %4860  ;;  %v5342_v5 = vpop.permute.xlu0 %5341 }
0x15bb   :  { %6524 = vmatpush3.msk.msra.mxu1 %vm1690_vm6, %v4861_v42 }
0x15bc   :  { %6526 = vmatmul.mubr.msk.f32.vlgmr.msra.gmra.mrb[50].mxu1 %vm1686_vm7, %v4771_v34  ;;  %6533 = vmatprep.subr.mxu1 %v6899_v2 }
0x15bd   :  { %6535 = vmatprep.mubr.msk.f32.mxu1 %vm6907_vm3, %v6899_v2 }
0x15be   :  { %v4942_v59 = vpop.permute.xlu1 %4941 }
0x15bf   :  { %6529 = vmatpush3.msk.msra.mxu0 %vm1690_vm6, %v4942_v59 }
0x15c0   :  { %6531 = vmatmul.mubr.msk.f32.vlgmr.msra.gmra.mrb[52].mxu0 %vm1686_vm7, %v6045_v48  ;;  %6538 = vmatprep.subr.mxu0 %v6899_v2 }
0x15c1   :  { %6540 = vmatprep.mubr.msk.f32.mxu0 %vm6907_vm3, %v6899_v2 }
0x15c2   :  { %v5020_v62 = vpop.permute.xlu1 %5019 }
0x15c3   :  { %6534 = vmatpush3.msk.msra.mxu1 %vm1690_vm6, %v5020_v62 }
0x15c4   :  { %6536 = vmatmul.mubr.msk.f32.vlgmr.msra.gmra.mrb[52].mxu1 %vm1686_vm7, %v6038_v60  ;;  %6543 = vmatprep.subr.mxu1 %v6899_v2 }
0x15c5   :  { %6544 = vmatpush3.msk.msra.mxu1 %vm1690_vm6, %v5179_v61  ;;  %6545 = vmatprep.mubr.msk.f32.mxu1 %vm6907_vm3, %v6899_v2 }
0x15c6   :  { %v5101_v4 = vpop.permute.xlu1 %5100  ;;  %6553 = vmatprep.subr.mxu1 %v6899_v2 }
0x15c7   :  { %6539 = vmatpush3.msk.msra.mxu0 %vm1690_vm6, %v5101_v4  ;;  %v6066_v4 = vld [vmem:[%s7882_s7 + $0x28] sm:$0xff] }
0x15c8   :  { %6541 = vmatmul.mubr.msk.f32.vlgmr.msra.gmra.mrb[54].mxu0 %vm1686_vm7, %v6050_v63  ;;  %6546 = vmatmul.mubr.msk.f32.vlgmr.msra.gmra.mrb[54].mxu1 %vm1686_vm7, %v6039_v3 }
0x15c9   :  { %6554 = vmatpush3.msk.msra.mxu1 %vm1690_vm6, %v5342_v5  ;;  %6548 = vmatprep.subr.mxu0 %v6899_v2  ;;  %v6067_v5 = vld [vmem:[%s7882_s7 + $0x30] sm:$0xff] }
0x15ca   :  { %v5260_v8 = vpop.permute.xlu1 %5259  ;;  %6550 = vmatprep.mubr.msk.f32.mxu0 %vm6907_vm3, %v6899_v2  ;;  %6555 = vmatprep.mubr.msk.f32.mxu1 %vm6907_vm3, %v6899_v2 }
0x15cb   :  { %6549 = vmatpush3.msk.msra.mxu0 %vm1690_vm6, %v5260_v8  ;;  %6658 = vmatprep.subr.bf16.mxu1 %v6906_v15  ;;  %v5507_v27 = vpop.permute.xlu0 %5506 }
0x15cc   :  { %6551 = vmatmul.mubr.msk.f32.vlgmr.msra.gmra.mrb[56].mxu0 %vm1686_vm7, %v6055_v6  ;;  %6556 = vmatmul.mubr.msk.f32.vlgmr.msra.gmra.mrb[56].mxu1 %vm1686_vm7, %v6058_v7  ;;  %v6665_v7 = vpack.c.bf16 %v6067_v5, %v6066_v4 }
0x15cd   :  { %6558 = vmatprep.subr.mxu0 %v6899_v2  ;;  %6560 = vmatprep.mubr.msk.f32.mxu0 %vm6907_vm3, %v6899_v2 }
0x15ce   :  { %v5424_v11 = vpop.permute.xlu1 %5423  ;;  %6573 = vmatprep.mubr.msk.f32.mxu1 %vm6907_vm3, %v6899_v2  ;;  %6660 = vmatpush3.bf16.msra.mxu1 %v6659_v53 }
0x15cf   :  { %6559 = vmatpush3.msk.msra.mxu0 %vm1690_vm6, %v5424_v11  ;;  %6661 = vmatprep.subr.bf16.mxu1 %v6906_v15  ;;  %v6069_v11 = vld [vmem:[%s7882_s7 + $0x40] sm:$0xff] }
0x15d0   :  { %6561 = vmatmul.mubr.msk.f32.vlgmr.msra.gmra.mrb[58].mxu0 %vm1686_vm7, %v6061_v50  ;;  %6670 = vmatprep.subr.bf16.mxu0 %v6906_v15  ;;  %v6068_v50 = vld [vmem:[%s7882_s7 + $0x38] sm:$0xff] }
0x15d1   :  { %6599 = vmatprep.mubr.msk.f32.mxu0 %vm6907_vm3, %v6899_v2  ;;  %6672 = vmatpush3.bf16.msra.mxu0 %v6659_v53  ;;  %v6668_v12 = vpack.c.bf16 %v6069_v11, %v6068_v50 }
0x15d2   :  { %6673 = vmatprep.subr.bf16.mxu0 %v6906_v15  ;;  %6663 = vmatpush3.bf16.msra.mxu1 %v6662_v16 }
0x15d3   :  { %6571 = vmatprep.subr.mxu1 %v6899_v2 }
0x15d5   :  { %6675 = vmatpush3.bf16.msra.mxu0 %v6662_v16 }
0x15d6   :  { %6597 = vmatprep.subr.mxu0 %v6899_v2 }
0x15d9   :  { %6598 = vmatpush3.msk.msra.mxu0 %vm1690_vm6, %v5712_v38 }
0x15da   :  { %6676 = vmatprep.subr.bf16.mxu0 %v6906_v15 }
0x168b   :  { %v4855_v14 = vpop.f32.mrb[50].mxu0 }
0x168c   :  { %v6522_v54 = vpop.f32.mrb[51].mxu0 }
0x168f   :  { %v4933_v19 = vpop.f32.mrb[50].mxu1 }
0x1690   :  { %v4934_v21 = vadd.f32 %v4933_v19, %v4855_v14  ;;  %v6527_v22 = vpop.f32.mrb[51].mxu1  ;;  %v6070_v14 = vld [vmem:[%s7882_s7 + $0x48] sm:$0xf] }
0x1691   :  { %v6079_v19 = vld [vmem:[%s7882_s7 + $0x48] sm:$0xf]  ;;  %v5538_v22 = vld [vmem:[%s7883_s8] sm:$0x1] }
0x1693   :  { %v5014_v23 = vpop.f32.mrb[52].mxu0 }
0x1694   :  { %v6532_v25 = vpop.f32.mrb[53].mxu0 }
0x1697   :  { %v5092_v26 = vpop.f32.mrb[52].mxu1 }
0x1698   :  { %v5093_v30 = vadd.f32 %v5092_v26, %v5014_v23  ;;  %v6537_v31 = vpop.f32.mrb[53].mxu1 }
0x169b   :  { %v5173_v32 = vpop.f32.mrb[54].mxu0  ;;  %v5251_v33 = vpop.f32.mrb[54].mxu1 }
0x169c   :  { %v6542_v46 = vpop.f32.mrb[55].mxu0  ;;  %v5252_v47 = vadd.f32 %v5251_v33, %v5173_v32  ;;  %v6547_v35 = vpop.f32.mrb[55].mxu1 }
0x169f   :  { %v5332_v36 = vpop.f32.mrb[56].mxu0  ;;  %v5414_v37 = vpop.f32.mrb[56].mxu1 }
0x16a0   :  { %v5336_v39 = vadd.f32 %v5332_v36, %v4934_v21  ;;  %v5418_v40 = vadd.f32 %v5414_v37, %v5093_v30  ;;  %v6552_v0 = vpop.f32.mrb[57].mxu0  ;;  %v6557_v41 = vpop.f32.mrb[57].mxu1 }
0x16a2   :  { %v5502_v43 = vadd.f32 %v5418_v40, %v5336_v39 }
0x16a3   :  { %v5496_v24 = vpop.f32.mrb[58].mxu0 }
0x16a4   :  { %v5500_v10 = vadd.f32 %v5496_v24, %v5252_v47  ;;  %v6562_v44 = vpop.f32.mrb[59].mxu0 }
0x16a6   :  { %v5503_v9 = vadd.f32 %v5502_v43, %v5500_v10 }
0x16a8   :  { %v5509_v45 = vadd.f32 %v5507_v27, %v5503_v9 }
0x16aa   :  { %v5511_v49 = vsel %vm5510_vm8, %v5509_v45, 0.0  ;;  %v5514_v51 = vmul.f32 %v5509_v45, %v5509_v45 }
0x16ab   :  { %5512 = vadd.xlane.f32.xlu1 %v5511_v49 }
0x16ac   :  { %v5515_v18 = vsel %vm5510_vm8, %v5514_v51, 0.0 }
0x16ad   :  { %5516 = vadd.xlane.f32.xlu0 %v5515_v18 }
0x16bc   :  { %5533 = vperm.xlu1 %6824, %v7716_v28  }
0x16c3   :  { %5528 = vperm.xlu0 %6823, %v7716_v28   ;;  %v5543_v28 = vld [vmem:[%s7882_s7 + $0x20] sm:$0xf]  ;;  %s5881_s7 = sshll.u32 %s6936_s12, 4  ;;  %s5882_s7 = int_to_ptr.vmem [resolvable:$true] %s5881_s7 }
0x16c4   :  { %6572 = vmatpush3.msk.msra.mxu1 %vm1690_vm6, %v5543_v28  ;;  %s6858_s13 = scalar_lea.vmem %s5882_s7, 32  ;;  %p6863_p1 = scmp.lt.s32.totalorder %s5882_s7, %s5882_s7 }
0x16c5   :  { %6664 = vmatprep.subr.bf16.mxu1 %v6906_v15  ;;  %p6859_p0 = scmp.ne.s32.totalorder %s5882_s7, %s6858_s13  ;;  %p6864_p2 = scmp.lt.s32.totalorder %s6858_s13, %s6858_s13 }
0x16c7   :  { %6825 = vset.pattern.permute.xlu0 %v6934_v13  ;;  %p6865_p3 = por %p6864_p2, %p6863_p1 }
0x16c9   :  { %p6866_p4 = pnand %p6865_p3, %p6859_p0 }
0x1738   :  { %v5513_v20 = vpop.xlane.xlu1 %5512 }
0x1739   :  { %v5518_v29 = vmul.f32 0.013888889, %v5513_v20 }
0x173a   :  { %v5517_v17 = vpop.xlane.xlu0 %5516 }
0x173b   :  { %v5520_v57 = vmul.f32 %v5518_v29, %v5518_v29  ;;  %v5519_v58 = vmul.f32 0.013888889, %v5517_v17  ;;  %v5523_v59 = vsub.f32 %v5509_v45, %v5518_v29 }
0x173c   :  { %v5534_v63 = vpop.permute.xlu1 %5533 }
0x173d   :  { %v5521_v34 = vsub.f32 %v5519_v58, %v5520_v57 }
0x173f   :  { %v5522_v42 = vmax.f32 %v5521_v34, 0.0 }
0x1741   :  { %v5524_v48 = vadd.f32 1e-05, %v5522_v42 }
0x1742   :  { %v5529_v61 = vpop.permute.xlu0 %5528 }
0x1743   :  { %6856 = vrsqrt.f32 %v5524_v48 }
0x174d   :  { %v6857_v60 = vpop.eup %6856 }
0x174e   :  { %v5526_v62 = vmul.f32 %v6857_v60, %v5523_v59 }
0x1750   :  { %v5531_v3 = vmul.f32 %v5529_v61, %v5526_v62 }
0x1752   :  { %v5536_v6 = vadd.f32 %v5534_v63, %v5531_v3 }
0x1754   :  { %v5537_v8 = vmax.f32 %v5536_v6, 0.0 }
0x1756   :  { %5713 = vrot.lane.b32.xlu1 %v5537_v8, %s6935_s6  ;;  %6574 = vmatmul.mubr.msk.f32.vlgmr.msra.gmra.mrb[58].mxu1 %vm5544_vm9, %v5537_v8  ;;  %v5628_v13 = vrot.slane %v5537_v8, 1 }
0x1757   :  { %6666 = vmatpush3.bf16.msra.mxu1 %v6665_v7  ;;  %6586 = vmatprep.mubr.msk.f32.mxu1 %vm6907_vm3, %v6899_v2 }
0x1758   :  { %6667 = vmatprep.subr.bf16.mxu1 %v6906_v15 }
0x175a   :  { %5796 = vrot.lane.b32.xlu1 %v5628_v13, %s6935_s6 }
0x175b   :  { %6669 = vmatpush3.bf16.msra.mxu1 %v6668_v12 }
0x175c   :  { %6584 = vmatprep.subr.mxu1 %v6899_v2 }
0x175f   :  { %6585 = vmatpush3.msk.msra.mxu1 %vm1690_vm6, %v6070_v14 }
0x1760   :  { %6587 = vmatmul.mubr.msk.f32.vlgmr.msra.gmra.mrb[58].mxu1 %vm5544_vm9, %v5628_v13 }
0x17c8   :  { %v5714_v54 = vpop.permute.xlu1 %5713 }
0x17c9   :  { %6600 = vmatmul.mubr.msk.f32.vlgmr.msra.gmra.mrb[60].mxu0 %vm5544_vm9, %v5714_v54 }
0x17ca   :  { %6678 = vmatpush3.bf16.msra.mxu0 %v6665_v7  ;;  %6612 = vmatprep.mubr.msk.f32.mxu0 %vm6907_vm3, %v6899_v2 }
0x17cb   :  { %6679 = vmatprep.subr.bf16.mxu0 %v6906_v15 }
0x17cc   :  { %v5797_v21 = vpop.permute.xlu1 %5796 }
0x17ce   :  { %6681 = vmatpush3.bf16.msra.mxu0 %v6668_v12 }
0x17cf   :  { %6610 = vmatprep.subr.mxu0 %v6899_v2  ;;  %v5707_v2 = vld [vmem:[%s7883_s8] sm:$0x1] }
0x17d2   :  { %6611 = vmatpush3.msk.msra.mxu0 %vm1690_vm6, %v6079_v19 }
0x17d3   :  { %6613 = vmatmul.mubr.msk.f32.vlgmr.msra.gmra.mrb[60].mxu0 %vm5544_vm9, %v5797_v21 }
0x1833   :  { %v5700_v23 = vpop.f32.mrb[58].mxu1 }
0x1834   :  { %v6682_v25 = vadd.f32 %v5700_v23, %v5538_v22  ;;  %v6588_v15 = vpop.f32.mrb[59].mxu1 }
0x1836   :  { %5706 = vst.msk [vmem:[#allocation3] sm:$0x1] %vm5705_vm10, %v6682_v25 }
0x18a6   :  { %v5869_v26 = vpop.f32.mrb[60].mxu0 }
0x18a7   :  { %v6683_v30 = vadd.f32 %v5869_v26, %v5707_v2  ;;  %v6614_v31 = vpop.f32.mrb[61].mxu0 }
0x18a9   :  { %5874 = vst.msk [vmem:[#allocation3 + $0x1] sm:$0x1] %vm5705_vm10, %v6683_v30 }
0x18aa   :  { %6869 = shalt.err (!%p6866_p4)
}
0x18ab   :  { %s6870_s15 = scalar_lea.hbm %s7885_s10, 32 }
0x18ac   :  { %p6871_p5 = scmp.ne.s32.totalorder %s7885_s10, %s6870_s15  ;;  %p6874_p6 = scmp.lt.u32.totalorder %s6870_s15, %s7885_s10 }
0x18ae   :  { %p6876_p7 = pnand %p6874_p6, %p6871_p5 }
0x18b0   :  { %6879 = shalt.err (!%p6876_p7)
}
0x18b1   :  { %5884 = dma.vmem_to_hbm [thread:$0]  %s5882_s7, 32, %s7885_s10, [#allocation4]  }
0x18b2   :  { %6880 = dma.done.wait [#allocation4], 32  }
0x18b3   :  { %6881 = vsyncadd [#allocation4], 4294967264 }
0x18b4   :  { %5888 = vsyncpa [#allocation4], 1 }

</bundles_post_ra>
